<compile_context>
chip_gen: v7x
topology: tpu7x:2x2x1
jax: 0.10.0
libtpu: 0.0.40
codegen_flags: <defaults>
</compile_context>

<pallas_src>
import jax
import jax.numpy as jnp
import numpy as np
from jax import lax
from jax.experimental import pallas as pl
from jax.experimental.pallas import tpu as pltpu

EPS = 1e-5
SQUAREPLUS_A = 1.5        # Squareplus(a=1.5)
SOFTPLUS_THRESH = 20.0    # F.softplus default threshold


def _softplus(x):
    # matches torch.nn.functional.softplus(beta=1, threshold=20)
    return jnp.where(x > SOFTPLUS_THRESH, x,
                     jnp.log(1.0 + jnp.exp(jnp.minimum(x, SOFTPLUS_THRESH))))


def _squareplus(x, a):
    return 0.5 * (x + jnp.sqrt(x * x + a * a))


def _sign(x):
    # torch.sign semantics (sign(0) == 0)
    return jnp.where(x > 0, 1.0, jnp.where(x < 0, -1.0, 0.0)).astype(x.dtype)


def _stabilize(v):
    # alpha/beta EPS stabilisation; unconditional form is equivalent to the
    # torch conditional (the where is a no-op when nothing is below EPS).
    return jnp.where(jnp.abs(v) < EPS, v + (_sign(v) + 0.1) * EPS, v)


def _round_up(v, m):
    return ((v + m - 1) // m) * m


def make_bdr_kernel(num_hidden, n_components, matmul_dtype=None):
    N = n_components

    def kernel(*refs):
        # refs: x_tile, (w_i, b_i)*num_hidden, w_heads, b_heads,
        #       f_out, alpha_out, beta_out
        x_ref = refs[0]
        hidden_refs = refs[1:1 + 2 * num_hidden]
        wh_ref, bh_ref = refs[1 + 2 * num_hidden:3 + 2 * num_hidden]
        f_out, a_out, b_out = refs[3 + 2 * num_hidden:]

        def mm(lhs, w):
            if matmul_dtype is not None:
                lhs = lhs.astype(matmul_dtype)
            return jnp.dot(lhs, w, preferred_element_type=jnp.float32)

        # ---- GILinear (posterior mean) + Squareplus stack --------------------
        h = x_ref[...]
        for li in range(num_hidden):
            h = mm(h, hidden_refs[2 * li][...]) + hidden_refs[2 * li + 1][...]
            h = _squareplus(h, SQUAREPLUS_A)

        # ---- fused heads: single (fan_in, 3N) matmul, then lane-split --------
        heads = mm(h, wh_ref[...]) + bh_ref[...]
        f = heads[:, 0:N]
        al = heads[:, N:2 * N]
        be = heads[:, 2 * N:3 * N]

        TB = f.shape[0]
        lane = lax.broadcasted_iota(jnp.int32, (TB, N), 1)

        # ---- f_postproc == 'sort': rank-based sort, all VPU (no MXU) ---------
        # rank[i, j] = #{k : f[i,k] < f[i,j]  or  (f[i,k] == f[i,j] and k < j)}
        rank = jnp.zeros((TB, N), jnp.int32)
        for k in range(N):
            fk = f[:, k:k + 1]                                   # (TB, 1)
            counts = (fk < f) | ((fk == f) & (k < lane))
            rank = rank + counts.astype(jnp.int32)
        # scatter: sorted[i, rank[i, j]] = f[i, j]  (rank is a per-row permutation)
        f_sorted = jnp.zeros_like(f)
        for j in range(N):
            f_sorted = jnp.where(lane == rank[:, j:j + 1], f[:, j:j + 1], f_sorted)
        f = f_sorted

        # ---- alpha: cat(alpha[:, :-1], softplus(alpha[:, -1]) - sum(alpha[:, :-1]))
        head_mask = lane < (N - 1)
        a_head_sum = jnp.sum(jnp.where(head_mask, al, 0.0), axis=-1, keepdims=True)
        a_last_sp = _softplus(al[:, N - 1:N])
        alpha = jnp.where(head_mask, al, a_last_sp - a_head_sum)

        # ---- beta: cat(softplus(beta[:, 0]) - sum(beta[:, 1:]), beta[:, 1:]) -
        tail_mask = lane > 0
        b_tail_sum = jnp.sum(jnp.where(tail_mask, be, 0.0), axis=-1, keepdims=True)
        b_first_sp = _softplus(be[:, 0:1])
        beta = jnp.where(tail_mask, be, b_first_sp - b_tail_sum)

        f_out[...] = f
        a_out[...] = _stabilize(alpha)
        b_out[...] = _stabilize(beta)

    return kernel


def bdr_forward(x, params, layer_sizes, N, block_rows=512, matmul_dtype=None):
    """Pallas BDR forward.  Inducing rows are NOT fed through the kernel (see
    module-level TODO); outputs match the reference (which keeps them)."""
    B, F = x.shape
    num_hidden = len(layer_sizes)

    # Row-tile the batch; pad to a multiple of the tile.
    TB = min(block_rows, _round_up(B, 8))
    Bp = _round_up(B, TB)
    xp = x if Bp == B else jnp.pad(x, ((0, Bp - B), (0, 0)))

    # Fused head weight/bias: [f | alpha | beta] along the output (lane) axis.
    w_heads = jnp.concatenate([params["wf"], params["wa"], params["wb"]], axis=1)
    b_heads = jnp.concatenate([params["bf"], params["ba"], params["bb"]], axis=1)

    def _wcast(w):  # only matmul operands get the narrow dtype; biases stay f32
        return w if matmul_dtype is None else w.astype(matmul_dtype)

    args = [_wcast(xp)]
    for i in range(num_hidden):
        args += [_wcast(params[f"w{i}"]), params[f"b{i}"]]
    args += [_wcast(w_heads), b_heads]

    kernel = make_bdr_kernel(num_hidden, N, matmul_dtype)

    grid = (Bp // TB,)
    in_specs = [pl.BlockSpec((TB, F), lambda i: (i, 0))]           # x row-tiles
    in_specs += [pl.BlockSpec(a.shape, lambda i: (0, 0)) for a in args[1:]]  # resident weights
    out_specs = tuple(pl.BlockSpec((TB, N), lambda i: (i, 0)) for _ in range(3))
    out_shape = tuple(jax.ShapeDtypeStruct((Bp, N), jnp.float32) for _ in range(3))

    f, alpha, beta = pl.pallas_call(
        kernel,
        grid=grid,
        in_specs=in_specs,
        out_specs=out_specs,
        out_shape=out_shape,
        compiler_params=pltpu.CompilerParams(
            dimension_semantics=("parallel",)),
    )(*args)

    if Bp != B:
        f, alpha, beta = f[:B], alpha[:B], beta[:B]
    return f, alpha, beta


def init_params(key, in_features, layer_sizes, N, inducing_batch):
    num_keys = 1 + 2 * len(layer_sizes) + 6
    ks = jax.random.split(key, num_keys)
    params = {}
    params["inducing_data"] = jax.random.normal(
        ks[0], (inducing_batch, in_features), jnp.float32)
    ki = 1
    fan_in = in_features
    for i, h in enumerate(layer_sizes):
        params[f"w{i}"] = jax.random.normal(ks[ki], (fan_in, h), jnp.float32) / jnp.sqrt(fan_in)
        ki += 1
        params[f"b{i}"] = 0.1 * jax.random.normal(ks[ki], (1, h), jnp.float32)
        ki += 1
        fan_in = h
    for name in ("f", "a", "b"):
        params[f"w{name}"] = jax.random.normal(ks[ki], (fan_in, N), jnp.float32) / jnp.sqrt(fan_in)
        ki += 1
        params[f"b{name}"] = 0.1 * jax.random.normal(ks[ki], (1, N), jnp.float32)
        ki += 1
    return params


def bdr_reference(x, params, inducing_batch, layer_sizes, N):
    """Pure-JAX reference mirroring the PyTorch forward (keeps inducing rows)."""
    h = jnp.concatenate([params["inducing_data"], x], axis=0)
    for i in range(len(layer_sizes)):
        h = h @ params[f"w{i}"] + params[f"b{i}"]
        h = _squareplus(h, SQUAREPLUS_A)
    f = (h @ params["wf"] + params["bf"])[inducing_batch:]
    al = (h @ params["wa"] + params["ba"])[inducing_batch:]
    be = (h @ params["wb"] + params["bb"])[inducing_batch:]
    f = jnp.sort(f, axis=-1)
    alpha = jnp.concatenate(
        [al[:, :-1],
         _softplus(al[:, -1:]) - jnp.sum(al[:, :-1], axis=-1, keepdims=True)], axis=-1)
    beta = jnp.concatenate(
        [_softplus(be[:, :1]) - jnp.sum(be[:, 1:], axis=-1, keepdims=True),
         be[:, 1:]], axis=-1)
    alpha = jnp.where(jnp.abs(alpha) < EPS, alpha + (_sign(alpha) + 0.1) * EPS, alpha)
    beta = jnp.where(jnp.abs(beta) < EPS, beta + (_sign(beta) + 0.1) * EPS, beta)
    return f, alpha, beta


if __name__ == "__main__":
    # Small shapes consistent with the module: in_features=8, one hidden layer
    # of 32 (layer_sizes=(32,)), N=10 mixture components, inducing_batch=8.
    # batch=120 with 64-row tiles exercises padding + a 2-step parallel grid.
    in_features = 8
    layer_sizes = (32,)
    N = 10
    inducing_batch = 8
    batch = 120
    block_rows = 64

    key = jax.random.PRNGKey(0)
    kx, kp = jax.random.split(key)
    x = jax.random.normal(kx, (batch, in_features), jnp.float32)
    params = init_params(kp, in_features, layer_sizes, N, inducing_batch)

    f, alpha, beta = bdr_forward(x, params, layer_sizes, N, block_rows=block_rows)
    jax.block_until_ready((f, alpha, beta))

    fr, ar, br = bdr_reference(x, params, inducing_batch, layer_sizes, N)
    np.testing.assert_allclose(np.asarray(f), np.asarray(fr), rtol=2e-2, atol=2e-2)
    np.testing.assert_allclose(np.asarray(alpha), np.asarray(ar), rtol=2e-2, atol=2e-2)
    np.testing.assert_allclose(np.asarray(beta), np.asarray(br), rtol=2e-2, atol=2e-2)
    assert bool(jnp.all(f[:, 1:] >= f[:, :-1])), "f must be sorted along last axis"

    print("KERNEL_OK")
</pallas_src>

<mosaic_0001>
module attributes {stable_mosaic.version = 11 : i64} {
  func.func @kernel(%arg0: i32, %arg1: memref<64x8xf32, #tpu.memory_space<vmem>>, %arg2: memref<8x32xf32, #tpu.memory_space<vmem>>, %arg3: memref<1x32xf32, #tpu.memory_space<vmem>>, %arg4: memref<32x30xf32, #tpu.memory_space<vmem>>, %arg5: memref<1x30xf32, #tpu.memory_space<vmem>>, %arg6: memref<64x10xf32, #tpu.memory_space<vmem>>, %arg7: memref<64x10xf32, #tpu.memory_space<vmem>>, %arg8: memref<64x10xf32, #tpu.memory_space<vmem>>) attributes {dimension_semantics = [#tpu.dimension_semantics<parallel>], iteration_bounds = array<i64: 2>, scalar_prefetch = 0 : i64, scratch_operands = 0 : i64, tpu.core_type = #tpu.core_type<tc>, window_params = [{transform_indices = @transform_0, window_bounds = array<i64: 64, 8>}, {pipeline_mode = #tpu.pipeline_mode<synchronous>, transform_indices = @transform_1, window_bounds = array<i64: 8, 32>}, {pipeline_mode = #tpu.pipeline_mode<synchronous>, transform_indices = @transform_2, window_bounds = array<i64: 1, 32>}, {pipeline_mode = #tpu.pipeline_mode<synchronous>, transform_indices = @transform_3, window_bounds = array<i64: 32, 30>}, {pipeline_mode = #tpu.pipeline_mode<synchronous>, transform_indices = @transform_4, window_bounds = array<i64: 1, 30>}, {transform_indices = @transform_5, window_bounds = array<i64: 64, 10>}, {transform_indices = @transform_6, window_bounds = array<i64: 64, 10>}, {transform_indices = @transform_7, window_bounds = array<i64: 64, 10>}]} {
    %c0 = arith.constant 0 : index
    %c0_0 = arith.constant 0 : index
    %0 = vector.load %arg1[%c0, %c0_0] : memref<64x8xf32, #tpu.memory_space<vmem>>, vector<64x8xf32>
    %c0_1 = arith.constant 0 : index
    %c0_2 = arith.constant 0 : index
    %1 = vector.load %arg2[%c0_1, %c0_2] : memref<8x32xf32, #tpu.memory_space<vmem>>, vector<8x32xf32>
    %cst = arith.constant dense<0.000000e+00> : vector<64x32xf32>
    %2 = tpu.matmul %0, %1, %cst {dimension_numbers = #tpu.dot_dimension_numbers<[1], [0], [0], [1], [0, 0, 1, 1], [], []>} : vector<64x8xf32>, vector<8x32xf32>, vector<64x32xf32> -> vector<64x32xf32>
    %c0_3 = arith.constant 0 : index
    %c0_4 = arith.constant 0 : index
    %3 = vector.load %arg3[%c0_3, %c0_4] : memref<1x32xf32, #tpu.memory_space<vmem>>, vector<1x32xf32>
    %4 = vector.broadcast %3 : vector<1x32xf32> to vector<64x32xf32>
    %5 = arith.addf %2, %4 : vector<64x32xf32>
    %6 = arith.mulf %5, %5 : vector<64x32xf32>
    %cst_5 = arith.constant 2.250000e+00 : f32
    %7 = vector.broadcast %cst_5 : f32 to vector<64x32xf32>
    %8 = arith.addf %6, %7 : vector<64x32xf32>
    %9 = math.sqrt %8 : vector<64x32xf32>
    %10 = arith.addf %5, %9 : vector<64x32xf32>
    %cst_6 = arith.constant 5.000000e-01 : f32
    %11 = vector.broadcast %cst_6 : f32 to vector<64x32xf32>
    %12 = arith.mulf %11, %10 : vector<64x32xf32>
    %c0_7 = arith.constant 0 : index
    %c0_8 = arith.constant 0 : index
    %13 = vector.load %arg4[%c0_7, %c0_8] : memref<32x30xf32, #tpu.memory_space<vmem>>, vector<32x30xf32>
    %cst_9 = arith.constant dense<0.000000e+00> : vector<64x30xf32>
    %14 = tpu.matmul %12, %13, %cst_9 {dimension_numbers = #tpu.dot_dimension_numbers<[1], [0], [0], [1], [0, 0, 1, 1], [], []>} : vector<64x32xf32>, vector<32x30xf32>, vector<64x30xf32> -> vector<64x30xf32>
    %c0_10 = arith.constant 0 : index
    %c0_11 = arith.constant 0 : index
    %15 = vector.load %arg5[%c0_10, %c0_11] : memref<1x30xf32, #tpu.memory_space<vmem>>, vector<1x30xf32>
    %16 = vector.broadcast %15 : vector<1x30xf32> to vector<64x30xf32>
    %17 = arith.addf %14, %16 : vector<64x30xf32>
    %18 = vector.extract_strided_slice %17 {offsets = [0, 0], sizes = [64, 10], strides = [1, 1]} : vector<64x30xf32> to vector<64x10xf32>
    %19 = vector.extract_strided_slice %17 {offsets = [0, 10], sizes = [64, 10], strides = [1, 1]} : vector<64x30xf32> to vector<64x10xf32>
    %20 = vector.extract_strided_slice %17 {offsets = [0, 20], sizes = [64, 10], strides = [1, 1]} : vector<64x30xf32> to vector<64x10xf32>
    %21 = tpu.iota {dimensions = array<i32: 1>} : vector<64x10xi32>
    %c0_i32 = arith.constant 0 : i32
    %22 = vector.broadcast %c0_i32 : i32 to vector<64x10xi32>
    %23 = vector.extract_strided_slice %18 {offsets = [0, 0], sizes = [64, 1], strides = [1, 1]} : vector<64x10xf32> to vector<64x1xf32>
    %24 = vector.broadcast %23 : vector<64x1xf32> to vector<64x10xf32>
    %25 = arith.cmpf olt, %24, %18 : vector<64x10xf32>
    %26 = vector.broadcast %23 : vector<64x1xf32> to vector<64x10xf32>
    %27 = arith.cmpf oeq, %26, %18 : vector<64x10xf32>
    %c0_i32_12 = arith.constant 0 : i32
    %28 = vector.broadcast %c0_i32_12 : i32 to vector<64x10xi32>
    %29 = arith.cmpi sgt, %21, %28 : vector<64x10xi32>
    %30 = arith.andi %27, %29 : vector<64x10xi1>
    %31 = arith.ori %25, %30 : vector<64x10xi1>
    %32 = arith.extui %31 : vector<64x10xi1> to vector<64x10xi32>
    %33 = arith.addi %22, %32 : vector<64x10xi32>
    %34 = vector.extract_strided_slice %18 {offsets = [0, 1], sizes = [64, 1], strides = [1, 1]} : vector<64x10xf32> to vector<64x1xf32>
    %35 = vector.broadcast %34 : vector<64x1xf32> to vector<64x10xf32>
    %36 = arith.cmpf olt, %35, %18 : vector<64x10xf32>
    %37 = vector.broadcast %34 : vector<64x1xf32> to vector<64x10xf32>
    %38 = arith.cmpf oeq, %37, %18 : vector<64x10xf32>
    %c1_i32 = arith.constant 1 : i32
    %39 = vector.broadcast %c1_i32 : i32 to vector<64x10xi32>
    %40 = arith.cmpi sgt, %21, %39 : vector<64x10xi32>
    %41 = arith.andi %38, %40 : vector<64x10xi1>
    %42 = arith.ori %36, %41 : vector<64x10xi1>
    %43 = arith.extui %42 : vector<64x10xi1> to vector<64x10xi32>
    %44 = arith.addi %33, %43 : vector<64x10xi32>
    %45 = vector.extract_strided_slice %18 {offsets = [0, 2], sizes = [64, 1], strides = [1, 1]} : vector<64x10xf32> to vector<64x1xf32>
    %46 = vector.broadcast %45 : vector<64x1xf32> to vector<64x10xf32>
    %47 = arith.cmpf olt, %46, %18 : vector<64x10xf32>
    %48 = vector.broadcast %45 : vector<64x1xf32> to vector<64x10xf32>
    %49 = arith.cmpf oeq, %48, %18 : vector<64x10xf32>
    %c2_i32 = arith.constant 2 : i32
    %50 = vector.broadcast %c2_i32 : i32 to vector<64x10xi32>
    %51 = arith.cmpi sgt, %21, %50 : vector<64x10xi32>
    %52 = arith.andi %49, %51 : vector<64x10xi1>
    %53 = arith.ori %47, %52 : vector<64x10xi1>
    %54 = arith.extui %53 : vector<64x10xi1> to vector<64x10xi32>
    %55 = arith.addi %44, %54 : vector<64x10xi32>
    %56 = vector.extract_strided_slice %18 {offsets = [0, 3], sizes = [64, 1], strides = [1, 1]} : vector<64x10xf32> to vector<64x1xf32>
    %57 = vector.broadcast %56 : vector<64x1xf32> to vector<64x10xf32>
    %58 = arith.cmpf olt, %57, %18 : vector<64x10xf32>
    %59 = vector.broadcast %56 : vector<64x1xf32> to vector<64x10xf32>
    %60 = arith.cmpf oeq, %59, %18 : vector<64x10xf32>
    %c3_i32 = arith.constant 3 : i32
    %61 = vector.broadcast %c3_i32 : i32 to vector<64x10xi32>
    %62 = arith.cmpi sgt, %21, %61 : vector<64x10xi32>
    %63 = arith.andi %60, %62 : vector<64x10xi1>
    %64 = arith.ori %58, %63 : vector<64x10xi1>
    %65 = arith.extui %64 : vector<64x10xi1> to vector<64x10xi32>
    %66 = arith.addi %55, %65 : vector<64x10xi32>
    %67 = vector.extract_strided_slice %18 {offsets = [0, 4], sizes = [64, 1], strides = [1, 1]} : vector<64x10xf32> to vector<64x1xf32>
    %68 = vector.broadcast %67 : vector<64x1xf32> to vector<64x10xf32>
    %69 = arith.cmpf olt, %68, %18 : vector<64x10xf32>
    %70 = vector.broadcast %67 : vector<64x1xf32> to vector<64x10xf32>
    %71 = arith.cmpf oeq, %70, %18 : vector<64x10xf32>
    %c4_i32 = arith.constant 4 : i32
    %72 = vector.broadcast %c4_i32 : i32 to vector<64x10xi32>
    %73 = arith.cmpi sgt, %21, %72 : vector<64x10xi32>
    %74 = arith.andi %71, %73 : vector<64x10xi1>
    %75 = arith.ori %69, %74 : vector<64x10xi1>
    %76 = arith.extui %75 : vector<64x10xi1> to vector<64x10xi32>
    %77 = arith.addi %66, %76 : vector<64x10xi32>
    %78 = vector.extract_strided_slice %18 {offsets = [0, 5], sizes = [64, 1], strides = [1, 1]} : vector<64x10xf32> to vector<64x1xf32>
    %79 = vector.broadcast %78 : vector<64x1xf32> to vector<64x10xf32>
    %80 = arith.cmpf olt, %79, %18 : vector<64x10xf32>
    %81 = vector.broadcast %78 : vector<64x1xf32> to vector<64x10xf32>
    %82 = arith.cmpf oeq, %81, %18 : vector<64x10xf32>
    %c5_i32 = arith.constant 5 : i32
    %83 = vector.broadcast %c5_i32 : i32 to vector<64x10xi32>
    %84 = arith.cmpi sgt, %21, %83 : vector<64x10xi32>
    %85 = arith.andi %82, %84 : vector<64x10xi1>
    %86 = arith.ori %80, %85 : vector<64x10xi1>
    %87 = arith.extui %86 : vector<64x10xi1> to vector<64x10xi32>
    %88 = arith.addi %77, %87 : vector<64x10xi32>
    %89 = vector.extract_strided_slice %18 {offsets = [0, 6], sizes = [64, 1], strides = [1, 1]} : vector<64x10xf32> to vector<64x1xf32>
    %90 = vector.broadcast %89 : vector<64x1xf32> to vector<64x10xf32>
    %91 = arith.cmpf olt, %90, %18 : vector<64x10xf32>
    %92 = vector.broadcast %89 : vector<64x1xf32> to vector<64x10xf32>
    %93 = arith.cmpf oeq, %92, %18 : vector<64x10xf32>
    %c6_i32 = arith.constant 6 : i32
    %94 = vector.broadcast %c6_i32 : i32 to vector<64x10xi32>
    %95 = arith.cmpi sgt, %21, %94 : vector<64x10xi32>
    %96 = arith.andi %93, %95 : vector<64x10xi1>
    %97 = arith.ori %91, %96 : vector<64x10xi1>
    %98 = arith.extui %97 : vector<64x10xi1> to vector<64x10xi32>
    %99 = arith.addi %88, %98 : vector<64x10xi32>
    %100 = vector.extract_strided_slice %18 {offsets = [0, 7], sizes = [64, 1], strides = [1, 1]} : vector<64x10xf32> to vector<64x1xf32>
    %101 = vector.broadcast %100 : vector<64x1xf32> to vector<64x10xf32>
    %102 = arith.cmpf olt, %101, %18 : vector<64x10xf32>
    %103 = vector.broadcast %100 : vector<64x1xf32> to vector<64x10xf32>
    %104 = arith.cmpf oeq, %103, %18 : vector<64x10xf32>
    %c7_i32 = arith.constant 7 : i32
    %105 = vector.broadcast %c7_i32 : i32 to vector<64x10xi32>
    %106 = arith.cmpi sgt, %21, %105 : vector<64x10xi32>
    %107 = arith.andi %104, %106 : vector<64x10xi1>
    %108 = arith.ori %102, %107 : vector<64x10xi1>
    %109 = arith.extui %108 : vector<64x10xi1> to vector<64x10xi32>
    %110 = arith.addi %99, %109 : vector<64x10xi32>
    %111 = vector.extract_strided_slice %18 {offsets = [0, 8], sizes = [64, 1], strides = [1, 1]} : vector<64x10xf32> to vector<64x1xf32>
    %112 = vector.broadcast %111 : vector<64x1xf32> to vector<64x10xf32>
    %113 = arith.cmpf olt, %112, %18 : vector<64x10xf32>
    %114 = vector.broadcast %111 : vector<64x1xf32> to vector<64x10xf32>
    %115 = arith.cmpf oeq, %114, %18 : vector<64x10xf32>
    %c8_i32 = arith.constant 8 : i32
    %116 = vector.broadcast %c8_i32 : i32 to vector<64x10xi32>
    %117 = arith.cmpi sgt, %21, %116 : vector<64x10xi32>
    %118 = arith.andi %115, %117 : vector<64x10xi1>
    %119 = arith.ori %113, %118 : vector<64x10xi1>
    %120 = arith.extui %119 : vector<64x10xi1> to vector<64x10xi32>
    %121 = arith.addi %110, %120 : vector<64x10xi32>
    %122 = vector.extract_strided_slice %18 {offsets = [0, 9], sizes = [64, 1], strides = [1, 1]} : vector<64x10xf32> to vector<64x1xf32>
    %123 = vector.broadcast %122 : vector<64x1xf32> to vector<64x10xf32>
    %124 = arith.cmpf olt, %123, %18 : vector<64x10xf32>
    %125 = vector.broadcast %122 : vector<64x1xf32> to vector<64x10xf32>
    %126 = arith.cmpf oeq, %125, %18 : vector<64x10xf32>
    %c9_i32 = arith.constant 9 : i32
    %127 = vector.broadcast %c9_i32 : i32 to vector<64x10xi32>
    %128 = arith.cmpi sgt, %21, %127 : vector<64x10xi32>
    %129 = arith.andi %126, %128 : vector<64x10xi1>
    %130 = arith.ori %124, %129 : vector<64x10xi1>
    %131 = arith.extui %130 : vector<64x10xi1> to vector<64x10xi32>
    %132 = arith.addi %121, %131 : vector<64x10xi32>
    %cst_13 = arith.constant 0.000000e+00 : f32
    %133 = vector.broadcast %cst_13 : f32 to vector<64x10xf32>
    %134 = vector.extract_strided_slice %132 {offsets = [0, 0], sizes = [64, 1], strides = [1, 1]} : vector<64x10xi32> to vector<64x1xi32>
    %135 = vector.broadcast %134 : vector<64x1xi32> to vector<64x10xi32>
    %136 = arith.cmpi eq, %21, %135 : vector<64x10xi32>
    %137 = vector.extract_strided_slice %18 {offsets = [0, 0], sizes = [64, 1], strides = [1, 1]} : vector<64x10xf32> to vector<64x1xf32>
    %138 = vector.shape_cast %137 : vector<64x1xf32> to vector<64x1xf32>
    %139 = vector.broadcast %138 : vector<64x1xf32> to vector<64x10xf32>
    %140 = arith.select %136, %139, %133 : vector<64x10xi1>, vector<64x10xf32>
    %141 = vector.extract_strided_slice %132 {offsets = [0, 1], sizes = [64, 1], strides = [1, 1]} : vector<64x10xi32> to vector<64x1xi32>
    %142 = vector.broadcast %141 : vector<64x1xi32> to vector<64x10xi32>
    %143 = arith.cmpi eq, %21, %142 : vector<64x10xi32>
    %144 = vector.extract_strided_slice %18 {offsets = [0, 1], sizes = [64, 1], strides = [1, 1]} : vector<64x10xf32> to vector<64x1xf32>
    %145 = vector.shape_cast %144 : vector<64x1xf32> to vector<64x1xf32>
    %146 = vector.broadcast %145 : vector<64x1xf32> to vector<64x10xf32>
    %147 = arith.select %143, %146, %140 : vector<64x10xi1>, vector<64x10xf32>
    %148 = vector.extract_strided_slice %132 {offsets = [0, 2], sizes = [64, 1], strides = [1, 1]} : vector<64x10xi32> to vector<64x1xi32>
    %149 = vector.broadcast %148 : vector<64x1xi32> to vector<64x10xi32>
    %150 = arith.cmpi eq, %21, %149 : vector<64x10xi32>
    %151 = vector.extract_strided_slice %18 {offsets = [0, 2], sizes = [64, 1], strides = [1, 1]} : vector<64x10xf32> to vector<64x1xf32>
    %152 = vector.shape_cast %151 : vector<64x1xf32> to vector<64x1xf32>
    %153 = vector.broadcast %152 : vector<64x1xf32> to vector<64x10xf32>
    %154 = arith.select %150, %153, %147 : vector<64x10xi1>, vector<64x10xf32>
    %155 = vector.extract_strided_slice %132 {offsets = [0, 3], sizes = [64, 1], strides = [1, 1]} : vector<64x10xi32> to vector<64x1xi32>
    %156 = vector.broadcast %155 : vector<64x1xi32> to vector<64x10xi32>
    %157 = arith.cmpi eq, %21, %156 : vector<64x10xi32>
    %158 = vector.extract_strided_slice %18 {offsets = [0, 3], sizes = [64, 1], strides = [1, 1]} : vector<64x10xf32> to vector<64x1xf32>
    %159 = vector.shape_cast %158 : vector<64x1xf32> to vector<64x1xf32>
    %160 = vector.broadcast %159 : vector<64x1xf32> to vector<64x10xf32>
    %161 = arith.select %157, %160, %154 : vector<64x10xi1>, vector<64x10xf32>
    %162 = vector.extract_strided_slice %132 {offsets = [0, 4], sizes = [64, 1], strides = [1, 1]} : vector<64x10xi32> to vector<64x1xi32>
    %163 = vector.broadcast %162 : vector<64x1xi32> to vector<64x10xi32>
    %164 = arith.cmpi eq, %21, %163 : vector<64x10xi32>
    %165 = vector.extract_strided_slice %18 {offsets = [0, 4], sizes = [64, 1], strides = [1, 1]} : vector<64x10xf32> to vector<64x1xf32>
    %166 = vector.shape_cast %165 : vector<64x1xf32> to vector<64x1xf32>
    %167 = vector.broadcast %166 : vector<64x1xf32> to vector<64x10xf32>
    %168 = arith.select %164, %167, %161 : vector<64x10xi1>, vector<64x10xf32>
    %169 = vector.extract_strided_slice %132 {offsets = [0, 5], sizes = [64, 1], strides = [1, 1]} : vector<64x10xi32> to vector<64x1xi32>
    %170 = vector.broadcast %169 : vector<64x1xi32> to vector<64x10xi32>
    %171 = arith.cmpi eq, %21, %170 : vector<64x10xi32>
    %172 = vector.extract_strided_slice %18 {offsets = [0, 5], sizes = [64, 1], strides = [1, 1]} : vector<64x10xf32> to vector<64x1xf32>
    %173 = vector.shape_cast %172 : vector<64x1xf32> to vector<64x1xf32>
    %174 = vector.broadcast %173 : vector<64x1xf32> to vector<64x10xf32>
    %175 = arith.select %171, %174, %168 : vector<64x10xi1>, vector<64x10xf32>
    %176 = vector.extract_strided_slice %132 {offsets = [0, 6], sizes = [64, 1], strides = [1, 1]} : vector<64x10xi32> to vector<64x1xi32>
    %177 = vector.broadcast %176 : vector<64x1xi32> to vector<64x10xi32>
    %178 = arith.cmpi eq, %21, %177 : vector<64x10xi32>
    %179 = vector.extract_strided_slice %18 {offsets = [0, 6], sizes = [64, 1], strides = [1, 1]} : vector<64x10xf32> to vector<64x1xf32>
    %180 = vector.shape_cast %179 : vector<64x1xf32> to vector<64x1xf32>
    %181 = vector.broadcast %180 : vector<64x1xf32> to vector<64x10xf32>
    %182 = arith.select %178, %181, %175 : vector<64x10xi1>, vector<64x10xf32>
    %183 = vector.extract_strided_slice %132 {offsets = [0, 7], sizes = [64, 1], strides = [1, 1]} : vector<64x10xi32> to vector<64x1xi32>
    %184 = vector.broadcast %183 : vector<64x1xi32> to vector<64x10xi32>
    %185 = arith.cmpi eq, %21, %184 : vector<64x10xi32>
    %186 = vector.extract_strided_slice %18 {offsets = [0, 7], sizes = [64, 1], strides = [1, 1]} : vector<64x10xf32> to vector<64x1xf32>
    %187 = vector.shape_cast %186 : vector<64x1xf32> to vector<64x1xf32>
    %188 = vector.broadcast %187 : vector<64x1xf32> to vector<64x10xf32>
    %189 = arith.select %185, %188, %182 : vector<64x10xi1>, vector<64x10xf32>
    %190 = vector.extract_strided_slice %132 {offsets = [0, 8], sizes = [64, 1], strides = [1, 1]} : vector<64x10xi32> to vector<64x1xi32>
    %191 = vector.broadcast %190 : vector<64x1xi32> to vector<64x10xi32>
    %192 = arith.cmpi eq, %21, %191 : vector<64x10xi32>
    %193 = vector.extract_strided_slice %18 {offsets = [0, 8], sizes = [64, 1], strides = [1, 1]} : vector<64x10xf32> to vector<64x1xf32>
    %194 = vector.shape_cast %193 : vector<64x1xf32> to vector<64x1xf32>
    %195 = vector.broadcast %194 : vector<64x1xf32> to vector<64x10xf32>
    %196 = arith.select %192, %195, %189 : vector<64x10xi1>, vector<64x10xf32>
    %197 = vector.extract_strided_slice %132 {offsets = [0, 9], sizes = [64, 1], strides = [1, 1]} : vector<64x10xi32> to vector<64x1xi32>
    %198 = vector.broadcast %197 : vector<64x1xi32> to vector<64x10xi32>
    %199 = arith.cmpi eq, %21, %198 : vector<64x10xi32>
    %200 = vector.extract_strided_slice %18 {offsets = [0, 9], sizes = [64, 1], strides = [1, 1]} : vector<64x10xf32> to vector<64x1xf32>
    %201 = vector.shape_cast %200 : vector<64x1xf32> to vector<64x1xf32>
    %202 = vector.broadcast %201 : vector<64x1xf32> to vector<64x10xf32>
    %203 = arith.select %199, %202, %196 : vector<64x10xi1>, vector<64x10xf32>
    %c9_i32_14 = arith.constant 9 : i32
    %204 = vector.broadcast %c9_i32_14 : i32 to vector<64x10xi32>
    %205 = arith.cmpi slt, %21, %204 : vector<64x10xi32>
    %cst_15 = arith.constant 0.000000e+00 : f32
    %206 = vector.broadcast %cst_15 : f32 to vector<64x10xf32>
    %207 = arith.select %205, %19, %206 : vector<64x10xi1>, vector<64x10xf32>
    %cst_16 = arith.constant dense<0.000000e+00> : vector<64xf32>
    %208 = vector.multi_reduction <add>, %207, %cst_16 [1] : vector<64x10xf32> to vector<64xf32>
    %209 = vector.shape_cast %208 : vector<64xf32> to vector<64x1xf32>
    %210 = vector.extract_strided_slice %19 {offsets = [0, 9], sizes = [64, 1], strides = [1, 1]} : vector<64x10xf32> to vector<64x1xf32>
    %cst_17 = arith.constant 2.000000e+01 : f32
    %211 = vector.broadcast %cst_17 : f32 to vector<64x1xf32>
    %212 = arith.cmpf ogt, %210, %211 : vector<64x1xf32>
    %cst_18 = arith.constant 2.000000e+01 : f32
    %213 = vector.broadcast %cst_18 : f32 to vector<64x1xf32>
    %214 = arith.minimumf %210, %213 : vector<64x1xf32>
    %215 = math.exp %214 : vector<64x1xf32>
    %cst_19 = arith.constant 1.000000e+00 : f32
    %216 = vector.broadcast %cst_19 : f32 to vector<64x1xf32>
    %217 = arith.addf %216, %215 : vector<64x1xf32>
    %218 = math.log %217 : vector<64x1xf32>
    %219 = arith.select %212, %210, %218 : vector<64x1xi1>, vector<64x1xf32>
    %220 = arith.subf %219, %209 : vector<64x1xf32>
    %221 = vector.shape_cast %220 : vector<64x1xf32> to vector<64x1xf32>
    %222 = vector.broadcast %221 : vector<64x1xf32> to vector<64x10xf32>
    %223 = arith.select %205, %19, %222 : vector<64x10xi1>, vector<64x10xf32>
    %c0_i32_20 = arith.constant 0 : i32
    %224 = vector.broadcast %c0_i32_20 : i32 to vector<64x10xi32>
    %225 = arith.cmpi sgt, %21, %224 : vector<64x10xi32>
    %cst_21 = arith.constant 0.000000e+00 : f32
    %226 = vector.broadcast %cst_21 : f32 to vector<64x10xf32>
    %227 = arith.select %225, %20, %226 : vector<64x10xi1>, vector<64x10xf32>
    %cst_22 = arith.constant dense<0.000000e+00> : vector<64xf32>
    %228 = vector.multi_reduction <add>, %227, %cst_22 [1] : vector<64x10xf32> to vector<64xf32>
    %229 = vector.shape_cast %228 : vector<64xf32> to vector<64x1xf32>
    %230 = vector.extract_strided_slice %20 {offsets = [0, 0], sizes = [64, 1], strides = [1, 1]} : vector<64x10xf32> to vector<64x1xf32>
    %cst_23 = arith.constant 2.000000e+01 : f32
    %231 = vector.broadcast %cst_23 : f32 to vector<64x1xf32>
    %232 = arith.cmpf ogt, %230, %231 : vector<64x1xf32>
    %cst_24 = arith.constant 2.000000e+01 : f32
    %233 = vector.broadcast %cst_24 : f32 to vector<64x1xf32>
    %234 = arith.minimumf %230, %233 : vector<64x1xf32>
    %235 = math.exp %234 : vector<64x1xf32>
    %cst_25 = arith.constant 1.000000e+00 : f32
    %236 = vector.broadcast %cst_25 : f32 to vector<64x1xf32>
    %237 = arith.addf %236, %235 : vector<64x1xf32>
    %238 = math.log %237 : vector<64x1xf32>
    %239 = arith.select %232, %230, %238 : vector<64x1xi1>, vector<64x1xf32>
    %240 = arith.subf %239, %229 : vector<64x1xf32>
    %241 = vector.shape_cast %240 : vector<64x1xf32> to vector<64x1xf32>
    %242 = vector.broadcast %241 : vector<64x1xf32> to vector<64x10xf32>
    %243 = arith.select %225, %20, %242 : vector<64x10xi1>, vector<64x10xf32>
    %c0_26 = arith.constant 0 : index
    %c0_27 = arith.constant 0 : index
    %244 = vector.load %arg6[%c0_26, %c0_27] : memref<64x10xf32, #tpu.memory_space<vmem>>, vector<64x10xf32>
    tpu.vector_store %arg6[%c0_26, %c0_27], %203 {strides = array<i32>} : memref<64x10xf32, #tpu.memory_space<vmem>>, vector<64x10xf32>,
    %245 = math.absf %223 : vector<64x10xf32>
    %cst_28 = arith.constant 9.99999974E-6 : f32
    %246 = vector.broadcast %cst_28 : f32 to vector<64x10xf32>
    %247 = arith.cmpf olt, %245, %246 : vector<64x10xf32>
    %cst_29 = arith.constant 0.000000e+00 : f32
    %248 = vector.broadcast %cst_29 : f32 to vector<64x10xf32>
    %249 = arith.cmpf ogt, %223, %248 : vector<64x10xf32>
    %cst_30 = arith.constant 0.000000e+00 : f32
    %250 = vector.broadcast %cst_30 : f32 to vector<64x10xf32>
    %251 = arith.cmpf olt, %223, %250 : vector<64x10xf32>
    %cst_31 = arith.constant -1.000000e+00 : f32
    %cst_32 = arith.constant 0.000000e+00 : f32
    %252 = vector.broadcast %cst_31 : f32 to vector<64x10xf32>
    %253 = vector.broadcast %cst_32 : f32 to vector<64x10xf32>
    %254 = arith.select %251, %252, %253 : vector<64x10xi1>, vector<64x10xf32>
    %cst_33 = arith.constant 1.000000e+00 : f32
    %255 = vector.broadcast %cst_33 : f32 to vector<64x10xf32>
    %256 = arith.select %249, %255, %254 : vector<64x10xi1>, vector<64x10xf32>
    %cst_34 = arith.constant 1.000000e-01 : f32
    %257 = vector.broadcast %cst_34 : f32 to vector<64x10xf32>
    %258 = arith.addf %256, %257 : vector<64x10xf32>
    %cst_35 = arith.constant 9.99999974E-6 : f32
    %259 = vector.broadcast %cst_35 : f32 to vector<64x10xf32>
    %260 = arith.mulf %258, %259 : vector<64x10xf32>
    %261 = arith.addf %223, %260 : vector<64x10xf32>
    %262 = arith.select %247, %261, %223 : vector<64x10xi1>, vector<64x10xf32>
    %c0_36 = arith.constant 0 : index
    %c0_37 = arith.constant 0 : index
    %263 = vector.load %arg7[%c0_36, %c0_37] : memref<64x10xf32, #tpu.memory_space<vmem>>, vector<64x10xf32>
    tpu.vector_store %arg7[%c0_36, %c0_37], %262 {strides = array<i32>} : memref<64x10xf32, #tpu.memory_space<vmem>>, vector<64x10xf32>,
    %264 = math.absf %243 : vector<64x10xf32>
    %cst_38 = arith.constant 9.99999974E-6 : f32
    %265 = vector.broadcast %cst_38 : f32 to vector<64x10xf32>
    %266 = arith.cmpf olt, %264, %265 : vector<64x10xf32>
    %cst_39 = arith.constant 0.000000e+00 : f32
    %267 = vector.broadcast %cst_39 : f32 to vector<64x10xf32>
    %268 = arith.cmpf ogt, %243, %267 : vector<64x10xf32>
    %cst_40 = arith.constant 0.000000e+00 : f32
    %269 = vector.broadcast %cst_40 : f32 to vector<64x10xf32>
    %270 = arith.cmpf olt, %243, %269 : vector<64x10xf32>
    %cst_41 = arith.constant -1.000000e+00 : f32
    %cst_42 = arith.constant 0.000000e+00 : f32
    %271 = vector.broadcast %cst_41 : f32 to vector<64x10xf32>
    %272 = vector.broadcast %cst_42 : f32 to vector<64x10xf32>
    %273 = arith.select %270, %271, %272 : vector<64x10xi1>, vector<64x10xf32>
    %cst_43 = arith.constant 1.000000e+00 : f32
    %274 = vector.broadcast %cst_43 : f32 to vector<64x10xf32>
    %275 = arith.select %268, %274, %273 : vector<64x10xi1>, vector<64x10xf32>
    %cst_44 = arith.constant 1.000000e-01 : f32
    %276 = vector.broadcast %cst_44 : f32 to vector<64x10xf32>
    %277 = arith.addf %275, %276 : vector<64x10xf32>
    %cst_45 = arith.constant 9.99999974E-6 : f32
    %278 = vector.broadcast %cst_45 : f32 to vector<64x10xf32>
    %279 = arith.mulf %277, %278 : vector<64x10xf32>
    %280 = arith.addf %243, %279 : vector<64x10xf32>
    %281 = arith.select %266, %280, %243 : vector<64x10xi1>, vector<64x10xf32>
    %c0_46 = arith.constant 0 : index
    %c0_47 = arith.constant 0 : index
    %282 = vector.load %arg8[%c0_46, %c0_47] : memref<64x10xf32, #tpu.memory_space<vmem>>, vector<64x10xf32>
    tpu.vector_store %arg8[%c0_46, %c0_47], %281 {strides = array<i32>} : memref<64x10xf32, #tpu.memory_space<vmem>>, vector<64x10xf32>,
    return
  }
  func.func @transform_0(%arg0: i32) -> (i32, i32) {
    %c0_i32 = arith.constant 0 : i32
    %c0_i32_0 = arith.constant 0 : i32
    return %arg0, %c0_i32 : i32, i32
  }
  func.func @transform_1(%arg0: i32) -> (i32, i32) {
    %c0_i32 = arith.constant 0 : i32
    %c0_i32_0 = arith.constant 0 : i32
    %c0_i32_1 = arith.constant 0 : i32
    return %c0_i32, %c0_i32_0 : i32, i32
  }
  func.func @transform_2(%arg0: i32) -> (i32, i32) {
    %c0_i32 = arith.constant 0 : i32
    %c0_i32_0 = arith.constant 0 : i32
    %c0_i32_1 = arith.constant 0 : i32
    return %c0_i32, %c0_i32_0 : i32, i32
  }
  func.func @transform_3(%arg0: i32) -> (i32, i32) {
    %c0_i32 = arith.constant 0 : i32
    %c0_i32_0 = arith.constant 0 : i32
    %c0_i32_1 = arith.constant 0 : i32
    return %c0_i32, %c0_i32_0 : i32, i32
  }
  func.func @transform_4(%arg0: i32) -> (i32, i32) {
    %c0_i32 = arith.constant 0 : i32
    %c0_i32_0 = arith.constant 0 : i32
    %c0_i32_1 = arith.constant 0 : i32
    return %c0_i32, %c0_i32_0 : i32, i32
  }
  func.func @transform_5(%arg0: i32) -> (i32, i32) {
    %c0_i32 = arith.constant 0 : i32
    %c0_i32_0 = arith.constant 0 : i32
    return %arg0, %c0_i32 : i32, i32
  }
  func.func @transform_6(%arg0: i32) -> (i32, i32) {
    %c0_i32 = arith.constant 0 : i32
    %c0_i32_0 = arith.constant 0 : i32
    return %arg0, %c0_i32 : i32, i32
  }
  func.func @transform_7(%arg0: i32) -> (i32, i32) {
    %c0_i32 = arith.constant 0 : i32
    %c0_i32_0 = arith.constant 0 : i32
    return %arg0, %c0_i32 : i32, i32
  }
}

</mosaic_0001>

<bundles_post_ra>
// kernel: tpu_custom_call.1
= control target key start
LH: loop header
LB: loop body
LE: loop exit
PB: predicated region body
PF: predicated region fallthrough
CT: control target
= control target key end

     0   :  { %s2897_s24 = smov 0   ;;  %s4882_s0 = inlined_call_operand.vmem [shape: f32[128,8], index: 0, kind: input, shape index: {}]   ;;  %s4883_s1 = inlined_call_operand.vmem [shape: f32[8,32], index: 1, kind: input, shape index: {}]   ;;  %s4884_s2 = inlined_call_operand.vmem [shape: f32[1,32], index: 2, kind: input, shape index: {}]   ;;  %s4885_s3 = inlined_call_operand.vmem [shape: f32[32,30], index: 3, kind: input, shape index: {}]   ;;  %s4886_s4 = inlined_call_operand.vmem [shape: f32[1,30], index: 4, kind: input, shape index: {}]   ;;  %s4887_s5 = inlined_call_operand.vmem [shape: f32[128,10], index: 5, kind: output, shape index: {0}]   ;;  %s4888_s6 = inlined_call_operand.vmem [shape: f32[128,10], index: 6, kind: output, shape index: {1}]   ;;  %s4889_s7 = inlined_call_operand.vmem [shape: f32[128,10], index: 7, kind: output, shape index: {2}]  }
   0x1 LB: > { %s2494_s25 = sadd.s32 4294967295, %s2840_s24   ;;  %p2498_p0 = scmp.ge.s32.totalorder %s2840_s24, 1  ;;  %s2840_s24 = sphi %s2897_s24, %s18_s24  }
   0x2   : > { %p243_p1 = scmp.lt.s32.totalorder %s2840_s24, 3 }
   0x4   : > { %p244_p2 = pnand %p2498_p0, %p243_p1 }
   0x6   : > { %247 = sbr.rel (%p244_p2) target bundleno = 1218 (0x4c2), region = 40 }
   0xd   : > { %v317_v0 = vld [vmem:[%s4883_s1] sm:$0xff]  ;;  %s2499_s28 = sshll.u32 %s2494_s25, 3  ;;  %vm325_vm0 = vcmask 64512   ;;  %v544_v10 = vld [vmem:[%s4885_s3 + $0x8] sm:$0xff]  ;;  %v545_v12 = vld [vmem:[%s4885_s3 + $0x10] sm:$0xff]  ;;  %vm554_vm9 = vcmask 261120  }
   0xe   : > { %2548 = vmatprep.subr.mxu0 %v317_v0  ;;  %p286_p3 = scmp.lt.s32.totalorder %s2499_s28, 15  ;;  %v543_v9 = vld [vmem:[%s4885_s3] sm:$0xff]  ;;  %v546_v13 = vld [vmem:[%s4885_s3 + $0x18] sm:$0xff]  ;;  %s2852_s22 = smov 118  }
   0xf   : > { %2549 = vmatpush3.msra.mxu0 %v317_v0  ;;  %v2582_v11 = vpack.c.bf16 %v544_v10, %v543_v9  ;;  %v2586_v14 = vpack.c.bf16 %v546_v13, %v545_v12  ;;  %v2507_v15 = vld [vmem:[%s4884_s2] ss:$0 sm:$0xff]  ;;  %s2853_s23 = smov 108  }
  0x10   : > { %s5405_s28 = smov (!%p286_p3, %s2499_s28), 15 }
  0x11   : > { %s2908_s29 = sshll.u32 %s5405_s28, 3  ;;  %2583 = vmatprep.subr.bf16.mxu1 %v2582_v11 }
  0x12   : > { %s289_s9 = scalar_lea.vmem %s4882_s0, %s2908_s29  ;;  %2585 = vmatpush3.bf16.msra.mxu1 %v2582_v11  ;;  %s4464_s27 = scalar_lea.vmem %s4887_s5, %s2908_s29 }
  0x13   : > { %v309_v1 = vld [vmem:[%s289_s9] sm:$0xff]  ;;  %v310_v2 = vld [vmem:[%s289_s9 + $0x8] sm:$0xff]  ;;  %v311_v3 = vld [vmem:[%s289_s9 + $0x10] sm:$0xff]  ;;  %2587 = vmatprep.subr.bf16.mxu1 %v2586_v14  ;;  %s4737_s8 = scalar_lea.vmem %s4888_s6, %s2908_s29  ;;  %s4755_s11 = scalar_lea.vmem %s4889_s7, %s2908_s29 }
  0x14   : > { %2550 = vmatprep.mubr.msk.f32.mxu0 %vm325_vm0, %v309_v1  ;;  %v312_v4 = vld [vmem:[%s289_s9 + $0x18] sm:$0xff]  ;;  %v313_v5 = vld [vmem:[%s289_s9 + $0x20] sm:$0xff]  ;;  %v314_v6 = vld [vmem:[%s289_s9 + $0x28] sm:$0xff] }
  0x15   : > { %2551 = vmatmul.mubr.msk.f32.vlgmr.msra.gmra.mrb[0].mxu0 %vm325_vm0, %v310_v2  ;;  %v315_v7 = vld [vmem:[%s289_s9 + $0x30] sm:$0xff]  ;;  %v316_v8 = vld [vmem:[%s289_s9 + $0x38] sm:$0xff] }
  0x16   : > { %2553 = vmatprep.mubr.msk.f32.mxu0 %vm325_vm0, %v311_v3  ;;  %2589 = vmatpush3.bf16.msra.mxu1 %v2586_v14 }
  0x19   : > { %2554 = vmatmul.mubr.msk.f32.gmra.mrb[2].mxu0 %vm325_vm0, %v312_v4 }
  0x1a   : > { %2556 = vmatprep.mubr.msk.f32.mxu0 %vm325_vm0, %v313_v5 }
  0x1d   : > { %2557 = vmatmul.mubr.msk.f32.gmra.mrb[4].mxu0 %vm325_vm0, %v314_v6 }
  0x1e   : > { %2559 = vmatprep.mubr.msk.f32.mxu0 %vm325_vm0, %v315_v7 }
  0x21   : > { %2560 = vmatmul.mubr.msk.f32.gmra.mrb[6].mxu0 %vm325_vm0, %v316_v8 }
  0xe8   : > { %v2552_v16 = vpop.f32.mrb[0].mxu0 }
  0xe9   : > { %v422_v17 = vadd.f32 %v2552_v16, %v2507_v15  ;;  %v416_v18 = vpop.f32.mrb[1].mxu0 }
  0xea   : > { %v417_v19 = vadd.f32 %v2507_v15, %v416_v18 }
  0xeb   : > { %v456_v20 = vmul.f32 %v422_v17, %v422_v17 }
  0xec   : > { %v455_v21 = vmul.f32 %v417_v19, %v417_v19  ;;  %v2555_v22 = vpop.f32.mrb[2].mxu0 }
  0xed   : > { %v464_v23 = vadd.f32 2.25, %v456_v20  ;;  %v2937_v24 = vadd.f32 %v2555_v22, %v2507_v15  ;;  %v426_v25 = vpop.f32.mrb[3].mxu0 }
  0xee   : > { %v463_v26 = vadd.f32 2.25, %v455_v21  ;;  %v2939_v27 = vadd.f32 %v2507_v15, %v426_v25 }
  0xef   : > { %2786 = vrsqrt.f32 %v464_v23  ;;  %v458_v28 = vmul.f32 %v2937_v24, %v2937_v24  ;;  %vm480_vm1 = vcmp.eq.f32.partialorder %v464_v23, inf  ;;  %vm482_vm2 = vcmp.eq.f32.partialorder %v464_v23, 0.0 }
  0xf0   : > { %v457_v29 = vmul.f32 %v2939_v27, %v2939_v27  ;;  %2788 = vrsqrt.f32 %v463_v26  ;;  %v2558_v30 = vpop.f32.mrb[4].mxu0  ;;  %v483_v49 = vand.u32 2147483648, %v464_v23  ;;  %vm473_vm3 = vcmp.eq.f32.partialorder %v463_v26, inf }
  0xf1   : > { %v2945_v31 = vadd.f32 %v2558_v30, %v2507_v15  ;;  %v436_v32 = vpop.f32.mrb[5].mxu0  ;;  %v466_v33 = vadd.f32 2.25, %v458_v28  ;;  %vm475_vm4 = vcmp.eq.f32.partialorder %v463_v26, 0.0  ;;  %v476_v52 = vand.u32 2147483648, %v463_v26 }
  0xf2   : > { %v465_v34 = vadd.f32 2.25, %v457_v29  ;;  %v2947_v35 = vadd.f32 %v2507_v15, %v436_v32 }
  0xf3   : > { %v460_v36 = vmul.f32 %v2945_v31, %v2945_v31  ;;  %2790 = vrsqrt.f32 %v466_v33  ;;  %vm494_vm5 = vcmp.eq.f32.partialorder %v466_v33, inf  ;;  %vm496_vm6 = vcmp.eq.f32.partialorder %v466_v33, 0.0 }
  0xf4   : > { %v2561_v37 = vpop.f32.mrb[6].mxu0  ;;  %2792 = vrsqrt.f32 %v465_v34  ;;  %v459_v40 = vmul.f32 %v2947_v35, %v2947_v35  ;;  %v497_v59 = vand.u32 2147483648, %v466_v33  ;;  %vm487_vm7 = vcmp.eq.f32.partialorder %v465_v34, inf }
  0xf5   : > { %v446_v38 = vpop.f32.mrb[7].mxu0  ;;  %v2951_v39 = vadd.f32 2.25, %v460_v36  ;;  %v2955_v41 = vadd.f32 %v2561_v37, %v2507_v15  ;;  %v490_v63 = vand.u32 2147483648, %v465_v34  ;;  %vm489_vm8 = vcmp.eq.f32.partialorder %v465_v34, 0.0 }
  0xf6   : > { %v2957_v42 = vadd.f32 %v2507_v15, %v446_v38  ;;  %v2960_v44 = vadd.f32 2.25, %v459_v40  ;;  %v4910_v40 = vmov 1  }
  0xf7   : > { %2794 = vrsqrt.f32 %v2951_v39  ;;  %v462_v45 = vmul.f32 %v2955_v41, %v2955_v41  ;;  %vm508_vm10 = vcmp.eq.f32.partialorder %v2951_v39, inf  ;;  %v511_v8 = vand.u32 2147483648, %v2951_v39  ;;  %2614 = vset.pattern.permute.xlu1 %v4910_v40 }
  0xf8   : > { %v461_v46 = vmul.f32 %v2957_v42, %v2957_v42  ;;  %2796 = vrsqrt.f32 %v2960_v44  ;;  %vm510_vm11 = vcmp.eq.f32.partialorder %v2951_v39, 0.0  ;;  %vm501_vm12 = vcmp.eq.f32.partialorder %v2960_v44, inf }
  0xf9   : > { %v2787_v43 = vpop.eup %2786  ;;  %v2967_v53 = vadd.f32 2.25, %v462_v45  ;;  %v504_v16 = vand.u32 2147483648, %v2960_v44  ;;  %vm503_vm13 = vcmp.eq.f32.partialorder %v2960_v44, 0.0 }
  0xfa   : > { %v2789_v47 = vpop.eup %2788  ;;  %v479_v48 = vmul.f32 %v2787_v43, %v464_v23  ;;  %v2969_v54 = vadd.f32 2.25, %v461_v46  ;;  %v4906_v43 = vmov 0  }
  0xfb   : > { %v472_v50 = vmul.f32 %v2789_v47, %v463_v26  ;;  %2798 = vrsqrt.f32 %v2967_v53  ;;  %vm522_vm14 = vcmp.eq.f32.partialorder %v2967_v53, inf  ;;  %vm524_vm15 = vcmp.eq.f32.partialorder %v2967_v53, 0.0  ;;  %2613 = vset.pattern.permute.xlu0 %v4906_v43 }
  0xfc   : > { %v481_v51 = vsel %vm480_vm1, %v464_v23, %v479_v48  ;;  %2800 = vrsqrt.f32 %v2969_v54  ;;  %v525_v23 = vand.u32 2147483648, %v2967_v53  ;;  %vm515_vm0 = vcmp.eq.f32.partialorder %v2969_v54, inf }
  0xfd   : > { %v484_v55 = vsel %vm482_vm2, %v483_v49, %v481_v51  ;;  %v474_v56 = vsel %vm473_vm3, %v463_v26, %v472_v50  ;;  %v2791_v57 = vpop.eup %2790  ;;  %v518_v28 = vand.u32 2147483648, %v2969_v54  ;;  %vm517_vm1 = vcmp.eq.f32.partialorder %v2969_v54, 0.0 }
  0xfe   : > { %v528_v58 = vadd.f32 %v484_v55, %v422_v17  ;;  %v477_v60 = vsel %vm475_vm4, %v476_v52, %v474_v56  ;;  %v2793_v61 = vpop.eup %2792  ;;  %v493_v62 = vmul.f32 %v2791_v57, %v466_v33  ;;  %v4902_v49 = vmov 3  }
  0xff   : > { %v527_v0 = vadd.f32 %v477_v60, %v417_v19  ;;  %v486_v1 = vmul.f32 %v2793_v61, %v465_v34  ;;  %v4896_v50 = vmov 2   ;;  %v4900_v52 = vmov 5  }
 0x100   : > { %v495_v2 = vsel %vm494_vm5, %v466_v33, %v493_v62  ;;  %v536_v5 = vmul.f32 0.5, %v528_v58  ;;  %v4898_v58 = vmov 7   ;;  %vm4960_vm3 = vcmask 80896  }
 0x101   : > { %v535_v3 = vmul.f32 0.5, %v527_v0  ;;  %v2795_v4 = vpop.eup %2794  ;;  %v498_v6 = vsel %vm496_vm6, %v497_v59, %v495_v2  ;;  %v488_v7 = vsel %vm487_vm7, %v465_v34, %v486_v1  ;;  %v4892_v59 = vmov 6  }
 0x102   : > { %v530_v9 = vadd.f32 %v498_v6, %v2937_v24  ;;  %v491_v10 = vsel %vm489_vm8, %v490_v63, %v488_v7  ;;  %v507_v11 = vmul.f32 %v2795_v4, %v2951_v39  ;;  %v2797_v13 = vpop.eup %2796  ;;  %v4904_v63 = vmov 9  }
 0x103   : > { %2570 = vmatprep.mubr.msk.f32.mxu1 %vm554_vm9, %v535_v3  ;;  %v529_v12 = vadd.f32 %v491_v10, %v2939_v27  ;;  %v500_v19 = vmul.f32 %v2797_v13, %v2960_v44  ;;  %v4890_v0 = vmov 8  }
 0x104   : > { %2571 = vmatmul.mubr.msk.f32.vlgmr.msra.gmra.mrb[0].mxu1 %vm554_vm9, %v536_v5  ;;  %v538_v14 = vmul.f32 0.5, %v530_v9  ;;  %v509_v15 = vsel %vm508_vm10, %v2951_v39, %v507_v11 }
 0x105   : > { %v537_v17 = vmul.f32 0.5, %v529_v12  ;;  %v512_v18 = vsel %vm510_vm11, %v511_v8, %v509_v15  ;;  %v2799_v21 = vpop.eup %2798  ;;  %v502_v22 = vsel %vm501_vm12, %v2960_v44, %v500_v19 }
 0x106   : > { %v532_v20 = vadd.f32 %v512_v18, %v2945_v31  ;;  %v505_v24 = vsel %vm503_vm13, %v504_v16, %v502_v22  ;;  %v521_v25 = vmul.f32 %v2799_v21, %v2967_v53  ;;  %v2801_v26 = vpop.eup %2800 }
 0x107   : > { %2573 = vmatprep.mubr.msk.f32.mxu1 %vm554_vm9, %v537_v17  ;;  %v531_v27 = vadd.f32 %v505_v24, %v2947_v35  ;;  %v514_v31 = vmul.f32 %v2801_v26, %v2969_v54 }
 0x108   : > { %2574 = vmatmul.mubr.msk.f32.gmra.mrb[2].mxu1 %vm554_vm9, %v538_v14  ;;  %v540_v29 = vmul.f32 0.5, %v532_v20  ;;  %v523_v30 = vsel %vm522_vm14, %v2967_v53, %v521_v25  ;;  %v4894_v53 = vmov 4  }
 0x109   : > { %v539_v32 = vmul.f32 0.5, %v531_v27  ;;  %v526_v33 = vsel %vm524_vm15, %v525_v23, %v523_v30  ;;  %v516_v36 = vsel %vm515_vm0, %v2969_v54, %v514_v31 }
 0x10a   : > { %v534_v34 = vadd.f32 %v526_v33, %v2955_v41  ;;  %v519_v35 = vsel %vm517_vm1, %v518_v28, %v516_v36  ;;  %v3014_v41 = vld [vmem:[%s4886_s4] ss:$0 sm:$0xff] }
 0x10b   : > { %2576 = vmatprep.mubr.msk.f32.mxu1 %vm554_vm9, %v539_v32  ;;  %v533_v37 = vadd.f32 %v519_v35, %v2957_v42 }
 0x10c   : > { %2577 = vmatmul.mubr.msk.f32.gmra.mrb[4].mxu1 %vm554_vm9, %v540_v29  ;;  %v542_v38 = vmul.f32 0.5, %v534_v34 }
 0x10d   : > { %v541_v39 = vmul.f32 0.5, %v533_v37 }
 0x10f   : > { %2579 = vmatprep.mubr.msk.f32.mxu1 %vm554_vm9, %v541_v39 }
 0x110   : > { %2580 = vmatmul.mubr.msk.f32.gmra.mrb[6].mxu1 %vm554_vm9, %v542_v38 }
 0x1d7   : > { %v2572_v44 = vpop.f32.mrb[0].mxu1 }
 0x1d8   : > { %v3017_v42 = vadd.f32 %v2572_v44, %v3014_v41  ;;  %v645_v45 = vpop.f32.mrb[1].mxu1 }
 0x1d9   : > { %v3053_v1 = vadd.f32 %v3014_v41, %v645_v45 }
 0x1da   : > { %772 = vperm.xlu1 %2614, %v3017_v42   ;;  %693 = vperm.xlu0 %2613, %v3017_v42  }
 0x1db   : > { %v2575_v46 = vpop.f32.mrb[2].mxu1 }
 0x1dc   : > { %v655_v47 = vpop.f32.mrb[3].mxu1  ;;  %v3081_v2 = vadd.f32 %v2575_v46, %v3014_v41  ;;  %v684_v46 = vlaneseq }
 0x1dd   : > { %v3022_v48 = vadd.f32 %v3014_v41, %v655_v47 }
 0x1de   : > { %2616 = vset.pattern.permute.xlu1 %v4902_v49  ;;  %2615 = vset.pattern.permute.xlu0 %v4896_v50 }
 0x1df   : > { %934 = vperm.xlu1 %2616, %v3017_v42   ;;  %853 = vperm.xlu0 %2615, %v3017_v42   ;;  %v2578_v51 = vpop.f32.mrb[4].mxu1 }
 0x1e0   : > { %v3031_v54 = vadd.f32 %v2578_v51, %v3014_v41  ;;  %v665_v55 = vpop.f32.mrb[5].mxu1 }
 0x1e1   : > { %v3036_v56 = vadd.f32 %v3014_v41, %v665_v55  ;;  %v3305_v55 = vand.u32 127, %v684_v46 }
 0x1e3   : > { %2618 = vset.pattern.permute.xlu1 %v4900_v52  ;;  %2617 = vset.pattern.permute.xlu0 %v4894_v53  ;;  %5023 = vst [vmem:[#allocation2_spill] sm:$0xff] %v3036_v56  ;;  %v2581_v57 = vpop.f32.mrb[6].mxu1  ;;  %vm4952_vm2 = vcmp.lt.s32.totalorder %v3305_v55, 9  ;;  %vm4953_vm4 = vcmp.gt.s32.totalorder %v3305_v55, 0  ;;  %vm4949_vm5 = vcmp.gt.s32.totalorder %v3305_v55, 1  ;;  %vm4948_vm10 = vcmp.gt.s32.totalorder %v3305_v55, 2 }
 0x1e4   : > { %1096 = vperm.xlu1 %2618, %v3017_v42   ;;  %1015 = vperm.xlu0 %2617, %v3017_v42   ;;  %v3041_v60 = vadd.f32 %v2581_v57, %v3014_v41  ;;  %v675_v61 = vpop.f32.mrb[7].mxu1 }
 0x1e5   : > { %v3046_v62 = vadd.f32 %v3014_v41, %v675_v61 }
 0x1e6   : > { %5024 = vst [vmem:[#allocation3_spill] sm:$0xff] %v3041_v60 }
 0x1e7   : > { %5025 = vst [vmem:[#allocation4_spill] sm:$0xff] %v3046_v62 }
 0x1e8   : > { %2620 = vset.pattern.permute.xlu1 %v4898_v58  ;;  %2619 = vset.pattern.permute.xlu0 %v4892_v59 }
 0x1e9   : > { %1258 = vperm.xlu1 %2620, %v3017_v42   ;;  %1177 = vperm.xlu0 %2619, %v3017_v42  }
 0x1ed   : > { %2622 = vset.pattern.permute.xlu1 %v4904_v63  ;;  %2621 = vset.pattern.permute.xlu0 %v4890_v0 }
 0x1ee   : > { %1420 = vperm.xlu1 %2622, %v3017_v42   ;;  %1339 = vperm.xlu0 %2621, %v3017_v42  }
 0x1f2   : > { %2625 = vset.pattern.permute.xlu1 %v4896_v50  ;;  %1899 = vrot.lane.b32.xlu0 %v3017_v42, %s2852_s22 }
 0x1f3   : > { %849 = vperm.xlu1 %2625, %v3053_v1   ;;  %2623 = vset.pattern.permute.xlu0 %v4906_v43 }
 0x1f6   : > { %2076 = vrot.lane.b32.xlu0 %v3017_v42, %s2853_s23 }
 0x1f7   : > { %2627 = vset.pattern.permute.xlu1 %v4894_v53 }
 0x1f8   : > { %1011 = vperm.xlu1 %2627, %v3053_v1  }
 0x1fa   : > { %688 = vperm.xlu0 %2623, %v3053_v1  }
 0x1fc   : > { %2629 = vset.pattern.permute.xlu1 %v4892_v59 }
 0x1fd   : > { %1173 = vperm.xlu1 %2629, %v3053_v1  }
 0x1fe   : > { %2624 = vset.pattern.permute.xlu0 %v4910_v40 }
 0x1ff   : > { %768 = vperm.xlu0 %2624, %v3053_v1  }
 0x201   : > { %2631 = vset.pattern.permute.xlu1 %v4890_v0 }
 0x202   : > { %1335 = vperm.xlu1 %2631, %v3053_v1  }
 0x203   : > { %2626 = vset.pattern.permute.xlu0 %v4902_v49 }
 0x204   : > { %930 = vperm.xlu0 %2626, %v3053_v1  }
 0x206   : > { %1897 = vrot.lane.b32.xlu1 %v3053_v1, %s2852_s22 }
 0x207   : > { %2633 = vset.pattern.permute.xlu1 %v4906_v43 }
 0x208   : > { %2628 = vset.pattern.permute.xlu0 %v4900_v52 }
 0x209   : > { %1092 = vperm.xlu0 %2628, %v3053_v1  }
 0x20a   : > { %2074 = vrot.lane.b32.xlu1 %v3053_v1, %s2853_s23 }
 0x20d   : > { %2630 = vset.pattern.permute.xlu0 %v4898_v58 }
 0x20e   : > { %703 = vperm.xlu1 %2633, %v3081_v2   ;;  %1254 = vperm.xlu0 %2630, %v3053_v1  }
 0x212   : > { %2635 = vset.pattern.permute.xlu1 %v4896_v50  ;;  %2632 = vset.pattern.permute.xlu0 %v4904_v63 }
 0x213   : > { %861 = vperm.xlu1 %2635, %v3081_v2   ;;  %1416 = vperm.xlu0 %2632, %v3053_v1  }
 0x217   : > { %2637 = vset.pattern.permute.xlu1 %v4894_v53  ;;  %2634 = vset.pattern.permute.xlu0 %v4910_v40 }
 0x218   : > { %1023 = vperm.xlu1 %2637, %v3081_v2   ;;  %780 = vperm.xlu0 %2634, %v3081_v2  }
 0x21c   : > { %2639 = vset.pattern.permute.xlu1 %v4892_v59  ;;  %2636 = vset.pattern.permute.xlu0 %v4902_v49 }
 0x21d   : > { %1185 = vperm.xlu1 %2639, %v3081_v2   ;;  %942 = vperm.xlu0 %2636, %v3081_v2  }
 0x221   : > { %2641 = vset.pattern.permute.xlu1 %v4890_v0  ;;  %2638 = vset.pattern.permute.xlu0 %v4900_v52 }
 0x222   : > { %1347 = vperm.xlu1 %2641, %v3081_v2   ;;  %1104 = vperm.xlu0 %2638, %v3081_v2  }
 0x226   : > { %2643 = vset.pattern.permute.xlu1 %v4906_v43  ;;  %2640 = vset.pattern.permute.xlu0 %v4898_v58 }
 0x227   : > { %698 = vperm.xlu1 %2643, %v3022_v48   ;;  %1266 = vperm.xlu0 %2640, %v3081_v2  }
 0x22b   : > { %2644 = vset.pattern.permute.xlu1 %v4910_v40  ;;  %2642 = vset.pattern.permute.xlu0 %v4904_v63 }
 0x22c   : > { %776 = vperm.xlu1 %2644, %v3022_v48   ;;  %1428 = vperm.xlu0 %2642, %v3081_v2  }
 0x230   : > { %2645 = vset.pattern.permute.xlu1 %v4896_v50  ;;  %1903 = vrot.lane.b32.xlu0 %v3081_v2, %s2852_s22 }
 0x231   : > { %857 = vperm.xlu1 %2645, %v3022_v48   ;;  %2654 = vset.pattern.permute.xlu0 %v4910_v40 }
 0x234   : > { %2080 = vrot.lane.b32.xlu0 %v3081_v2, %s2853_s23 }
 0x235   : > { %2646 = vset.pattern.permute.xlu1 %v4902_v49 }
 0x236   : > { %938 = vperm.xlu1 %2646, %v3022_v48  }
 0x238   : > { %788 = vperm.xlu0 %2654, %v3031_v54  }
 0x23a   : > { %2647 = vset.pattern.permute.xlu1 %v4894_v53 }
 0x23b   : > { %1019 = vperm.xlu1 %2647, %v3022_v48  }
 0x23c   : > { %2656 = vset.pattern.permute.xlu0 %v4902_v49 }
 0x23d   : > { %950 = vperm.xlu0 %2656, %v3031_v54  }
 0x23f   : > { %2648 = vset.pattern.permute.xlu1 %v4900_v52 }
 0x240   : > { %1100 = vperm.xlu1 %2648, %v3022_v48  }
 0x241   : > { %2658 = vset.pattern.permute.xlu0 %v4900_v52 }
 0x242   : > { %1112 = vperm.xlu0 %2658, %v3031_v54  }
 0x244   : > { %2649 = vset.pattern.permute.xlu1 %v4892_v59 }
 0x245   : > { %1181 = vperm.xlu1 %2649, %v3022_v48  }
 0x246   : > { %2660 = vset.pattern.permute.xlu0 %v4898_v58 }
 0x247   : > { %1274 = vperm.xlu0 %2660, %v3031_v54  }
 0x249   : > { %2650 = vset.pattern.permute.xlu1 %v4898_v58 }
 0x24a   : > { %1262 = vperm.xlu1 %2650, %v3022_v48  }
 0x24b   : > { %2662 = vset.pattern.permute.xlu0 %v4904_v63 }
 0x24c   : > { %1436 = vperm.xlu0 %2662, %v3031_v54  }
 0x24e   : > { %2651 = vset.pattern.permute.xlu1 %v4890_v0 }
 0x24f   : > { %1343 = vperm.xlu1 %2651, %v3022_v48  }
 0x250   : > { %1907 = vrot.lane.b32.xlu0 %v3031_v54, %s2852_s22 }
 0x251   : > { %2663 = vset.pattern.permute.xlu0 %v4906_v43 }
 0x253   : > { %2652 = vset.pattern.permute.xlu1 %v4904_v63 }
 0x254   : > { %1424 = vperm.xlu1 %2652, %v3022_v48   ;;  %2084 = vrot.lane.b32.xlu0 %v3031_v54, %s2853_s23 }
 0x258   : > { %1901 = vrot.lane.b32.xlu1 %v3022_v48, %s2852_s22  ;;  %708 = vperm.xlu0 %2663, %v3036_v56  }
 0x259   : > { %v3148_v3 = vpop.permute.xlu1 %772  ;;  %v3150_v4 = vpop.permute.xlu0 %693  ;;  %2653 = vset.pattern.permute.xlu1 %v4906_v43 }
 0x25a   : > { %5026 = vst [vmem:[#allocation5_spill] sm:$0xff] %v3148_v3  ;;  %5027 = vst [vmem:[#allocation6_spill] sm:$0xff] %v3150_v4  ;;  %vm808_vm6 = vcmp.eq.f32.partialorder %v3148_v3, %v3017_v42  ;;  %vm735_vm7 = vcmp.eq.f32.partialorder %v3150_v4, %v3017_v42  ;;  %vm800_vm8 = vcmp.lt.f32.partialorder %v3148_v3, %v3017_v42 }
 0x25b   : > { %vm817_vm9 = vmand %vm808_vm6, %vm4949_vm5  ;;  %vm727_vm12 = vcmp.lt.f32.partialorder %v3150_v4, %v3017_v42  ;;  %vm4942_vm6 = vcmp.gt.s32.totalorder %v3305_v55, 3 }
 0x25c   : > { %2078 = vrot.lane.b32.xlu1 %v3022_v48, %s2853_s23  ;;  %2665 = vset.pattern.permute.xlu0 %v4896_v50  ;;  %vm744_vm13 = vmand %vm735_vm7, %vm4953_vm4 }
 0x25d   : > { %865 = vperm.xlu0 %2665, %v3036_v56   ;;  %vm825_vm14 = vmor %vm800_vm8, %vm817_vm9  ;;  %vm4939_vm9 = vcmp.gt.s32.totalorder %v3305_v55, 4 }
 0x25e   : > { %v3157_v5 = vpop.permute.xlu1 %934  ;;  %v3159_v6 = vpop.permute.xlu0 %853  ;;  %vm752_vm1 = vmor %vm727_vm12, %vm744_vm13 }
 0x25f   : > { %5028 = vst [vmem:[#allocation7_spill] sm:$0xff] %v3157_v5  ;;  %5029 = vst [vmem:[#allocation8_spill] sm:$0xff] %v3159_v6  ;;  %vm889_vm11 = vcmp.eq.f32.partialorder %v3159_v6, %v3017_v42  ;;  %vm881_vm15 = vcmp.lt.f32.partialorder %v3159_v6, %v3017_v42  ;;  %vm970_vm7 = vcmp.eq.f32.partialorder %v3157_v5, %v3017_v42  ;;  %v5085_v6 = vmov 0  }
 0x260   : > { %713 = vperm.xlu1 %2653, %v3031_v54   ;;  %vm898_vm0 = vmand %vm889_vm11, %vm4948_vm10  ;;  %v833_v3 = vsel %vm825_vm14, 1, %v5085_v6  ;;  %v760_v4 = vsel %vm752_vm1, 1, %v5085_v6  ;;  %vm962_vm12 = vcmp.lt.f32.partialorder %v3157_v5, %v3017_v42  ;;  %vm4941_vm1 = vcmp.gt.s32.totalorder %v3305_v55, 5 }
 0x261   : > { %2667 = vset.pattern.permute.xlu0 %v4894_v53  ;;  %vm906_vm8 = vmor %vm881_vm15, %vm898_vm0 }
 0x262   : > { %1027 = vperm.xlu0 %2667, %v3036_v56   ;;  %vm979_vm13 = vmand %vm970_vm7, %vm4942_vm6 }
 0x263   : > { %v3164_v7 = vpop.permute.xlu1 %1096  ;;  %v3166_v8 = vpop.permute.xlu0 %1015  ;;  %vm987_vm0 = vmor %vm962_vm12, %vm979_vm13  ;;  %vm4943_vm13 = vcmp.gt.s32.totalorder %v3305_v55, 6 }
 0x264   : > { %5030 = vst [vmem:[#allocation9_spill] sm:$0xff] %v3166_v8  ;;  %2655 = vset.pattern.permute.xlu1 %v4896_v50  ;;  %vm1051_vm11 = vcmp.eq.f32.partialorder %v3166_v8, %v3017_v42  ;;  %vm1043_vm14 = vcmp.lt.f32.partialorder %v3166_v8, %v3017_v42  ;;  %vm1132_vm7 = vcmp.eq.f32.partialorder %v3164_v7, %v3017_v42  ;;  %v995_v8 = vsel %vm987_vm0, 1, %v5085_v6 }
 0x265   : > { %869 = vperm.xlu1 %2655, %v3031_v54   ;;  %vm1060_vm15 = vmand %vm1051_vm11, %vm4939_vm9  ;;  %vm1124_vm11 = vcmp.lt.f32.partialorder %v3164_v7, %v3017_v42 }
 0x266   : > { %2669 = vset.pattern.permute.xlu0 %v4892_v59  ;;  %vm1141_vm12 = vmand %vm1132_vm7, %vm4941_vm1 }
 0x267   : > { %1189 = vperm.xlu0 %2669, %v3036_v56   ;;  %vm3476_vm0 = vmor %vm1124_vm11, %vm1141_vm12 }
 0x268   : > { %v3172_v9 = vpop.permute.xlu1 %1258  ;;  %v3174_v10 = vpop.permute.xlu0 %1177 }
 0x269   : > { %5031 = vst [vmem:[#allocation10_spill] sm:$0xff] %v3172_v9  ;;  %5032 = vst [vmem:[#allocation11_spill] sm:$0xff] %v3174_v10  ;;  %2657 = vset.pattern.permute.xlu1 %v4894_v53  ;;  %vm1213_vm9 = vcmp.eq.f32.partialorder %v3174_v10, %v3017_v42  ;;  %vm1205_vm7 = vcmp.lt.f32.partialorder %v3174_v10, %v3017_v42 }
 0x26a   : > { %1031 = vperm.xlu1 %2657, %v3031_v54   ;;  %vm1222_vm1 = vmand %vm1213_vm9, %vm4943_vm13  ;;  %vm4950_vm9 = vcmp.gt.s32.totalorder %v3305_v55, 8 }
 0x26b   : > { %2671 = vset.pattern.permute.xlu0 %v4890_v0  ;;  %vm1230_vm6 = vmor %vm1205_vm7, %vm1222_vm1 }
 0x26c   : > { %1351 = vperm.xlu0 %2671, %v3036_v56   ;;  %v1238_v10 = vsel %vm1230_vm6, 1, %v5085_v6  ;;  %vm4961_vm6 = vcmp.gt.s32.totalorder %v3305_v55, 9 }
 0x26d   : > { %v3180_v11 = vpop.permute.xlu1 %1420  ;;  %v3182_v12 = vpop.permute.xlu0 %1339 }
 0x26e   : > { %2659 = vset.pattern.permute.xlu1 %v4892_v59  ;;  %vm1375_vm13 = vcmp.eq.f32.partialorder %v3182_v12, %v3017_v42 }
 0x26f   : > { %1193 = vperm.xlu1 %2659, %v3031_v54  }
 0x270   : > { %2674 = vset.pattern.permute.xlu0 %v4910_v40 }
 0x271   : > { %v3187_v13 = vpop.permute.xlu0 %1899  ;;  %796 = vperm.xlu0 %2674, %v3041_v60  }
 0x272   : > { %5033 = vst [vmem:[#allocation12_spill] sm:$0xff] %v3187_v13  ;;  %v3190_v14 = vpop.permute.xlu1 %849 }
 0x273   : > { %5034 = vst [vmem:[#allocation13_spill] sm:$0xff] %v3190_v14  ;;  %2661 = vset.pattern.permute.xlu1 %v4890_v0 }
 0x274   : > { %1355 = vperm.xlu1 %2661, %v3031_v54  }
 0x275   : > { %v3194_v15 = vpop.permute.xlu0 %2076  ;;  %2676 = vset.pattern.permute.xlu0 %v4902_v49 }
 0x276   : > { %5035 = vst [vmem:[#allocation14_spill] sm:$0xff] %v3194_v15  ;;  %958 = vperm.xlu0 %2676, %v3041_v60  }
 0x277   : > { %v3198_v16 = vpop.permute.xlu1 %1011 }
 0x278   : > { %5036 = vst [vmem:[#allocation15_spill] sm:$0xff] %v3198_v16  ;;  %2664 = vset.pattern.permute.xlu1 %v4910_v40 }
 0x279   : > { %784 = vperm.xlu1 %2664, %v3036_v56   ;;  %v3202_v17 = vpop.permute.xlu0 %688 }
 0x27a   : > { %5037 = vst [vmem:[#allocation16_spill] sm:$0xff] %v3202_v17  ;;  %2678 = vset.pattern.permute.xlu0 %v4900_v52  ;;  %vm734_vm1 = vcmp.eq.f32.partialorder %v3202_v17, %v3053_v1 }
 0x27b   : > { %1120 = vperm.xlu0 %2678, %v3041_v60   ;;  %vm743_vm10 = vmand %vm734_vm1, %vm4953_vm4 }
 0x27c   : > { %v3206_v18 = vpop.permute.xlu1 %1173 }
 0x27d   : > { %5038 = vst [vmem:[#allocation17_spill] sm:$0xff] %v3206_v18  ;;  %2666 = vset.pattern.permute.xlu1 %v4902_v49 }
 0x27e   : > { %946 = vperm.xlu1 %2666, %v3036_v56   ;;  %v3210_v19 = vpop.permute.xlu0 %768 }
 0x27f   : > { %5039 = vst [vmem:[#allocation18_spill] sm:$0xff] %v3210_v19  ;;  %2680 = vset.pattern.permute.xlu0 %v4898_v58  ;;  %vm807_vm12 = vcmp.eq.f32.partialorder %v3210_v19, %v3053_v1  ;;  %vm799_vm7 = vcmp.lt.f32.partialorder %v3210_v19, %v3053_v1 }
 0x280   : > { %1282 = vperm.xlu0 %2680, %v3041_v60  }
 0x281   : > { %v3214_v20 = vpop.permute.xlu1 %1335 }
 0x282   : > { %5040 = vst [vmem:[#allocation19_spill] sm:$0xff] %v3214_v20  ;;  %2668 = vset.pattern.permute.xlu1 %v4900_v52 }
 0x283   : > { %1108 = vperm.xlu1 %2668, %v3036_v56   ;;  %v3218_v21 = vpop.permute.xlu0 %930 }
 0x284   : > { %5041 = vst [vmem:[#allocation20_spill] sm:$0xff] %v3218_v21  ;;  %2682 = vset.pattern.permute.xlu0 %v4904_v63 }
 0x285   : > { %v3221_v22 = vpop.permute.xlu1 %1897  ;;  %1444 = vperm.xlu0 %2682, %v3041_v60  }
 0x286   : > { %5042 = vst [vmem:[#allocation21_spill] sm:$0xff] %v3221_v22 }
 0x287   : > { %2670 = vset.pattern.permute.xlu1 %v4898_v58 }
 0x288   : > { %1270 = vperm.xlu1 %2670, %v3036_v56   ;;  %v3226_v23 = vpop.permute.xlu0 %1092 }
 0x289   : > { %5043 = vst [vmem:[#allocation22_spill] sm:$0xff] %v3226_v23  ;;  %v3228_v24 = vpop.permute.xlu1 %2074  ;;  %1911 = vrot.lane.b32.xlu0 %v3041_v60, %s2852_s22 }
 0x28a   : > { %5044 = vst [vmem:[#allocation23_spill] sm:$0xff] %v3228_v24  ;;  %2683 = vset.pattern.permute.xlu0 %v4906_v43 }
 0x28c   : > { %2672 = vset.pattern.permute.xlu1 %v4904_v63 }
 0x28d   : > { %1432 = vperm.xlu1 %2672, %v3036_v56   ;;  %v3235_v25 = vpop.permute.xlu1 %703  ;;  %2088 = vrot.lane.b32.xlu0 %v3041_v60, %s2853_s23  ;;  %v3239_v26 = vpop.permute.xlu0 %1254 }
 0x28e   : > { %5045 = vst [vmem:[#allocation24_spill] sm:$0xff] %v3235_v25  ;;  %5046 = vst [vmem:[#allocation25_spill] sm:$0xff] %v3239_v26 }
 0x291   : > { %1905 = vrot.lane.b32.xlu1 %v3036_v56, %s2852_s22  ;;  %718 = vperm.xlu0 %2683, %v3046_v62  }
 0x292   : > { %v3244_v27 = vpop.permute.xlu1 %861  ;;  %v3246_v28 = vpop.permute.xlu0 %1416  ;;  %2673 = vset.pattern.permute.xlu1 %v4906_v43 }
 0x293   : > { %5047 = vst [vmem:[#allocation26_spill] sm:$0xff] %v3244_v27  ;;  %5048 = vst [vmem:[#allocation27_spill] sm:$0xff] %v3246_v28 }
 0x295   : > { %2082 = vrot.lane.b32.xlu1 %v3036_v56, %s2853_s23  ;;  %2685 = vset.pattern.permute.xlu0 %v4896_v50 }
 0x296   : > { %873 = vperm.xlu0 %2685, %v3046_v62  }
 0x297   : > { %v3253_v29 = vpop.permute.xlu1 %1023  ;;  %v3255_v30 = vpop.permute.xlu0 %780 }
 0x298   : > { %5049 = vst [vmem:[#allocation28_spill] sm:$0xff] %v3253_v29  ;;  %5050 = vst [vmem:[#allocation29_spill] sm:$0xff] %v3255_v30 }
 0x299   : > { %723 = vperm.xlu1 %2673, %v3041_v60  }
 0x29a   : > { %2687 = vset.pattern.permute.xlu0 %v4894_v53 }
 0x29b   : > { %1035 = vperm.xlu0 %2687, %v3046_v62  }
 0x29c   : > { %v3260_v31 = vpop.permute.xlu1 %1185  ;;  %v3262_v32 = vpop.permute.xlu0 %942 }
 0x29d   : > { %5051 = vst [vmem:[#allocation30_spill] sm:$0xff] %v3260_v31  ;;  %5052 = vst [vmem:[#allocation31_spill] sm:$0xff] %v3262_v32  ;;  %2675 = vset.pattern.permute.xlu1 %v4896_v50  ;;  %v2098_v50 = vsel %vm4953_vm4, %v3228_v24, 0.0 }
 0x29e   : > { %877 = vperm.xlu1 %2675, %v3041_v60  }
 0x29f   : > { %2689 = vset.pattern.permute.xlu0 %v4892_v59 }
 0x2a0   : > { %1197 = vperm.xlu0 %2689, %v3046_v62  }
 0x2a1   : > { %v3268_v33 = vpop.permute.xlu1 %1347  ;;  %v3270_v34 = vpop.permute.xlu0 %1104 }
 0x2a2   : > { %5053 = vst [vmem:[#allocation32_spill] sm:$0xff] %v3268_v33  ;;  %5054 = vst [vmem:[#allocation33_spill] sm:$0xff] %v3270_v34  ;;  %2677 = vset.pattern.permute.xlu1 %v4894_v53 }
 0x2a3   : > { %1039 = vperm.xlu1 %2677, %v3041_v60  }
 0x2a4   : > { %2691 = vset.pattern.permute.xlu0 %v4890_v0 }
 0x2a5   : > { %1359 = vperm.xlu0 %2691, %v3046_v62  }
 0x2a6   : > { %v3276_v36 = vpop.permute.xlu1 %698  ;;  %v3278_v35 = vpop.permute.xlu0 %1266 }
 0x2a7   : > { %5055 = vst [vmem:[#allocation34_spill] sm:$0xff] %v3278_v35  ;;  %2679 = vset.pattern.permute.xlu1 %v4892_v59 }
 0x2a8   : > { %1201 = vperm.xlu1 %2679, %v3041_v60  }
 0x2a9   : > { %2693 = vset.pattern.permute.xlu0 %v4906_v43 }
 0x2ab   : > { %v3283_v37 = vpop.permute.xlu1 %776  ;;  %v3285_v38 = vpop.permute.xlu0 %1428 }
 0x2ac   : > { %5056 = vst [vmem:[#allocation35_spill] sm:$0xff] %v3285_v38  ;;  %2681 = vset.pattern.permute.xlu1 %v4890_v0  ;;  %v1922_v0 = vsel %vm4952_vm2, %v3187_v13, 0.0 }
 0x2ad   : > { %1363 = vperm.xlu1 %2681, %v3041_v60   ;;  %v1933_v59 = vsel %vm4960_vm3, %v1922_v0, 0.0 }
 0x2af   : > { %v3289_v39 = vpop.permute.xlu0 %1903 }
 0x2b0   : > { %5057 = vst [vmem:[#allocation36_spill] sm:$0xff] %v3289_v39  ;;  %v3291_v41 = vpop.permute.xlu1 %857 }
 0x2b1   : > { %2684 = vset.pattern.permute.xlu1 %v4910_v40 }
 0x2b2   : > { %792 = vperm.xlu1 %2684, %v3046_v62  }
 0x2b3   : > { %v3295_v44 = vpop.permute.xlu0 %2080 }
 0x2b4   : > { %5058 = vst [vmem:[#allocation37_spill] sm:$0xff] %v3295_v44 }
 0x2b5   : > { %v3297_v45 = vpop.permute.xlu1 %938 }
 0x2b6   : > { %2686 = vset.pattern.permute.xlu1 %v4902_v49 }
 0x2b7   : > { %954 = vperm.xlu1 %2686, %v3046_v62   ;;  %v3301_v47 = vpop.permute.xlu0 %788 }
 0x2b8   : > { %5059 = vst [vmem:[#allocation38_spill] sm:$0xff] %v3301_v47 }
 0x2ba   : > { %v3303_v51 = vpop.permute.xlu1 %1019 }
 0x2bb   : > { %2688 = vset.pattern.permute.xlu1 %v4900_v52  ;;  %v2106_v52 = vsel %vm4960_vm3, %v2098_v50, 0.0 }
 0x2bc   : > { %1116 = vperm.xlu1 %2688, %v3046_v62   ;;  %v3309_v57 = vpop.permute.xlu0 %950 }
 0x2bd   : > { %5060 = vst [vmem:[#allocation39_spill] sm:$0xff] %v3309_v57 }
 0x2bf   : > { %v3312_v61 = vpop.permute.xlu1 %1100 }
 0x2c0   : > { %2690 = vset.pattern.permute.xlu1 %v4898_v58 }
 0x2c1   : > { %1278 = vperm.xlu1 %2690, %v3046_v62   ;;  %v3319_v46 = vpop.permute.xlu0 %1112 }
 0x2c2   : > { %5061 = vst [vmem:[#allocation40_spill] sm:$0xff] %v3319_v46 }
 0x2c4   : > { %v3323_v53 = vpop.permute.xlu1 %1181  ;;  %1934 = vadd.xlane.f32.xlu0 %v1933_v59 }
 0x2c5   : > { %2692 = vset.pattern.permute.xlu1 %v4904_v63 }
 0x2c6   : > { %1440 = vperm.xlu1 %2692, %v3046_v62   ;;  %v3330_v58 = vpop.permute.xlu0 %1274 }
 0x2c7   : > { %5062 = vst [vmem:[#allocation41_spill] sm:$0xff] %v3330_v58 }
 0x2c8   : > { %2107 = vadd.xlane.f32.xlu0 %v2106_v52 }
 0x2c9   : > { %v3333_v49 = vpop.permute.xlu1 %1262 }
 0x2ca   : > { %5063 = vst [vmem:[#allocation42_spill] sm:$0xff] %v3333_v49  ;;  %1909 = vrot.lane.b32.xlu1 %v3046_v62, %s2852_s22 }
 0x2cb   : > { %v3337_v0 = vpop.permute.xlu0 %1436  ;;  %2694 = vset.pattern.permute.xlu1 %v4910_v40 }
 0x2cc   : > { %5064 = vst [vmem:[#allocation43_spill] sm:$0xff] %v3337_v0 }
 0x2ce   : > { %2086 = vrot.lane.b32.xlu1 %v3046_v62, %s2853_s23  ;;  %v3342_v59 = vpop.permute.xlu1 %1343 }
 0x2cf   : > { %5065 = vst [vmem:[#allocation44_spill] sm:$0xff] %v3342_v59  ;;  %v3344_v63 = vpop.permute.xlu0 %1907 }
 0x2d0   : > { %5066 = vst [vmem:[#allocation45_spill] sm:$0xff] %v3344_v63 }
 0x2d3   : > { %v3346_v43 = vpop.permute.xlu1 %1424  ;;  %v3348_v50 = vpop.permute.xlu0 %2084 }
 0x2d4   : > { %5067 = vst [vmem:[#allocation46_spill] sm:$0xff] %v3346_v43  ;;  %5068 = vst [vmem:[#allocation47_spill] sm:$0xff] %v3348_v50 }
 0x2d7   : > { %v3350_v52 = vpop.permute.xlu1 %1901  ;;  %v3352_v24 = vpop.permute.xlu0 %708 }
 0x2d8   : > { %5069 = vst [vmem:[#allocation48_spill] sm:$0xff] %v3350_v52  ;;  %5070 = vst [vmem:[#allocation49_spill] sm:$0xff] %v3352_v24  ;;  %v1923_v13 = vsel %vm4952_vm2, %v3350_v52, 0.0 }
 0x2d9   : > { %v1936_v40 = vsel %vm4960_vm3, %v1923_v13, 0.0 }
 0x2da   : > { %1937 = vadd.xlane.f32.xlu0 %v1936_v40 }
 0x2db   : > { %v3358_v62 = vpop.permute.xlu1 %2078 }
 0x2dc   : > { %5071 = vst [vmem:[#allocation50_spill] sm:$0xff] %v3358_v62  ;;  %v3360_v60 = vpop.permute.xlu0 %865  ;;  %v2100_v0 = vsel %vm4953_vm4, %v3358_v62, 0.0  ;;  %v2099_v62 = vsel %vm4953_vm4, %v3194_v15, 0.0 }
 0x2dd   : > { %5072 = vst [vmem:[#allocation51_spill] sm:$0xff] %v3360_v60  ;;  %v2112_v56 = vsel %vm4960_vm3, %v2100_v0, 0.0 }
 0x2de   : > { %2113 = vadd.xlane.f32.xlu0 %v2112_v56  ;;  %v2109_v56 = vsel %vm4960_vm3, %v2099_v62, 0.0 }
 0x2df   : > { %v3366_v58 = vpop.permute.xlu1 %713 }
 0x2e0   : > { %5073 = vst [vmem:[#allocation52_spill] sm:$0xff] %v3366_v58 }
 0x2e1   : > { %v3368_v24 = vpop.permute.xlu0 %1027 }
 0x2e2   : > { %5074 = vst [vmem:[#allocation53_spill] sm:$0xff] %v3368_v24 }
 0x2e4   : > { %v3370_v46 = vpop.permute.xlu1 %869 }
 0x2e5   : > { %5075 = vst [vmem:[#allocation54_spill] sm:$0xff] %v3370_v46 }
 0x2e6   : > { %v3372_v52 = vpop.permute.xlu0 %1189 }
 0x2e7   : > { %5076 = vst [vmem:[#allocation55_spill] sm:$0xff] %v3372_v52 }
 0x2e9   : > { %v3374_v40 = vpop.permute.xlu1 %1031 }
 0x2ea   : > { %5077 = vst [vmem:[#allocation56_spill] sm:$0xff] %v3374_v40 }
 0x2eb   : > { %v3376_v13 = vpop.permute.xlu0 %1351 }
 0x2ec   : > { %5078 = vst [vmem:[#allocation57_spill] sm:$0xff] %v3376_v13  ;;  %v1921_v13 = vsel %vm4952_vm2, %v3221_v22, 0.0 }
 0x2ed   : > { %v1930_v15 = vsel %vm4960_vm3, %v1921_v13, 0.0 }
 0x2ee   : > { %v3378_v60 = vpop.permute.xlu1 %1193 }
 0x2ef   : > { %5079 = vst [vmem:[#allocation58_spill] sm:$0xff] %v3378_v60 }
 0x2f0   : > { %v3383_v0 = vpop.permute.xlu0 %796 }
 0x2f1   : > { %5080 = vst [vmem:[#allocation59_spill] sm:$0xff] %v3383_v0 }
 0x2f2   : > { %2110 = vadd.xlane.f32.xlu1 %v2109_v56  ;;  %v1924_v56 = vsel %vm4952_vm2, %v3289_v39, 0.0  ;;  %v2101_v39 = vsel %vm4953_vm4, %v3295_v44, 0.0  ;;  %v914_v44 = vsel %vm906_vm8, 1, %v5085_v6  ;;  %vm1068_vm8 = vmor %vm1043_vm14, %vm1060_vm15  ;;  %vm4946_vm14 = vcmp.gt.s32.totalorder %v3305_v55, 7 }
 0x2f3   : > { %v3392_v52 = vpop.permute.xlu1 %1355  ;;  %vm1294_vm15 = vcmp.eq.f32.partialorder %v3172_v9, %v3017_v42 }
 0x2f4   : > { %5081 = vst [vmem:[#allocation60_spill] sm:$0xff] %v3392_v52  ;;  %vm1303_vm11 = vmand %vm1294_vm15, %vm4946_vm14 }
 0x2f5   : > { %v3400_v62 = vpop.permute.xlu0 %958  ;;  %vm816_vm14 = vmand %vm807_vm12, %vm4949_vm5  ;;  %vm888_vm12 = vcmp.eq.f32.partialorder %v3190_v14, %v3053_v1 }
 0x2f6   : > { %5082 = vst [vmem:[#allocation61_spill] sm:$0xff] %v3400_v62  ;;  %1931 = vadd.xlane.f32.xlu1 %v1930_v15  ;;  %v1939_v15 = vsel %vm4960_vm3, %v1924_v56, 0.0  ;;  %v2115_v56 = vsel %vm4960_vm3, %v2101_v39, 0.0  ;;  %v841_v39 = vadd.s32 %v833_v3, %v760_v4  ;;  %v2103_v3 = vsel %vm4953_vm4, %v3348_v50, 0.0  ;;  %vm824_vm5 = vmor %vm799_vm7, %vm816_vm14 }
 0x2f7   : > { %vm969_vm14 = vcmp.eq.f32.partialorder %v3218_v21, %v3053_v1  ;;  %vm880_vm7 = vcmp.lt.f32.partialorder %v3190_v14, %v3053_v1 }
 0x2f8   : > { %v3413_v22 = vpop.permute.xlu1 %784 }
 0x2f9   : > { %5083 = vst [vmem:[#allocation62_spill] sm:$0xff] %v3413_v22 }
 0x2fa   : > { %1940 = vadd.xlane.f32.xlu1 %v1939_v15  ;;  %v3420_v13 = vpop.permute.xlu0 %1120  ;;  %v1926_v15 = vsel %vm4952_vm2, %v3344_v63, 0.0  ;;  %v922_v63 = vadd.s32 %v914_v44, %v841_v39  ;;  %v2121_v44 = vsel %vm4960_vm3, %v2103_v3, 0.0  ;;  %v1076_v39 = vsel %vm1068_vm8, 1, %v5085_v6 }
 0x2fb   : > { %5084 = vst [vmem:[#allocation63_spill] sm:$0xff] %v3420_v13  ;;  %vm1286_vm8 = vcmp.lt.f32.partialorder %v3172_v9, %v3017_v42 }
 0x2fc   : > { %vm3506_vm15 = vmor %vm1286_vm8, %vm1303_vm11  ;;  %vm726_vm11 = vcmp.lt.f32.partialorder %v3202_v17, %v3053_v1 }
 0x2fd   : > { %v3430_v62 = vpop.permute.xlu1 %946  ;;  %vm1384_vm8 = vmand %vm1375_vm13, %vm4950_vm9  ;;  %vm1456_vm13 = vcmp.eq.f32.partialorder %v3180_v11, %v3017_v42 }
 0x2fe   : > { %5086 = vst [vmem:[#allocation64_spill] sm:$0xff] %v3430_v62  ;;  %2116 = vadd.xlane.f32.xlu1 %v2115_v56  ;;  %v1945_v56 = vsel %vm4960_vm3, %v1926_v15, 0.0  ;;  %v1003_v15 = vadd.s32 %v995_v8, %v922_v63  ;;  %vm751_vm1 = vmor %vm726_vm11, %vm743_vm10 }
 0x2ff   : > { %v3444_v13 = vpop.permute.xlu0 %1282  ;;  %vm3558_vm10 = vmand %vm1456_vm13, %vm4961_vm6  ;;  %v759_v19 = vsel %vm751_vm1, 1, %v5085_v6 }
 0x300   : > { %5087 = vst [vmem:[#allocation65_spill] sm:$0xff] %v3444_v13  ;;  %v1084_v3 = vadd.s32 %v1076_v39, %v1003_v15  ;;  %v1157_v39 = vsel %vm3476_vm0, 1, %v5085_v6  ;;  %vm1367_vm0 = vcmp.lt.f32.partialorder %v3182_v12, %v3017_v42 }
 0x301   : > { %vm3539_vm9 = vmor %vm1367_vm0, %vm1384_vm8  ;;  %vm5105_vm0 = vcmp.gt.s32.totalorder %v3305_v55, 0 }
 0x302   : > { %v3454_v5 = vpop.permute.xlu1 %1108  ;;  %1946 = vadd.xlane.f32.xlu1 %v1945_v56  ;;  %v1165_v9 = vadd.s32 %v1157_v39, %v1084_v3  ;;  %v1400_v17 = vsel %vm3539_vm9, 1, %v5085_v6  ;;  %vm5108_vm9 = vcmp.gt.s32.totalorder %v3305_v55, 4 }
 0x303   : > { %5088 = vst [vmem:[#allocation66_spill] sm:$0xff] %v3454_v5 }
 0x304   : > { %v3459_v4 = vpop.permute.xlu0 %1444 }
 0x305   : > { %5089 = vst [vmem:[#allocation67_spill] sm:$0xff] %v3459_v4 }
 0x306   : > { %2122 = vadd.xlane.f32.xlu1 %v2121_v44 }
 0x307   : > { %v3474_v56 = vpop.permute.xlu1 %1270 }
 0x308   : > { %5090 = vst [vmem:[#allocation68_spill] sm:$0xff] %v3474_v56  ;;  %v3480_v63 = vpop.permute.xlu0 %1911 }
 0x309   : > { %5093 = vst [vmem:[#allocation69_spill] sm:$0xff] %v3480_v63  ;;  %v1928_v8 = vsel %vm4952_vm2, %v3480_v63, 0.0 }
 0x30a   : > { %v1951_v44 = vsel %vm4960_vm3, %v1928_v8, 0.0 }
 0x30b   : > { %1952 = vadd.xlane.f32.xlu1 %v1951_v44 }
 0x30c   : > { %v3499_v63 = vpop.permute.xlu1 %1432  ;;  %v3501_v15 = vpop.permute.xlu0 %2088 }
 0x30d   : > { %5094 = vst [vmem:[#allocation70_spill] sm:$0xff] %v3499_v63  ;;  %5095 = vst [vmem:[#allocation71_spill] sm:$0xff] %v3501_v15  ;;  %v2105_v44 = vsel %vm4953_vm4, %v3501_v15, 0.0 }
 0x30e   : > { %v2127_v50 = vsel %vm4960_vm3, %v2105_v44, 0.0  ;;  %v1246_v44 = vadd.s32 %v1238_v10, %v1165_v9  ;;  %v832_v9 = vsel %vm824_vm5, 1, %v5085_v6  ;;  %vm5106_vm5 = vcmp.gt.s32.totalorder %v3305_v55, 3 }
 0x30f   : > { %2128 = vadd.xlane.f32.xlu1 %v2127_v50  ;;  %vm978_vm8 = vmand %vm969_vm14, %vm5106_vm5  ;;  %vm1131_vm14 = vcmp.eq.f32.partialorder %v3226_v23, %v3053_v1 }
 0x310   : > { %v3529_v3 = vpop.permute.xlu1 %1905 }
 0x311   : > { %5098 = vst [vmem:[#allocation72_spill] sm:$0xff] %v3529_v3  ;;  %v1925_v39 = vsel %vm4952_vm2, %v3529_v3, 0.0  ;;  %vm5101_vm2 = vcmp.gt.s32.totalorder %v3305_v55, 2  ;;  %v1319_v3 = vsel %vm3506_vm15, 1, %v5085_v6  ;;  %vm1448_vm15 = vcmp.lt.f32.partialorder %v3180_v11, %v3017_v42 }
 0x312   : > { %v1942_v15 = vsel %vm4960_vm3, %v1925_v39, 0.0  ;;  %vm897_vm4 = vmand %vm888_vm12, %vm5101_vm2  ;;  %v1327_v14 = vadd.s32 %v1319_v3, %v1246_v44  ;;  %vm961_vm2 = vcmp.lt.f32.partialorder %v3218_v21, %v3053_v1  ;;  %vm1050_vm12 = vcmp.eq.f32.partialorder %v3198_v16, %v3053_v1 }
 0x313   : > { %1943 = vadd.xlane.f32.xlu0 %v1942_v15  ;;  %vm905_vm11 = vmor %vm880_vm7, %vm897_vm4  ;;  %vm1042_vm4 = vcmp.lt.f32.partialorder %v3198_v16, %v3053_v1  ;;  %v5149_v16 = vmov 8  }
 0x314   : > { %v3551_v10 = vpop.permute.xlu1 %2082  ;;  %vm986_vm13 = vmor %vm961_vm2, %vm978_vm8  ;;  %v1408_v44 = vadd.s32 %v1400_v17, %v1327_v14  ;;  %vm5110_vm2 = vcmp.gt.s32.totalorder %v3305_v55, 5 }
 0x315   : > { %5102 = vst [vmem:[#allocation73_spill] sm:$0xff] %v3551_v10  ;;  %v2102_v15 = vsel %vm5105_vm0, %v3551_v10, 0.0  ;;  %v840_v10 = vadd.s32 %v832_v9, %v759_v19  ;;  %vm1473_vm1 = vmor %vm1448_vm15, %vm3558_vm10  ;;  %v994_v19 = vsel %vm986_vm13, 1, %v5085_v6  ;;  %vm1212_vm10 = vcmp.eq.f32.partialorder %v3206_v18, %v3053_v1 }
 0x316   : > { %v2118_v8 = vsel %vm4960_vm3, %v2102_v15, 0.0  ;;  %v913_v15 = vsel %vm905_vm11, 1, %v5085_v6  ;;  %vm1059_vm7 = vmand %vm1050_vm12, %vm5108_vm9  ;;  %v1481_v50 = vsel %vm1473_vm1, 1, %v5085_v6  ;;  %vm1123_vm0 = vcmp.lt.f32.partialorder %v3226_v23, %v3053_v1 }
 0x317   : > { %2119 = vadd.xlane.f32.xlu0 %v2118_v8  ;;  %v921_v21 = vadd.s32 %v913_v15, %v840_v10  ;;  %v3595_v17 = vadd.s32 %v1481_v50, %v1408_v44  ;;  %vm1140_vm5 = vmand %vm1131_vm14, %vm5110_vm2  ;;  %vm5111_vm15 = vcmp.gt.s32.totalorder %v3305_v55, 6  ;;  %vm1204_vm12 = vcmp.lt.f32.partialorder %v3206_v18, %v3053_v1 }
 0x318   : > { %v3576_v3 = vpop.permute.xlu1 %723  ;;  %vm1067_vm8 = vmor %vm1042_vm4, %vm1059_vm7  ;;  %vm1374_vm1 = vcmp.eq.f32.partialorder %v3214_v20, %v3053_v1  ;;  %vm1293_vm14 = vcmp.eq.f32.partialorder %v3239_v26, %v3053_v1  ;;  %vm810_vm9 = vcmp.eq.f32.partialorder %v3255_v30, %v3081_v2  ;;  %v5115_v15 = vmov 3  }
 0x319   : > { %5107 = vst [vmem:[#allocation74_spill] sm:$0xff] %v3576_v3  ;;  %v1002_v9 = vadd.s32 %v994_v19, %v921_v21  ;;  %vm1221_vm11 = vmand %vm1212_vm10, %vm5111_vm15  ;;  %v1075_v10 = vsel %vm1067_vm8, 1, %v5085_v6  ;;  %vm5116_vm7 = vcmp.gt.s32.totalorder %v3305_v55, 8  ;;  %vm1285_vm2 = vcmp.lt.f32.partialorder %v3239_v26, %v3053_v1 }
 0x31a   : > { %vm1148_vm13 = vmor %vm1123_vm0, %vm1140_vm5  ;;  %vm737_vm0 = vcmp.eq.f32.partialorder %v3235_v25, %v3081_v2  ;;  %vm5119_vm5 = vcmp.gt.s32.totalorder %v3305_v55, 7  ;;  %vm802_vm15 = vcmp.lt.f32.partialorder %v3255_v30, %v3081_v2  ;;  %vm729_vm3 = vcmp.lt.f32.partialorder %v3235_v25, %v3081_v2 }
 0x31b   : > { %v1083_v8 = vadd.s32 %v1075_v10, %v1002_v9  ;;  %vm3613_vm4 = vmor %vm1204_vm12, %vm1221_vm11  ;;  %v1156_v44 = vsel %vm1148_vm13, 1, %v5085_v6  ;;  %vm5120_vm11 = vcmp.gt.s32.totalorder %v3305_v55, 1  ;;  %vm1366_vm13 = vcmp.lt.f32.partialorder %v3214_v20, %v3053_v1 }
 0x31c   : > { %vm3623_vm10 = vmand %vm1374_vm1, %vm5116_vm7  ;;  %vm5122_vm1 = vcmp.gt.s32.totalorder %v3305_v55, 0  ;;  %v5123_v10 = vmov 5  }
 0x31d   : > { %v3593_v14 = vpop.permute.xlu1 %877  ;;  %vm1302_vm8 = vmand %vm1293_vm14, %vm5119_vm5  ;;  %v1164_v50 = vadd.s32 %v1156_v44, %v1083_v8  ;;  %v1237_v8 = vsel %vm3613_vm4, 1, %v5085_v6  ;;  %vm891_vm14 = vcmp.eq.f32.partialorder %v3244_v27, %v3081_v2  ;;  %vm972_vm4 = vcmp.eq.f32.partialorder %v3262_v32, %v3081_v2 }
 0x31e   : > { %5109 = vst [vmem:[#allocation75_spill] sm:$0xff] %v3593_v14  ;;  %vm819_vm12 = vmand %vm810_vm9, %vm5120_vm11  ;;  %vm1447_vm11 = vcmp.lt.f32.partialorder %v3246_v28, %v3053_v1 }
 0x31f   : > { %vm746_vm7 = vmand %vm737_vm0, %vm5122_vm1  ;;  %v1245_v30 = vadd.s32 %v1237_v8, %v1164_v50  ;;  %vm1455_vm0 = vcmp.eq.f32.partialorder %v3246_v28, %v3053_v1  ;;  %v5129_v50 = vmov 7  }
 0x320   : > { %1540 = vperm.xlu1 %2694, %v3595_v17   ;;  %vm1310_vm6 = vmor %vm1285_vm2, %vm1302_vm8  ;;  %vm883_vm8 = vcmp.lt.f32.partialorder %v3244_v27, %v3081_v2 }
 0x321   : > { %vm827_vm9 = vmor %vm802_vm15, %vm819_vm12  ;;  %v1318_v21 = vsel %vm1310_vm6, 1, %v5085_v6  ;;  %vm964_vm6 = vcmp.lt.f32.partialorder %v3262_v32, %v3081_v2  ;;  %v5132_v32 = vmov 9  }
 0x322   : > { %v3609_v39 = vpop.permute.xlu1 %1039  ;;  %vm3655_vm5 = vmor %vm1366_vm13, %vm3623_vm10  ;;  %vm5127_vm10 = vcmp.gt.s32.totalorder %v3305_v55, 2  ;;  %v835_v19 = vsel %vm827_vm9, 1, %v5085_v6  ;;  %v1326_v20 = vadd.s32 %v1318_v21, %v1245_v30  ;;  %vm5130_vm13 = vcmp.gt.s32.totalorder %v3305_v55, 3 }
 0x323   : > { %5112 = vst [vmem:[#allocation76_spill] sm:$0xff] %v3609_v39  ;;  %vm754_vm2 = vmor %vm729_vm3, %vm746_vm7  ;;  %vm5128_vm3 = vcmp.gt.s32.totalorder %v3305_v55, 9  ;;  %v1399_v26 = vsel %vm3655_vm5, 1, %v5085_v6  ;;  %vm1053_vm9 = vcmp.eq.f32.partialorder %v3253_v29, %v3081_v2  ;;  %vm1045_vm5 = vcmp.lt.f32.partialorder %v3253_v29, %v3081_v2 }
 0x324   : > { %2696 = vset.pattern.permute.xlu1 %v5115_v15  ;;  %vm900_vm15 = vmand %vm891_vm14, %vm5127_vm10  ;;  %v762_v8 = vsel %vm754_vm2, 1, %v5085_v6  ;;  %v1407_v21 = vadd.s32 %v1399_v26, %v1326_v20  ;;  %vm1134_vm2 = vcmp.eq.f32.partialorder %v3270_v34, %v3081_v2  ;;  %vm1126_vm10 = vcmp.lt.f32.partialorder %v3270_v34, %v3081_v2 }
 0x325   : > { %1620 = vperm.xlu1 %2696, %v3595_v17   ;;  %vm1464_vm12 = vmand %vm1455_vm0, %vm5128_vm3  ;;  %v843_v27 = vadd.s32 %v835_v19, %v762_v8 }
 0x326   : > { %vm981_vm1 = vmand %vm972_vm4, %vm5130_vm13  ;;  %vm5133_vm4 = vcmp.gt.s32.totalorder %v3305_v55, 4  ;;  %vm1296_vm13 = vcmp.eq.f32.partialorder %v3278_v35, %v3081_v2 }
 0x327   : > { %v3638_v9 = vpop.permute.xlu1 %1201  ;;  %vm908_vm7 = vmor %vm883_vm8, %vm900_vm15  ;;  %vm5135_vm15 = vcmp.gt.s32.totalorder %v3305_v55, 5 }
 0x328   : > { %5121 = vst [vmem:[#allocation77_spill] sm:$0xff] %v3638_v9  ;;  %vm1472_vm14 = vmor %vm1447_vm11, %vm1464_vm12  ;;  %v916_v30 = vsel %vm908_vm7, 1, %v5085_v6  ;;  %vm1215_vm12 = vcmp.eq.f32.partialorder %v3260_v31, %v3081_v2  ;;  %vm5137_vm7 = vcmp.gt.s32.totalorder %v3305_v55, 6 }
 0x329   : > { %2698 = vset.pattern.permute.xlu1 %v5123_v10  ;;  %vm989_vm0 = vmor %vm964_vm6, %vm981_vm1  ;;  %v1480_v18 = vsel %vm1472_vm14, 1, %v5085_v6  ;;  %v924_v23 = vadd.s32 %v916_v30, %v843_v27  ;;  %vm1207_vm1 = vcmp.lt.f32.partialorder %v3260_v31, %v3081_v2  ;;  %v5138_v30 = vmov 2  }
 0x32a   : > { %1700 = vperm.xlu1 %2698, %v3595_v17   ;;  %vm1062_vm8 = vmand %vm1053_vm9, %vm5133_vm4  ;;  %v997_v44 = vsel %vm989_vm0, 1, %v5085_v6  ;;  %v3702_v20 = vadd.s32 %v1480_v18, %v1407_v21  ;;  %vm1288_vm9 = vcmp.lt.f32.partialorder %v3278_v35, %v3081_v2  ;;  %vm5139_vm0 = vcmp.gt.s32.totalorder %v3305_v55, 7 }
 0x32b   : > { %vm1143_vm11 = vmand %vm1134_vm2, %vm5135_vm15  ;;  %v1005_v26 = vadd.s32 %v997_v44, %v924_v23  ;;  %vm1377_vm4 = vcmp.eq.f32.partialorder %v3268_v33, %v3081_v2  ;;  %vm1369_vm15 = vcmp.lt.f32.partialorder %v3268_v33, %v3081_v2 }
 0x32c   : > { %v3664_v25 = vpop.permute.xlu1 %1363  ;;  %vm1070_vm3 = vmor %vm1045_vm5, %vm1062_vm8 }
 0x32d   : > { %5126 = vst [vmem:[#allocation78_spill] sm:$0xff] %v3664_v25  ;;  %vm1151_vm6 = vmor %vm1126_vm10, %vm1143_vm11  ;;  %v1078_v27 = vsel %vm1070_vm3, 1, %v5085_v6  ;;  %vm1458_vm10 = vcmp.eq.f32.partialorder %v3285_v38, %v3081_v2  ;;  %vm5142_vm11 = vcmp.gt.s32.totalorder %v3305_v55, 8 }
 0x32e   : > { %2700 = vset.pattern.permute.xlu1 %v5129_v50  ;;  %v1086_v8 = vadd.s32 %v1078_v27, %v1005_v26  ;;  %vm1224_vm14 = vmand %vm1215_vm12, %vm5137_vm7  ;;  %v1159_v23 = vsel %vm1151_vm6, 1, %v5085_v6  ;;  %v5141_v26 = vmov 4   ;;  %vm1450_vm12 = vcmp.lt.f32.partialorder %v3285_v38, %v3081_v2 }
 0x32f   : > { %1780 = vperm.xlu1 %2700, %v3595_v17   ;;  %vm1305_vm2 = vmand %vm1296_vm13, %vm5139_vm0  ;;  %vm5144_vm6 = vcmp.gt.s32.totalorder %v3305_v55, 9  ;;  %vm5148_vm0 = vcmask 80896  }
 0x330   : > { %vm1232_vm5 = vmor %vm1207_vm1, %vm1224_vm14  ;;  %v1167_v21 = vadd.s32 %v1159_v23, %v1086_v8  ;;  %vm5147_vm14 = vcmp.lt.s32.totalorder %v3305_v55, 9 }
 0x331   : > { %v3682_v28 = vpop.permute.xlu1 %792  ;;  %vm1313_vm8 = vmor %vm1288_vm9, %vm1305_vm2  ;;  %v1240_v27 = vsel %vm1232_vm5, 1, %v5085_v6  ;;  %vm736_vm9 = vcmp.eq.f32.partialorder %v3276_v36, %v3022_v48  ;;  %vm809_vm2 = vcmp.eq.f32.partialorder %v3283_v37, %v3022_v48  ;;  %vm728_vm5 = vcmp.lt.f32.partialorder %v3276_v36, %v3022_v48 }
 0x332   : > { %5131 = vst [vmem:[#allocation79_spill] sm:$0xff] %v3682_v28  ;;  %v1248_v31 = vadd.s32 %v1240_v27, %v1167_v21  ;;  %vm1386_vm3 = vmand %vm1377_vm4, %vm5142_vm11  ;;  %v1321_v8 = vsel %vm1313_vm8, 1, %v5085_v6  ;;  %v5145_v21 = vmov 6   ;;  %vm5151_vm4 = vcmp.gt.s32.totalorder %v3305_v55, 0 }
 0x333   : > { %2702 = vset.pattern.permute.xlu1 %v5132_v32  ;;  %vm1467_vm13 = vmand %vm1458_vm10, %vm5144_vm6 }
 0x334   : > { %1860 = vperm.xlu1 %2702, %v3595_v17   ;;  %vm1394_vm1 = vmor %vm1369_vm15, %vm1386_vm3  ;;  %v1329_v27 = vadd.s32 %v1321_v8, %v1248_v31  ;;  %vm890_vm15 = vcmp.eq.f32.partialorder %v3291_v41, %v3022_v48  ;;  %vm801_vm3 = vcmp.lt.f32.partialorder %v3283_v37, %v3022_v48 }
 0x335   : > { %vm1475_vm7 = vmor %vm1450_vm12, %vm1467_vm13  ;;  %v1402_v34 = vsel %vm1394_vm1, 1, %v5085_v6  ;;  %vm5154_vm12 = vcmp.gt.s32.totalorder %v3305_v55, 1  ;;  %vm971_vm1 = vcmp.eq.f32.partialorder %v3297_v45, %v3022_v48 }
 0x336   : > { %v3700_v19 = vpop.permute.xlu1 %954  ;;  %v1410_v29 = vadd.s32 %v1402_v34, %v1329_v27  ;;  %v1483_v31 = vsel %vm1475_vm7, 1, %v5085_v6  ;;  %vm745_vm8 = vmand %vm736_vm9, %vm5151_vm4  ;;  %vm882_vm7 = vcmp.lt.f32.partialorder %v3291_v41, %v3022_v48 }
 0x337   : > { %5134 = vst [vmem:[#allocation80_spill] sm:$0xff] %v3700_v19  ;;  %vm5152_vm10 = vmmov %vm5151_vm4  ;;  %vm5158_vm4 = vcmp.gt.s32.totalorder %v3305_v55, 3 }
 0x338   : > { %2703 = vset.pattern.permute.xlu1 %v5085_v6  ;;  %vm5153_vm11 = vmmov %vm5148_vm0 }
 0x339   : > { %1497 = vperm.xlu1 %2703, %v3702_v20   ;;  %vm818_vm6 = vmand %vm809_vm2, %vm5154_vm12  ;;  %vm1052_vm2 = vcmp.eq.f32.partialorder %v3303_v51, %v3022_v48 }
 0x33a   : > { %vm3782_vm13 = vmor %vm728_vm5, %vm745_vm8  ;;  %vm963_vm5 = vcmp.lt.f32.partialorder %v3297_v45, %v3022_v48 }
 0x33b   : > { %v3713_v18 = vpop.permute.xlu1 %1116  ;;  %vm980_vm8 = vmand %vm971_vm1, %vm5158_vm4  ;;  %vm1125_vm1 = vcmp.lt.f32.partialorder %v3312_v61, %v3022_v48 }
 0x33c   : > { %5136 = vst [vmem:[#allocation81_spill] sm:$0xff] %v3713_v18 }
 0x33d   : > { %2705 = vset.pattern.permute.xlu1 %v5138_v30 }
 0x33e   : > { %1577 = vperm.xlu1 %2705, %v3702_v20  }
 0x340   : > { %v3728_v44 = vpop.permute.xlu1 %1278 }
 0x341   : > { %5140 = vst [vmem:[#allocation82_spill] sm:$0xff] %v3728_v44 }
 0x342   : > { %2707 = vset.pattern.permute.xlu1 %v5141_v26 }
 0x343   : > { %1657 = vperm.xlu1 %2707, %v3702_v20  }
 0x345   : > { %v3742_v23 = vpop.permute.xlu1 %1440 }
 0x346   : > { %5143 = vst [vmem:[#allocation83_spill] sm:$0xff] %v3742_v23 }
 0x347   : > { %2709 = vset.pattern.permute.xlu1 %v5145_v21 }
 0x348   : > { %1737 = vperm.xlu1 %2709, %v3702_v20  }
 0x349   : > { %v3750_v33 = vpop.permute.xlu1 %1909 }
 0x34a   : > { %5146 = vst [vmem:[#allocation84_spill] sm:$0xff] %v3750_v33  ;;  %v1927_v35 = vsel %vm5147_vm14, %v3750_v33, 0.0  ;;  %vm5157_vm14 = vcmp.gt.s32.totalorder %v3305_v55, 2 }
 0x34b   : > { %v1948_v38 = vsel %vm5148_vm0, %v1927_v35, 0.0  ;;  %vm899_vm9 = vmand %vm890_vm15, %vm5157_vm14  ;;  %vm1044_vm15 = vcmp.lt.f32.partialorder %v3303_v51, %v3022_v48  ;;  %vm1214_vm14 = vcmp.eq.f32.partialorder %v3323_v53, %v3022_v48 }
 0x34c   : > { %1949 = vadd.xlane.f32.xlu0 %v1948_v38  ;;  %2711 = vset.pattern.permute.xlu1 %v5149_v16  ;;  %v3780_v38 = vadd.s32 %v1483_v31, %v1410_v29  ;;  %vm826_vm0 = vmor %vm801_vm3, %vm818_vm6  ;;  %vm5159_vm3 = vcmp.gt.s32.totalorder %v3305_v55, 4  ;;  %v761_v31 = vsel %vm3782_vm13, 1, %v5085_v6  ;;  %vm5161_vm13 = vcmp.gt.s32.totalorder %v3305_v55, 6 }
 0x34d   : > { %v3763_v8 = vpop.permute.xlu1 %2086  ;;  %1817 = vperm.xlu1 %2711, %v3702_v20   ;;  %v834_v29 = vsel %vm826_vm0, 1, %v5085_v6  ;;  %vm1061_vm12 = vmand %vm1052_vm2, %vm5159_vm3  ;;  %vm1295_vm2 = vcmp.eq.f32.partialorder %v3333_v49, %v3022_v48 }
 0x34e   : > { %5150 = vst [vmem:[#allocation85_spill] sm:$0xff] %v3763_v8  ;;  %v2104_v34 = vsel %vm5152_vm10, %v3763_v8, 0.0  ;;  %vm907_vm10 = vmor %vm882_vm7, %vm899_vm9  ;;  %vm5160_vm7 = vcmp.gt.s32.totalorder %v3305_v55, 5 }
 0x34f   : > { %v2124_v35 = vsel %vm5153_vm11, %v2104_v34, 0.0  ;;  %vm1133_vm11 = vcmp.eq.f32.partialorder %v3312_v61, %v3022_v48  ;;  %vm988_vm6 = vmor %vm963_vm5, %vm980_vm8  ;;  %v915_v34 = vsel %vm907_vm10, 1, %v5085_v6  ;;  %vm1206_vm5 = vcmp.lt.f32.partialorder %v3323_v53, %v3022_v48 }
 0x350   : > { %2125 = vadd.xlane.f32.xlu0 %v2124_v35  ;;  %vm1142_vm9 = vmand %vm1133_vm11, %vm5160_vm7  ;;  %v842_v35 = vadd.s32 %v834_v29, %v761_v31  ;;  %v996_v33 = vsel %vm988_vm6, 1, %v5085_v6  ;;  %vm1376_vm10 = vcmp.eq.f32.partialorder %v3342_v59, %v3022_v48  ;;  %vm1287_vm11 = vcmp.lt.f32.partialorder %v3333_v49, %v3022_v48 }
 0x351   : > { %2713 = vset.pattern.permute.xlu1 %v5085_v6  ;;  %vm1069_vm0 = vmor %vm1044_vm15, %vm1061_vm12  ;;  %vm5162_vm15 = vcmp.gt.s32.totalorder %v3305_v55, 7  ;;  %vm1457_vm6 = vcmp.eq.f32.partialorder %v3346_v43, %v3022_v48 }
 0x352   : > { %1506 = vperm.xlu1 %2713, %v3780_v38   ;;  %vm1223_vm4 = vmand %vm1214_vm14, %vm5161_vm13  ;;  %v923_v27 = vadd.s32 %v915_v34, %v842_v35  ;;  %v1077_v29 = vsel %vm1069_vm0, 1, %v5085_v6  ;;  %vm1368_vm14 = vcmp.lt.f32.partialorder %v3342_v59, %v3022_v48  ;;  %vm1449_vm0 = vcmp.lt.f32.partialorder %v3346_v43, %v3022_v48 }
 0x353   : > { %vm1150_vm8 = vmor %vm1125_vm1, %vm1142_vm9  ;;  %vm5163_vm1 = vcmp.gt.s32.totalorder %v3305_v55, 8 }
 0x354   : > { %vm1304_vm3 = vmand %vm1295_vm2, %vm5162_vm15  ;;  %v1004_v31 = vadd.s32 %v996_v33, %v923_v27  ;;  %v1158_v34 = vsel %vm1150_vm8, 1, %v5085_v6  ;;  %vm5164_vm2 = vcmp.gt.s32.totalorder %v3305_v55, 9  ;;  %vm739_vm8 = vcmp.eq.f32.partialorder %v3366_v58, %v3031_v54 }
 0x355   : > { %vm1231_vm12 = vmor %vm1206_vm5, %vm1223_vm4  ;;  %vm731_vm15 = vcmp.lt.f32.partialorder %v3366_v58, %v3031_v54 }
 0x356   : > { %2715 = vset.pattern.permute.xlu1 %v5138_v30  ;;  %vm1385_vm7 = vmand %vm1376_vm10, %vm5163_vm1  ;;  %v1085_v35 = vadd.s32 %v1077_v29, %v1004_v31  ;;  %v1239_v8 = vsel %vm1231_vm12, 1, %v5085_v6  ;;  %vm812_vm10 = vcmp.eq.f32.partialorder %v3301_v47, %v3031_v54 }
 0x357   : > { %1586 = vperm.xlu1 %2715, %v3780_v38   ;;  %vm1312_vm9 = vmor %vm1287_vm11, %vm1304_vm3  ;;  %vm893_vm11 = vcmp.eq.f32.partialorder %v3370_v46, %v3031_v54  ;;  %vm5166_vm3 = vcmp.gt.s32.totalorder %v3305_v55, 0 }
 0x358   : > { %vm1466_vm5 = vmand %vm1457_vm6, %vm5164_vm2  ;;  %v1166_v33 = vadd.s32 %v1158_v34, %v1085_v35  ;;  %v1320_v27 = vsel %vm1312_vm9, 1, %v5085_v6  ;;  %vm804_vm6 = vcmp.lt.f32.partialorder %v3301_v47, %v3031_v54  ;;  %vm5168_vm9 = vcmp.gt.s32.totalorder %v3305_v55, 2 }
 0x359   : > { %vm1393_vm13 = vmor %vm1368_vm14, %vm1385_vm7  ;;  %vm5167_vm14 = vcmp.gt.s32.totalorder %v3305_v55, 1  ;;  %vm885_vm7 = vcmp.lt.f32.partialorder %v3370_v46, %v3031_v54 }
 0x35a   : > { %v1247_v59 = vadd.s32 %v1239_v8, %v1166_v33  ;;  %vm1474_vm4 = vmor %vm1449_vm0, %vm1466_vm5  ;;  %v1401_v29 = vsel %vm1393_vm13, 1, %v5085_v6  ;;  %vm974_vm13 = vcmp.eq.f32.partialorder %v3309_v57, %v3031_v54 }
 0x35b   : > { %2717 = vset.pattern.permute.xlu1 %v5141_v26  ;;  %v1482_v43 = vsel %vm1474_vm4, 1, %v5085_v6  ;;  %vm748_vm12 = vmand %vm739_vm8, %vm5166_vm3  ;;  %vm1055_vm8 = vcmp.eq.f32.partialorder %v3374_v40, %v3031_v54  ;;  %vm1047_vm3 = vcmp.lt.f32.partialorder %v3374_v40, %v3031_v54 }
 0x35c   : > { %1666 = vperm.xlu1 %2717, %v3780_v38   ;;  %v1328_v31 = vadd.s32 %v1320_v27, %v1247_v59  ;;  %v5165_v59 = vmov 1   ;;  %vm821_vm1 = vmand %vm812_vm10, %vm5167_vm14  ;;  %vm966_vm10 = vcmp.lt.f32.partialorder %v3309_v57, %v3031_v54  ;;  %v5182_v57 = vld [vmem:[#allocation51_spill] sm:$0xff] }
 0x35d   : > { %vm902_vm0 = vmand %vm893_vm11, %vm5168_vm9  ;;  %vm5169_vm11 = vcmp.gt.s32.totalorder %v3305_v55, 3 }
 0x35e   : > { %v1409_v49 = vadd.s32 %v1401_v29, %v1328_v31  ;;  %vm756_vm2 = vmor %vm731_vm15, %vm748_vm12  ;;  %vm5170_vm12 = vcmp.gt.s32.totalorder %v3305_v55, 4 }
 0x35f   : > { %vm829_vm5 = vmor %vm804_vm6, %vm821_vm1 }
 0x360   : > { %2719 = vset.pattern.permute.xlu1 %v5145_v21  ;;  %v3855_v34 = vadd.s32 %v1482_v43, %v1409_v49  ;;  %vm910_vm4 = vmor %vm885_vm7, %vm902_vm0  ;;  %v764_v43 = vsel %vm756_vm2, 1, %v5085_v6  ;;  %v837_v49 = vsel %vm829_vm5, 1, %v5085_v6  ;;  %vm5172_vm0 = vcmp.gt.s32.totalorder %v3305_v55, 5 }
 0x361   : > { %1746 = vperm.xlu1 %2719, %v3780_v38   ;;  %vm983_vm15 = vmand %vm974_vm13, %vm5169_vm11  ;;  %v918_v8 = vsel %vm910_vm4, 1, %v5085_v6  ;;  %v845_v35 = vadd.s32 %v837_v49, %v764_v43  ;;  %vm1217_vm5 = vcmp.eq.f32.partialorder %v3378_v60, %v3031_v54  ;;  %v5173_v49 = vld [vmem:[#allocation41_spill] sm:$0xff] }
 0x362   : > { %vm1064_vm6 = vmand %vm1055_vm8, %vm5170_vm12  ;;  %vm1298_vm13 = vcmp.eq.f32.partialorder %v5173_v49, %v3031_v54  ;;  %vm1209_vm8 = vcmp.lt.f32.partialorder %v3378_v60, %v3031_v54  ;;  %v5177_v60 = vld [vmem:[#allocation49_spill] sm:$0xff] }
 0x363   : > { %vm991_vm14 = vmor %vm966_vm10, %vm983_vm15  ;;  %v926_v33 = vadd.s32 %v918_v8, %v845_v35  ;;  %vm5174_vm10 = vcmp.gt.s32.totalorder %v3305_v55, 6  ;;  %vm1290_vm15 = vcmp.lt.f32.partialorder %v5173_v49, %v3031_v54 }
 0x364   : > { %vm1072_vm7 = vmor %vm1047_vm3, %vm1064_vm6  ;;  %v999_v29 = vsel %vm991_vm14, 1, %v5085_v6  ;;  %vm5175_vm3 = vcmp.gt.s32.totalorder %v3305_v55, 7 }
 0x365   : > { %2721 = vset.pattern.permute.xlu1 %v5149_v16  ;;  %v1007_v31 = vadd.s32 %v999_v29, %v926_v33  ;;  %v1080_v8 = vsel %vm1072_vm7, 1, %v5085_v6  ;;  %vm1226_vm11 = vmand %vm1217_vm5, %vm5174_vm10  ;;  %v5176_v29 = vld [vmem:[#allocation2_spill] sm:$0xff] }
 0x366   : > { %1500 = vperm.xlu0 %2693, %v3595_v17   ;;  %1826 = vperm.xlu1 %2721, %v3780_v38   ;;  %vm1307_vm12 = vmand %vm1298_vm13, %vm5175_vm3  ;;  %vm811_vm6 = vcmp.eq.f32.partialorder %v3413_v22, %v5176_v29  ;;  %vm738_vm14 = vcmp.eq.f32.partialorder %v5177_v60, %v5176_v29  ;;  %vm730_vm13 = vcmp.lt.f32.partialorder %v5177_v60, %v5176_v29 }
 0x367   : > { %v1088_v35 = vadd.s32 %v1080_v8, %v1007_v31  ;;  %vm3949_vm7 = vmor %vm1290_vm15, %vm1307_vm12  ;;  %vm892_vm10 = vcmp.eq.f32.partialorder %v5182_v57, %v5176_v29  ;;  %vm1371_vm3 = vcmp.lt.f32.partialorder %v3392_v52, %v3031_v54 }
 0x36a   : > { %2695 = vset.pattern.permute.xlu0 %v5138_v30  ;;  %2723 = vset.pattern.permute.xlu1 %v5085_v6 }
 0x36b   : > { %1580 = vperm.xlu0 %2695, %v3595_v17   ;;  %1503 = vperm.xlu1 %2723, %v3855_v34  }
 0x36f   : > { %2697 = vset.pattern.permute.xlu0 %v5141_v26  ;;  %2724 = vset.pattern.permute.xlu1 %v5165_v59 }
 0x370   : > { %1660 = vperm.xlu0 %2697, %v3595_v17   ;;  %1543 = vperm.xlu1 %2724, %v3855_v34  }
 0x374   : > { %2699 = vset.pattern.permute.xlu0 %v5145_v21  ;;  %2725 = vset.pattern.permute.xlu1 %v5138_v30 }
 0x375   : > { %1740 = vperm.xlu0 %2699, %v3595_v17   ;;  %1583 = vperm.xlu1 %2725, %v3855_v34  }
 0x379   : > { %2701 = vset.pattern.permute.xlu0 %v5149_v16  ;;  %2726 = vset.pattern.permute.xlu1 %v5115_v15 }
 0x37a   : > { %1820 = vperm.xlu0 %2701, %v3595_v17   ;;  %1623 = vperm.xlu1 %2726, %v3855_v34   ;;  %v5171_v17 = vld [vmem:[#allocation40_spill] sm:$0xff] }
 0x37b   : > { %vm1136_vm1 = vcmp.eq.f32.partialorder %v5171_v17, %v3031_v54  ;;  %vm1128_vm9 = vcmp.lt.f32.partialorder %v5171_v17, %v3031_v54 }
 0x37c   : > { %vm1145_vm2 = vmand %vm1136_vm1, %vm5172_vm0  ;;  %vm803_vm0 = vcmp.lt.f32.partialorder %v3413_v22, %v5176_v29 }
 0x37d   : > { %vm1153_vm4 = vmor %vm1128_vm9, %vm1145_vm2  ;;  %vm1379_vm9 = vcmp.eq.f32.partialorder %v3392_v52, %v3031_v54  ;;  %vm5180_vm2 = vcmp.gt.s32.totalorder %v3305_v55, 1  ;;  %v5198_v52 = vld [vmem:[#allocation55_spill] sm:$0xff] }
 0x37e   : > { %2704 = vset.pattern.permute.xlu0 %v5165_v59  ;;  %2727 = vset.pattern.permute.xlu1 %v5141_v26  ;;  %vm1234_vm1 = vmor %vm1209_vm8, %vm1226_vm11  ;;  %v1161_v49 = vsel %vm1153_vm4, 1, %v5085_v6  ;;  %vm5181_vm4 = vcmp.gt.s32.totalorder %v3305_v55, 0  ;;  %vm5183_vm11 = vcmp.gt.s32.totalorder %v3305_v55, 8 }
 0x37f   : > { %v3910_v27 = vpop.xlane.xlu1 %2110  ;;  %1537 = vperm.xlu0 %2704, %v3702_v20   ;;  %1663 = vperm.xlu1 %2727, %v3855_v34   ;;  %v1169_v8 = vadd.s32 %v1161_v49, %v1088_v35  ;;  %vm820_vm5 = vmand %vm811_vm6, %vm5180_vm2  ;;  %v1242_v40 = vsel %vm1234_vm1, 1, %v5085_v6  ;;  %v5184_v49 = vld [vmem:[#allocation43_spill] sm:$0xff]  ;;  %vm5186_vm1 = vcmp.gt.s32.totalorder %v3305_v55, 2  ;;  %vm884_vm2 = vcmp.lt.f32.partialorder %v5182_v57, %v5176_v29 }
 0x380   : > { %vm747_vm8 = vmand %vm738_vm14, %vm5181_vm4  ;;  %vm1460_vm6 = vcmp.eq.f32.partialorder %v5184_v49, %v3031_v54 }
 0x381   : > { %vm1388_vm15 = vmand %vm1379_vm9, %vm5183_vm11  ;;  %v1250_v35 = vadd.s32 %v1242_v40, %v1169_v8  ;;  %v1323_v8 = vsel %vm3949_vm7, 1, %v5085_v6  ;;  %vm1452_vm7 = vcmp.lt.f32.partialorder %v5184_v49, %v3031_v54 }
 0x382   : > { %vm828_vm12 = vmor %vm803_vm0, %vm820_vm5  ;;  %vm973_vm0 = vcmp.eq.f32.partialorder %v3430_v62, %v5176_v29 }
 0x383   : > { %v3921_v43 = vpop.xlane.xlu1 %1931  ;;  %2706 = vset.pattern.permute.xlu0 %v5115_v15  ;;  %2728 = vset.pattern.permute.xlu1 %v5123_v10  ;;  %vm755_vm14 = vmor %vm730_vm13, %vm747_vm8  ;;  %v836_v40 = vsel %vm828_vm12, 1, %v5085_v6  ;;  %vm5191_vm13 = vcmp.gt.s32.totalorder %v3305_v55, 9  ;;  %v1331_v58 = vadd.s32 %v1323_v8, %v1250_v35  ;;  %vm965_vm8 = vcmp.lt.f32.partialorder %v3430_v62, %v5176_v29 }
 0x384   : > { %1617 = vperm.xlu0 %2706, %v3702_v20   ;;  %1703 = vperm.xlu1 %2728, %v3855_v34   ;;  %vm3982_vm9 = vmand %vm892_vm10, %vm5186_vm1  ;;  %v763_v47 = vsel %vm755_vm14, 1, %v5085_v6  ;;  %vm5194_vm10 = vcmp.gt.s32.totalorder %v3305_v55, 3  ;;  %vm1135_vm14 = vcmp.eq.f32.partialorder %v3454_v5, %v5176_v29  ;;  %vm1046_vm1 = vcmp.lt.f32.partialorder %v3368_v24, %v5176_v29 }
 0x385   : > { %vm3990_vm5 = vmor %vm1371_vm3, %vm1388_vm15  ;;  %v844_v8 = vadd.s32 %v836_v40, %v763_v47  ;;  %vm1054_vm3 = vcmp.eq.f32.partialorder %v3368_v24, %v5176_v29 }
 0x386   : > { %vm4000_vm4 = vmand %vm1460_vm6, %vm5191_vm13  ;;  %v1404_v35 = vsel %vm3990_vm5, 1, %v5085_v6  ;;  %vm1127_vm5 = vcmp.lt.f32.partialorder %v3454_v5, %v5176_v29  ;;  %vm5199_vm13 = vcmp.gt.s32.totalorder %v3305_v55, 5  ;;  %v4076_v5 = vpop.permute.xlu0 %718 }
 0x387   : > { %v3938_v33 = vpop.xlane.xlu1 %1940  ;;  %vm982_vm11 = vmand %vm973_vm0, %vm5194_vm10  ;;  %v1412_v62 = vadd.s32 %v1404_v35, %v1331_v58  ;;  %vm5201_vm10 = vcmp.gt.s32.totalorder %v3305_v55, 6 }
 0x388   : > { %2708 = vset.pattern.permute.xlu0 %v5123_v10  ;;  %2729 = vset.pattern.permute.xlu1 %v5145_v21  ;;  %vm909_vm15 = vmor %vm884_vm2, %vm3982_vm9  ;;  %vm5197_vm9 = vcmp.gt.s32.totalorder %v3305_v55, 4  ;;  %vm1216_vm2 = vcmp.eq.f32.partialorder %v5198_v52, %v5176_v29 }
 0x389   : > { %1697 = vperm.xlu0 %2708, %v3702_v20   ;;  %1743 = vperm.xlu1 %2729, %v3855_v34   ;;  %vm990_vm12 = vmor %vm965_vm8, %vm982_vm11 }
 0x38a   : > { %vm1477_vm6 = vmor %vm1452_vm7, %vm4000_vm4  ;;  %v998_v58 = vsel %vm990_vm12, 1, %v5085_v6  ;;  %vm1208_vm7 = vcmp.lt.f32.partialorder %v5198_v52, %v5176_v29 }
 0x38b   : > { %v3959_v17 = vpop.xlane.xlu1 %2116  ;;  %vm1063_vm0 = vmand %vm1054_vm3, %vm5197_vm9  ;;  %v1485_v46 = vsel %vm1477_vm6, 1, %v5085_v6  ;;  %vm1297_vm3 = vcmp.eq.f32.partialorder %v3474_v56, %v5176_v29  ;;  %vm5207_vm9 = vcmp.gt.s32.totalorder %v3305_v55, 7 }
 0x38c   : > { %v4046_v40 = vadd.s32 %v1485_v46, %v1412_v62  ;;  %vm1144_vm4 = vmand %vm1135_vm14, %vm5199_vm13  ;;  %v5205_v46 = vld [vmem:[#allocation3_spill] sm:$0xff] }
 0x38d   : > { %2710 = vset.pattern.permute.xlu0 %v5129_v50  ;;  %2730 = vset.pattern.permute.xlu1 %v5129_v50  ;;  %vm1071_vm8 = vmor %vm1046_vm1, %vm1063_vm0  ;;  %vm814_vm14 = vcmp.eq.f32.partialorder %v3383_v0, %v5205_v46  ;;  %5206 = vst [vmem:[#allocation3_spill] sm:$0xff] %v4076_v5  ;;  %vm1289_vm1 = vcmp.lt.f32.partialorder %v3474_v56, %v5176_v29 }
 0x38e   : > { %1777 = vperm.xlu0 %2710, %v3702_v20   ;;  %1783 = vperm.xlu1 %2730, %v3855_v34   ;;  %vm1225_vm11 = vmand %vm1216_vm2, %vm5201_vm10  ;;  %v1079_v62 = vsel %vm1071_vm8, 1, %v5085_v6  ;;  %vm5208_vm2 = vcmp.gt.s32.totalorder %v3305_v55, 8  ;;  %vm741_vm13 = vcmp.eq.f32.partialorder %v3576_v3, %v5205_v46  ;;  %vm5211_vm8 = vcmp.gt.s32.totalorder %v3305_v55, 1 }
 0x38f   : > { %v3978_v22 = vpop.xlane.xlu1 %1946  ;;  %vm4069_vm6 = vmor %vm1208_vm7, %vm1225_vm11  ;;  %vm895_vm7 = vcmp.eq.f32.partialorder %v3593_v14, %v5205_v46 }
 0x390   : > { %5185 = vst [vmem:[#allocation2_spill] sm:$0xff] %v3978_v22  ;;  %vm1306_vm0 = vmand %vm1297_vm3, %vm5207_vm9  ;;  %vm5214_vm3 = vcmp.gt.s32.totalorder %v3305_v55, 0  ;;  %vm887_vm9 = vcmp.lt.f32.partialorder %v3593_v14, %v5205_v46 }
 0x391   : > { %vm823_vm10 = vmand %vm814_vm14, %vm5211_vm8  ;;  %vm5220_vm8 = vcmp.gt.s32.totalorder %v3305_v55, 9 }
 0x392   : > { %2712 = vset.pattern.permute.xlu0 %v5132_v32  ;;  %2731 = vset.pattern.permute.xlu1 %v5149_v16  ;;  %vm4100_vm11 = vmor %vm1289_vm1, %vm1306_vm0  ;;  %vm1459_vm1 = vcmp.eq.f32.partialorder %v3499_v63, %v5176_v29  ;;  %vm5218_vm0 = vcmp.gt.s32.totalorder %v3305_v55, 2 }
 0x393   : > { %1857 = vperm.xlu0 %2712, %v3702_v20   ;;  %v4012_v31 = vpop.xlane.xlu1 %2122  ;;  %1823 = vperm.xlu1 %2731, %v3855_v34   ;;  %v917_v20 = vsel %vm909_vm15, 1, %v5085_v6  ;;  %vm1152_vm15 = vmor %vm1127_vm5, %vm1144_vm4  ;;  %vm806_vm4 = vcmp.lt.f32.partialorder %v3383_v0, %v5205_v46  ;;  %v4121_v0 = vpop.permute.xlu0 %873 }
 0x394   : > { %5195 = vst [vmem:[#allocation86_spill] sm:$0xff] %v4012_v31  ;;  %v925_v60 = vadd.s32 %v917_v20, %v844_v8  ;;  %v5202_v8 = vld [vmem:[#allocation57_spill] sm:$0xff]  ;;  %v1160_v52 = vsel %vm1152_vm15, 1, %v5085_v6  ;;  %vm733_vm15 = vcmp.lt.f32.partialorder %v3576_v3, %v5205_v46  ;;  %vm4115_vm14 = vmor %vm806_vm4, %vm823_vm10 }
 0x395   : > { %vm1378_vm12 = vcmp.eq.f32.partialorder %v5202_v8, %v5176_v29  ;;  %5217 = vst [vmem:[#allocation89_spill] sm:$0xff] %v4121_v0  ;;  %vm4143_vm10 = vmand %vm1459_vm1, %vm5220_vm8  ;;  %vm1057_vm1 = vcmp.eq.f32.partialorder %v3609_v39, %v5205_v46 }
 0x396   : > { %vm4088_vm5 = vmand %vm1378_vm12, %vm5208_vm2  ;;  %vm1370_vm2 = vcmp.lt.f32.partialorder %v5202_v8, %v5176_v29 }
 0x397   : > { %2714 = vset.pattern.permute.xlu0 %v5165_v59  ;;  %2732 = vset.pattern.permute.xlu1 %v5132_v32  ;;  %vm750_vm12 = vmand %vm741_vm13, %vm5214_vm3 }
 0x398   : > { %1546 = vperm.xlu0 %2714, %v3780_v38   ;;  %v4035_v47 = vpop.xlane.xlu1 %1952  ;;  %1863 = vperm.xlu1 %2732, %v3855_v34   ;;  %v1006_v34 = vadd.s32 %v998_v58, %v925_v60  ;;  %v1322_v58 = vsel %vm4100_vm11, 1, %v5085_v6  ;;  %vm758_vm13 = vmor %vm733_vm15, %vm750_vm12  ;;  %vm5223_vm15 = vcmp.gt.s32.totalorder %v3305_v55, 3 }
 0x399   : > { %5196 = vst [vmem:[#allocation87_spill] sm:$0xff] %v4035_v47  ;;  %vm1395_vm11 = vmor %vm1370_vm2, %vm4088_vm5  ;;  %v766_v14 = vsel %vm758_vm13, 1, %v5085_v6 }
 0x39a   : > { %v1087_v20 = vadd.s32 %v1079_v62, %v1006_v34 }
 0x39c   : > { %2716 = vset.pattern.permute.xlu0 %v5115_v15  ;;  %2733 = vset.pattern.permute.xlu1 %v5085_v6  ;;  %v4054_v35 = vpop.xlane.xlu1 %2128  ;;  %v1168_v62 = vadd.s32 %v1160_v52, %v1087_v20  ;;  %v1241_v52 = vsel %vm4069_vm6, 1, %v5085_v6  ;;  %vm904_vm6 = vmand %vm895_vm7, %vm5218_vm0  ;;  %vm1451_vm7 = vcmp.lt.f32.partialorder %v3499_v63, %v5176_v29  ;;  %v4162_v63 = vpop.permute.xlu0 %1035  ;;  %vm1049_vm0 = vcmp.lt.f32.partialorder %v3609_v39, %v5205_v46  ;;  %v5228_v20 = vld [vmem:[#allocation63_spill] sm:$0xff] }
 0x39d   : > { %5200 = vst [vmem:[#allocation88_spill] sm:$0xff] %v4054_v35  ;;  %1626 = vperm.xlu0 %2716, %v3780_v38   ;;  %1512 = vperm.xlu1 %2733, %v4046_v40   ;;  %vm912_vm3 = vmor %vm887_vm9, %vm904_vm6  ;;  %vm5227_vm6 = vcmp.gt.s32.totalorder %v3305_v55, 4  ;;  %vm1138_vm13 = vcmp.eq.f32.partialorder %v5228_v20, %v5205_v46  ;;  %vm1130_vm8 = vcmp.lt.f32.partialorder %v5228_v20, %v5205_v46 }
 0x39e   : > { %v1249_v57 = vadd.s32 %v1241_v52, %v1168_v62  ;;  %v5219_v62 = vld [vmem:[#allocation61_spill] sm:$0xff]  ;;  %5226 = vst [vmem:[#allocation90_spill] sm:$0xff] %v4162_v63  ;;  %vm1476_vm9 = vmor %vm1451_vm7, %vm4143_vm10  ;;  %vm5230_vm10 = vcmp.gt.s32.totalorder %v3305_v55, 5 }
 0x39f   : > { %vm976_vm4 = vcmp.eq.f32.partialorder %v5219_v62, %v5205_v46  ;;  %vm968_vm5 = vcmp.lt.f32.partialorder %v5219_v62, %v5205_v46  ;;  %v1484_v52 = vsel %vm1476_vm9, 1, %v5085_v6  ;;  %vm1147_vm7 = vmand %vm1138_vm13, %vm5230_vm10  ;;  %vm1292_vm9 = vcmp.lt.f32.partialorder %v3444_v13, %v5205_v46 }
 0x3a0   : > { %v4067_v60 = vpop.permute.xlu1 %1540  ;;  %v1330_v24 = vadd.s32 %v1322_v58, %v1249_v57  ;;  %vm4158_vm12 = vmand %vm976_vm4, %vm5223_vm15  ;;  %v839_v57 = vsel %vm4115_vm14, 1, %v5085_v6  ;;  %v1403_v58 = vsel %vm1395_vm11, 1, %v5085_v6  ;;  %vm1300_vm11 = vcmp.eq.f32.partialorder %v3444_v13, %v5205_v46 }
 0x3a1   : > { %2718 = vset.pattern.permute.xlu0 %v5123_v10  ;;  %2735 = vset.pattern.permute.xlu1 %v5138_v30  ;;  %v847_v8 = vadd.s32 %v839_v57, %v766_v14  ;;  %vm1066_vm14 = vmand %vm1057_vm1, %vm5227_vm6  ;;  %vm5231_vm1 = vcmp.gt.s32.totalorder %v3305_v55, 6 }
 0x3a2   : > { %1706 = vperm.xlu0 %2718, %v3780_v38   ;;  %1592 = vperm.xlu1 %2735, %v4046_v40   ;;  %v1411_v35 = vadd.s32 %v1403_v58, %v1330_v24  ;;  %vm993_vm2 = vmor %vm968_vm5, %vm4158_vm12  ;;  %v4190_v24 = vpop.permute.xlu0 %1197  ;;  %vm1211_vm12 = vcmp.lt.f32.partialorder %v3638_v9, %v5205_v46 }
 0x3a3   : > { %5229 = vst [vmem:[#allocation91_spill] sm:$0xff] %v4190_v24  ;;  %vm1074_vm4 = vmor %vm1049_vm0, %vm1066_vm14  ;;  %v1001_v58 = vsel %vm993_vm2, 1, %v5085_v6  ;;  %vm5232_vm0 = vcmp.gt.s32.totalorder %v3305_v55, 7 }
 0x3a4   : > { %v4098_v56 = vpop.permute.xlu1 %1620  ;;  %v4199_v3 = vadd.s32 %v1484_v52, %v1411_v35  ;;  %vm1155_vm15 = vmor %vm1130_vm8, %vm1147_vm7  ;;  %vm1381_vm8 = vcmp.eq.f32.partialorder %v3664_v25, %v5205_v46  ;;  %vm5237_vm7 = vcmp.gt.s32.totalorder %v3305_v55, 1 }
 0x3a5   : > { %vm1309_vm6 = vmand %vm1300_vm11, %vm5232_vm0  ;;  %v1163_v13 = vsel %vm1155_vm15, 1, %v5085_v6  ;;  %vm5238_vm15 = vcmp.gt.s32.totalorder %v3305_v55, 0  ;;  %vm1373_vm0 = vcmp.lt.f32.partialorder %v3664_v25, %v5205_v46 }
 0x3a6   : > { %2720 = vset.pattern.permute.xlu0 %v5129_v50  ;;  %2737 = vset.pattern.permute.xlu1 %v5141_v26 }
 0x3a7   : > { %1786 = vperm.xlu0 %2720, %v3780_v38   ;;  %1672 = vperm.xlu1 %2737, %v4046_v40  }
 0x3a9   : > { %v4137_v49 = vpop.permute.xlu1 %1700 }
 0x3ab   : > { %2722 = vset.pattern.permute.xlu0 %v5132_v32  ;;  %2739 = vset.pattern.permute.xlu1 %v5145_v21 }
 0x3ac   : > { %1866 = vperm.xlu0 %2722, %v3780_v38   ;;  %1752 = vperm.xlu1 %2739, %v4046_v40   ;;  %v920_v38 = vsel %vm912_vm3, 1, %v5085_v6  ;;  %vm1219_vm3 = vcmp.eq.f32.partialorder %v3638_v9, %v5205_v46 }
 0x3ad   : > { %v928_v14 = vadd.s32 %v920_v38, %v847_v8  ;;  %v1082_v38 = vsel %vm1074_vm4, 1, %v5085_v6  ;;  %vm1228_vm5 = vmand %vm1219_vm3, %vm5231_vm1 }
 0x3ae   : > { %v4174_v34 = vpop.permute.xlu1 %1780  ;;  %vm1236_vm13 = vmor %vm1211_vm12, %vm1228_vm5  ;;  %vm5239_vm5 = vcmp.gt.s32.totalorder %v3305_v55, 8 }
 0x3af   : > { %v1009_v8 = vadd.s32 %v1001_v58, %v928_v14  ;;  %v4220_v14 = vpop.permute.xlu0 %1359  ;;  %v5234_v58 = vld [vmem:[#allocation4_spill] sm:$0xff]  ;;  %vm4231_vm4 = vmor %vm1292_vm9, %vm1309_vm6  ;;  %v1244_v39 = vsel %vm1236_vm13, 1, %v5085_v6  ;;  %vm5240_vm13 = vcmp.gt.s32.totalorder %v3305_v55, 2 }
 0x3b0   : > { %2734 = vset.pattern.permute.xlu0 %v5165_v59  ;;  %2741 = vset.pattern.permute.xlu1 %v5149_v16  ;;  %5233 = vst [vmem:[#allocation92_spill] sm:$0xff] %v4220_v14  ;;  %vm813_vm14 = vcmp.eq.f32.partialorder %v3682_v28, %v5234_v58  ;;  %vm740_vm2 = vcmp.eq.f32.partialorder %v4076_v5, %v5234_v58  ;;  %vm1390_vm9 = vmand %vm1381_vm8, %vm5239_vm5  ;;  %v1325_v25 = vsel %vm4231_vm4, 1, %v5085_v6 }
 0x3b1   : > { %1552 = vperm.xlu0 %2734, %v4046_v40   ;;  %1832 = vperm.xlu1 %2741, %v4046_v40   ;;  %v1090_v52 = vadd.s32 %v1082_v38, %v1009_v8  ;;  %vm805_vm10 = vcmp.lt.f32.partialorder %v3682_v28, %v5234_v58  ;;  %vm822_vm3 = vmand %vm813_vm14, %vm5237_vm7  ;;  %vm732_vm11 = vcmp.lt.f32.partialorder %v4076_v5, %v5234_v58 }
 0x3b2   : > { %vm749_vm12 = vmand %vm740_vm2, %vm5238_vm15  ;;  %vm894_vm1 = vcmp.eq.f32.partialorder %v4121_v0, %v5234_v58  ;;  %vm1462_vm14 = vcmp.eq.f32.partialorder %v3459_v4, %v5205_v46  ;;  %vm975_vm7 = vcmp.eq.f32.partialorder %v3700_v19, %v5234_v58  ;;  %vm1454_vm4 = vcmp.lt.f32.partialorder %v3459_v4, %v5205_v46 }
 0x3b3   : > { %v4192_v57 = vpop.permute.xlu1 %1860  ;;  %v1171_v38 = vadd.s32 %v1163_v13, %v1090_v52  ;;  %v4241_v9 = vpop.xlane.xlu0 %1934  ;;  %vm830_vm6 = vmor %vm805_vm10, %vm822_vm3  ;;  %vm886_vm10 = vcmp.lt.f32.partialorder %v4121_v0, %v5234_v58  ;;  %v1962_v0 = vmin.f32 %v3053_v1, 20.0 }
 0x3b4   : > { %vm757_vm2 = vmor %vm732_vm11, %vm749_vm12  ;;  %vm5245_vm11 = vcmp.gt.s32.totalorder %v3305_v55, 9  ;;  %vm967_vm12 = vcmp.lt.f32.partialorder %v3700_v19, %v5234_v58 }
 0x3b5   : > { %2736 = vset.pattern.permute.xlu0 %v5115_v15  ;;  %2744 = vset.pattern.permute.xlu1 %v5165_v59  ;;  %v1252_v13 = vadd.s32 %v1244_v39, %v1171_v38  ;;  %vm4264_vm8 = vmand %vm894_vm1, %vm5240_vm13  ;;  %v838_v39 = vsel %vm830_vm6, 1, %v5085_v6  ;;  %v765_v47 = vsel %vm757_vm2, 1, %v5085_v6  ;;  %vm5248_vm1 = vcmp.gt.s32.totalorder %v3305_v55, 3 }
 0x3b6   : > { %1632 = vperm.xlu0 %2736, %v4046_v40   ;;  %1549 = vperm.xlu1 %2744, %v4199_v3   ;;  %vm4274_vm3 = vmor %vm1373_vm0, %vm1390_vm9  ;;  %v846_v8 = vadd.s32 %v838_v39, %v765_v47  ;;  %vm1056_vm0 = vcmp.eq.f32.partialorder %v4162_v63, %v5234_v58  ;;  %vm1137_vm2 = vcmp.eq.f32.partialorder %v3713_v18, %v5234_v58 }
 0x3b7   : > { %v4279_v38 = vpop.xlane.xlu0 %2107  ;;  %vm4286_vm15 = vmand %vm1462_vm14, %vm5245_vm11  ;;  %v1333_v31 = vadd.s32 %v1325_v25, %v1252_v13  ;;  %v1406_v25 = vsel %vm4274_vm3, 1, %v5085_v6  ;;  %vm1048_vm13 = vcmp.lt.f32.partialorder %v4162_v63, %v5234_v58  ;;  %vm5250_vm3 = vcmp.gt.s32.totalorder %v3305_v55, 5 }
 0x3b8   : > { %v4214_v35 = vpop.permute.xlu1 %1497  ;;  %vm984_vm5 = vmand %vm975_vm7, %vm5248_vm1 }
 0x3b9   : > { %vm911_vm9 = vmor %vm886_vm10, %vm4264_vm8  ;;  %v1414_v52 = vadd.s32 %v1406_v25, %v1333_v31  ;;  %vm5249_vm8 = vcmp.gt.s32.totalorder %v3305_v55, 4  ;;  %vm1129_vm10 = vcmp.lt.f32.partialorder %v3713_v18, %v5234_v58 }
 0x3ba   : > { %2738 = vset.pattern.permute.xlu0 %v5123_v10  ;;  %2746 = vset.pattern.permute.xlu1 %v5115_v15  ;;  %vm992_vm6 = vmor %vm967_vm12, %vm984_vm5  ;;  %vm1218_vm12 = vcmp.eq.f32.partialorder %v4190_v24, %v5234_v58  ;;  %vm1299_vm5 = vcmp.eq.f32.partialorder %v3728_v44, %v5234_v58 }
 0x3bb   : > { %1712 = vperm.xlu0 %2738, %v4046_v40   ;;  %1629 = vperm.xlu1 %2746, %v4199_v3   ;;  %v4309_v13 = vpop.xlane.xlu0 %1937  ;;  %vm1479_vm14 = vmor %vm1454_vm4, %vm4286_vm15  ;;  %v1000_v31 = vsel %vm992_vm6, 1, %v5085_v6  ;;  %vm1210_vm4 = vcmp.lt.f32.partialorder %v4190_v24, %v5234_v58  ;;  %vm1291_vm6 = vcmp.lt.f32.partialorder %v3728_v44, %v5234_v58 }
 0x3bc   : > { %vm1065_vm7 = vmand %vm1056_vm0, %vm5249_vm8  ;;  %v1487_v47 = vsel %vm1479_vm14, 1, %v5085_v6  ;;  %vm5253_vm14 = vcmp.gt.s32.totalorder %v3305_v55, 7  ;;  %vm1380_vm8 = vcmp.eq.f32.partialorder %v4220_v14, %v5234_v58 }
 0x3bd   : > { %v4243_v20 = vpop.permute.xlu1 %1577  ;;  %v4332_v39 = vadd.s32 %v1487_v47, %v1414_v52  ;;  %vm1146_vm11 = vmand %vm1137_vm2, %vm5250_vm3  ;;  %vm1372_vm3 = vcmp.lt.f32.partialorder %v4220_v14, %v5234_v58  ;;  %v1965_v14 = vmin.f32 %v3081_v2, 20.0 }
 0x3be   : > { %vm1073_vm15 = vmor %vm1048_vm13, %vm1065_vm7 }
 0x3bf   : > { %2740 = vset.pattern.permute.xlu0 %v5129_v50  ;;  %2748 = vset.pattern.permute.xlu1 %v5123_v10  ;;  %v4338_v25 = vpop.xlane.xlu0 %2113  ;;  %vm1154_vm1 = vmor %vm1129_vm10, %vm1146_vm11  ;;  %vm1461_vm10 = vcmp.eq.f32.partialorder %v3742_v23, %v5234_v58  ;;  %vm5255_vm11 = vcmp.gt.s32.totalorder %v3305_v55, 8 }
 0x3c0   : > { %1792 = vperm.xlu0 %2740, %v4046_v40   ;;  %1709 = vperm.xlu1 %2748, %v4199_v3   ;;  %vm1308_vm2 = vmand %vm1299_vm5, %vm5253_vm14  ;;  %vm1561_vm14 = vcmp.eq.s32.totalorder %v3305_v55, %v4067_v60  ;;  %v1966_v60 = vmin.f32 %v5176_v29, 20.0 }
 0x3c1   : > { %vm1316_vm7 = vmor %vm1291_vm6, %vm1308_vm2 }
 0x3c2   : > { %v4270_v28 = vpop.permute.xlu1 %1657  ;;  %v1978_v22 = vmul.f32 1.442695, %v1966_v60 }
 0x3c3   : > { %v4347_v52 = vpop.xlane.xlu0 %1943 }
 0x3c4   : > { %2742 = vset.pattern.permute.xlu0 %v5132_v32  ;;  %2750 = vset.pattern.permute.xlu1 %v5129_v50  ;;  %5251 = vst [vmem:[#allocation4_spill] sm:$0xff] %v4347_v52  ;;  %v1976_v52 = vmul.f32 1.442695, %v1965_v14 }
 0x3c5   : > { %1872 = vperm.xlu0 %2742, %v4046_v40   ;;  %1789 = vperm.xlu1 %2750, %v4199_v3   ;;  %v919_v40 = vsel %vm911_vm9, 1, %v5085_v6  ;;  %vm5252_vm9 = vcmp.gt.s32.totalorder %v3305_v55, 6 }
 0x3c6   : > { %v927_v5 = vadd.s32 %v919_v40, %v846_v8  ;;  %v1081_v40 = vsel %vm1073_vm15, 1, %v5085_v6  ;;  %vm1227_vm0 = vmand %vm1218_vm12, %vm5252_vm9  ;;  %vm1453_vm12 = vcmp.lt.f32.partialorder %v3742_v23, %v5234_v58 }
 0x3c7   : > { %v4311_v19 = vpop.permute.xlu1 %1737  ;;  %vm1235_vm13 = vmor %vm1210_vm4, %vm1227_vm0  ;;  %v4369_v24 = vpop.xlane.xlu0 %2119 }
 0x3c8   : > { %v1008_v8 = vadd.s32 %v1000_v31, %v927_v5  ;;  %v1162_v5 = vsel %vm1154_vm1, 1, %v5085_v6  ;;  %v1963_v31 = vmin.f32 %v3017_v42, 20.0  ;;  %5254 = vst [vmem:[#allocation93_spill] sm:$0xff] %v4369_v24  ;;  %v1243_v44 = vsel %vm1235_vm13, 1, %v5085_v6  ;;  %vm1389_vm15 = vmand %vm1380_vm8, %vm5255_vm11 }
 0x3c9   : > { %2743 = vset.pattern.permute.xlu0 %v5085_v6  ;;  %2752 = vset.pattern.permute.xlu1 %v5132_v32  ;;  %vm5258_vm1 = vcmp.gt.s32.totalorder %v3305_v55, 9  ;;  %vm1397_vm4 = vmor %vm1372_vm3, %vm1389_vm15  ;;  %vm1641_vm13 = vcmp.eq.s32.totalorder %v3305_v55, %v4098_v56  ;;  %vm1721_vm8 = vcmp.eq.s32.totalorder %v3305_v55, %v4137_v49  ;;  %v1968_v56 = vmin.f32 %v5234_v58, 20.0 }
 0x3ca   : > { %1509 = vperm.xlu0 %2743, %v4199_v3   ;;  %1869 = vperm.xlu1 %2752, %v4199_v3   ;;  %v1089_v18 = vadd.s32 %v1081_v40, %v1008_v8  ;;  %v1972_v63 = vmul.f32 1.442695, %v1963_v31  ;;  %vm1470_vm5 = vmand %vm1461_vm10, %vm5258_vm1  ;;  %v1405_v23 = vsel %vm1397_vm4, 1, %v5085_v6  ;;  %vm1801_vm10 = vcmp.eq.s32.totalorder %v3305_v55, %v4174_v34 }
 0x3cb   : > { %vm1478_vm9 = vmor %vm1453_vm12, %vm1470_vm5  ;;  %vm1881_vm11 = vcmp.eq.s32.totalorder %v3305_v55, %v4192_v57  ;;  %vm1955_vm15 = vcmp.gt.f32.partialorder %v3017_v42, 20.0  ;;  %vm5269_vm12 = vcmask 80896   ;;  %vm1520_vm1 = vcmp.eq.s32.totalorder %v3305_v55, %v4214_v35 }
 0x3cc   : > { %v4330_v62 = vpop.permute.xlu1 %1817  ;;  %v1170_v8 = vadd.s32 %v1162_v5, %v1089_v18  ;;  %v1324_v5 = vsel %vm1316_vm7, 1, %v5085_v6  ;;  %2802 = vpow2.f32 %v1972_v63  ;;  %vm1954_vm4 = vcmp.gt.f32.partialorder %v3053_v1, 20.0 }
 0x3ce   : > { %2745 = vset.pattern.permute.xlu0 %v5138_v30  ;;  %2753 = vset.pattern.permute.xlu1 %v5085_v6  ;;  %v1251_v18 = vadd.s32 %v1243_v44, %v1170_v8  ;;  %v1970_v44 = vmul.f32 1.442695, %v1962_v0 }
 0x3cf   : > { %1589 = vperm.xlu0 %2745, %v4199_v3   ;;  %1518 = vperm.xlu1 %2753, %v4332_v39  }
 0x3d0   : > { %v1332_v8 = vadd.s32 %v1324_v5, %v1251_v18  ;;  %2804 = vpow2.f32 %v1970_v44  ;;  %v1486_v18 = vsel %vm1478_vm9, 1, %v5085_v6  ;;  %v1964_v44 = vmin.f32 %v3022_v48, 20.0 }
 0x3d1   : > { %v4349_v47 = vpop.permute.xlu1 %1506  ;;  %2806 = vpow2.f32 %v1976_v52  ;;  %v5263_v52 = vld [vmem:[#allocation5_spill] sm:$0xff]  ;;  %vm1957_vm9 = vcmp.gt.f32.partialorder %v3081_v2, 20.0 }
 0x3d2   : > { %v1413_v0 = vadd.s32 %v1405_v23, %v1332_v8  ;;  %v1974_v14 = vmul.f32 1.442695, %v1964_v44 }
 0x3d3   : > { %2747 = vset.pattern.permute.xlu0 %v5141_v26  ;;  %2755 = vset.pattern.permute.xlu1 %v5138_v30 }
 0x3d4   : > { %1669 = vperm.xlu0 %2747, %v4199_v3   ;;  %1598 = vperm.xlu1 %2755, %v4332_v39  }
 0x3d6   : > { %v4367_v40 = vpop.permute.xlu1 %1586 }
 0x3d8   : > { %2749 = vset.pattern.permute.xlu0 %v5145_v21  ;;  %2757 = vset.pattern.permute.xlu1 %v5141_v26 }
 0x3d9   : > { %1749 = vperm.xlu0 %2749, %v4199_v3   ;;  %1678 = vperm.xlu1 %2757, %v4332_v39   ;;  %v4386_v31 = vpop.xlane.xlu0 %1949 }
 0x3da   : > { %5256 = vst [vmem:[#allocation94_spill] sm:$0xff] %v4386_v31 }
 0x3db   : > { %v4388_v4 = vpop.permute.xlu1 %1666 }
 0x3dc   : > { %5257 = vst [vmem:[#allocation95_spill] sm:$0xff] %v4388_v4  ;;  %v4411_v4 = vadd.s32 %v1486_v18, %v1413_v0  ;;  %v5262_v18 = vld [vmem:[#allocation6_spill] sm:$0xff] }
 0x3dd   : > { %2751 = vset.pattern.permute.xlu0 %v5149_v16  ;;  %2759 = vset.pattern.permute.xlu1 %v5145_v21  ;;  %v4402_v31 = vpop.xlane.xlu0 %2125 }
 0x3de   : > { %1829 = vperm.xlu0 %2751, %v4199_v3   ;;  %1758 = vperm.xlu1 %2759, %v4332_v39   ;;  %5260 = vst [vmem:[#allocation97_spill] sm:$0xff] %v4402_v31 }
 0x3e0   : > { %v4399_v63 = vpop.permute.xlu1 %1746 }
 0x3e1   : > { %5259 = vst [vmem:[#allocation96_spill] sm:$0xff] %v4399_v63  ;;  %v2803_v63 = vpop.eup %2802 }
 0x3e2   : > { %2754 = vset.pattern.permute.xlu0 %v5165_v59  ;;  %2761 = vset.pattern.permute.xlu1 %v5149_v16  ;;  %v1987_v23 = vadd.f32 1.0, %v2803_v63  ;;  %v2805_v0 = vpop.eup %2804 }
 0x3e3   : > { %1558 = vperm.xlu0 %2754, %v4332_v39   ;;  %1838 = vperm.xlu1 %2761, %v4332_v39   ;;  %v2807_v24 = vpop.eup %2806 }
 0x3e4   : > { %2808 = vlog2.f32 %v1987_v23 }
 0x3e5   : > { %v4409_v3 = vpop.permute.xlu1 %1826  ;;  %v1501_v5 = vpop.permute.xlu0 %1500  ;;  %2810 = vpow2.f32 %v1974_v14  ;;  %v1989_v14 = vadd.f32 1.0, %v2807_v24 }
 0x3e6   : > { %5261 = vst [vmem:[#allocation98_spill] sm:$0xff] %v4409_v3  ;;  %vm1521_vm0 = vcmp.eq.s32.totalorder %v3305_v55, %v1501_v5  ;;  %v5264_v5 = vld [vmem:[#allocation8_spill] sm:$0xff] }
 0x3e7   : > { %2756 = vset.pattern.permute.xlu0 %v5115_v15  ;;  %2764 = vset.pattern.permute.xlu1 %v5165_v59  ;;  %v1529_v31 = vsel %vm1521_vm0, %v5262_v18, 0.0  ;;  %v1986_v59 = vadd.f32 1.0, %v2805_v0  ;;  %v5266_v0 = vld [vmem:[#allocation9_spill] sm:$0xff] }
 0x3e8   : > { %1638 = vperm.xlu0 %2756, %v4332_v39   ;;  %1555 = vperm.xlu1 %2764, %v4411_v4   ;;  %v1569_v63 = vsel %vm1561_vm14, %v5263_v52, %v1529_v31  ;;  %v5265_v31 = vld [vmem:[#allocation7_spill] sm:$0xff] }
 0x3e9   : > { %2812 = vlog2.f32 %v1986_v59  ;;  %v5267_v59 = vld [vmem:[#allocation11_spill] sm:$0xff] }
 0x3ea   : > { %v4419_v8 = vpop.permute.xlu1 %1503  ;;  %v1581_v3 = vpop.permute.xlu0 %1580  ;;  %2814 = vlog2.f32 %v1989_v14 }
 0x3eb   : > { %vm1601_vm6 = vcmp.eq.s32.totalorder %v3305_v55, %v1581_v3 }
 0x3ec   : > { %2758 = vset.pattern.permute.xlu0 %v5123_v10  ;;  %2766 = vset.pattern.permute.xlu1 %v5115_v15  ;;  %v1609_v44 = vsel %vm1601_vm6, %v5264_v5, %v1569_v63  ;;  %v1967_v15 = vmin.f32 %v3031_v54, 20.0  ;;  %vm1600_vm6 = vcmp.eq.s32.totalorder %v3305_v55, %v4243_v20  ;;  %v5274_v20 = vld [vmem:[#allocation15_spill] sm:$0xff] }
 0x3ed   : > { %1718 = vperm.xlu0 %2758, %v4332_v39   ;;  %1635 = vperm.xlu1 %2766, %v4411_v4   ;;  %v1649_v23 = vsel %vm1641_vm13, %v5265_v31, %v1609_v44  ;;  %v1982_v31 = vmul.f32 1.442695, %v1968_v56  ;;  %v5270_v56 = vld [vmem:[#allocation16_spill] sm:$0xff]  ;;  %vm1522_vm13 = vcmp.eq.s32.totalorder %v3305_v55, %v4419_v8 }
 0x3ee   : > { %v1980_v63 = vmul.f32 1.442695, %v1967_v15  ;;  %v2809_v24 = vpop.eup %2808  ;;  %v1528_v35 = vsel %vm1520_vm1, %v5270_v56, 0.0  ;;  %vm1840_vm1 = vcmp.eq.s32.totalorder %v3305_v55, %v4330_v62 }
 0x3ef   : > { %v4431_v18 = vpop.permute.xlu1 %1543  ;;  %v1661_v3 = vpop.permute.xlu0 %1660  ;;  %v1997_v60 = vmul.f32 0.6931472, %v2809_v24 }
 0x3f0   : > { %vm1681_vm2 = vcmp.eq.s32.totalorder %v3305_v55, %v1661_v3  ;;  %v2811_v49 = vpop.eup %2810  ;;  %2816 = vpow2.f32 %v1980_v63 }
 0x3f1   : > { %2760 = vset.pattern.permute.xlu0 %v5129_v50  ;;  %2768 = vset.pattern.permute.xlu1 %v5123_v10  ;;  %v1689_v52 = vsel %vm1681_vm2, %v5266_v0, %v1649_v23  ;;  %2818 = vpow2.f32 %v1978_v22  ;;  %v1988_v23 = vadd.f32 1.0, %v2811_v49  ;;  %v4480_v0 = vsel %vm1955_vm15, %v3017_v42, %v1997_v60  ;;  %v5271_v49 = vld [vmem:[#allocation18_spill] sm:$0xff] }
 0x3f2   : > { %1798 = vperm.xlu0 %2760, %v4332_v39   ;;  %1715 = vperm.xlu1 %2768, %v4411_v4   ;;  %v1729_v10 = vsel %vm1721_vm8, %v3164_v7, %v1689_v52  ;;  %2820 = vpow2.f32 %v1982_v31  ;;  %v2854_v52 = vmov 19   ;;  %vm1680_vm2 = vcmp.eq.s32.totalorder %v3305_v55, %v4270_v28 }
 0x3f3   : > { %v2813_v34 = vpop.eup %2812  ;;  %2822 = vlog2.f32 %v1988_v23  ;;  %vm1760_vm8 = vcmp.eq.s32.totalorder %v3305_v55, %v4311_v19  ;;  %v1530_v19 = vsel %vm1522_vm13, %v3276_v36, 0.0  ;;  %vm1959_vm13 = vcmp.gt.f32.partialorder %v3031_v54, 20.0 }
 0x3f4   : > { %v4444_v5 = vpop.permute.xlu1 %1583  ;;  %v1741_v3 = vpop.permute.xlu0 %1740  ;;  %v1995_v57 = vmul.f32 0.6931472, %v2813_v34 }
 0x3f5   : > { %vm1761_vm7 = vcmp.eq.s32.totalorder %v3305_v55, %v1741_v3  ;;  %v2815_v42 = vpop.eup %2814 }
 0x3f6   : > { %2762 = vset.pattern.permute.xlu0 %v5132_v32  ;;  %2770 = vset.pattern.permute.xlu1 %v5129_v50  ;;  %v1769_v44 = vsel %vm1761_vm7, %v5267_v59, %v1729_v10  ;;  %v5268_v50 = vld [vmem:[#allocation10_spill] sm:$0xff]  ;;  %v4495_v3 = vsel %vm1954_vm4, %v3053_v1, %v1995_v57  ;;  %v2001_v59 = vmul.f32 0.6931472, %v2815_v42  ;;  %v2855_v1 = vmov 20  }
 0x3f7   : > { %1878 = vperm.xlu0 %2762, %v4332_v39   ;;  %1795 = vperm.xlu1 %2770, %v4411_v4   ;;  %v1809_v39 = vsel %vm1801_vm10, %v5268_v50, %v1769_v44  ;;  %v5275_v42 = vld [vmem:[#allocation22_spill] sm:$0xff]  ;;  %vm1562_vm7 = vcmp.eq.s32.totalorder %v3305_v55, %v4431_v18  ;;  %v5277_v18 = vld [vmem:[#allocation25_spill] sm:$0xff] }
 0x3f8   : > { %v2013_v23 = vsel %vm1957_vm9, %v3081_v2, %v2001_v59 }
 0x3f9   : > { %v4458_v7 = vpop.permute.xlu1 %1623  ;;  %v1821_v15 = vpop.permute.xlu0 %1820  ;;  %v2133_v28 = vsub.f32 %v2013_v23, %v3959_v17 }
 0x3fa   : > { %vm1841_vm3 = vcmp.eq.s32.totalorder %v3305_v55, %v1821_v15  ;;  %v2817_v63 = vpop.eup %2816  ;;  %vm1642_vm15 = vcmp.eq.s32.totalorder %v3305_v55, %v4458_v7 }
 0x3fb   : > { %v1849_v22 = vsel %vm1841_vm3, %v3182_v12, %v1809_v39  ;;  %2763 = vset.pattern.permute.xlu0 %v5085_v6  ;;  %2772 = vset.pattern.permute.xlu1 %v5132_v32  ;;  %v2019_v32 = vsub.f32 %v4480_v0, %v4241_v9  ;;  %v2819_v9 = vpop.eup %2818  ;;  %v1991_v60 = vadd.f32 1.0, %v2817_v63  ;;  %vm1956_vm3 = vcmp.gt.f32.partialorder %v3022_v48, 20.0 }
 0x3fc   : > { %v1889_v14 = vsel %vm1881_vm11, %v3180_v11, %v1849_v22  ;;  %1875 = vperm.xlu1 %2772, %v4411_v4   ;;  %1515 = vperm.xlu0 %2763, %v4411_v4   ;;  %v1969_v11 = vmin.f32 %v5205_v46, 20.0  ;;  %v1990_v31 = vadd.f32 1.0, %v2819_v9  ;;  %v2821_v39 = vpop.eup %2820  ;;  %v5273_v22 = vld [vmem:[#allocation20_spill] sm:$0xff]  ;;  %vm1602_vm11 = vcmp.eq.s32.totalorder %v3305_v55, %v4444_v5 }
 0x3fd   : > { %2187 = vst.msk [vmem:[%s4464_s27 + $0x8] sm:$0xff] %vm5269_vm12, %v1889_v14  ;;  %v1992_v2 = vadd.f32 1.0, %v2821_v39  ;;  %v5283_v39 = vld [vmem:[#allocation44_spill] sm:$0xff] }
 0x3fe   : > { %v4482_v12 = vpop.permute.xlu1 %1663  ;;  %v1538_v6 = vpop.permute.xlu0 %1537  ;;  %v1984_v44 = vmul.f32 1.442695, %v1969_v11 }
 0x3ff   : > { %vm1560_vm5 = vcmp.eq.s32.totalorder %v3305_v55, %v1538_v6  ;;  %v2823_v6 = vpop.eup %2822  ;;  %vm1682_vm12 = vcmp.eq.s32.totalorder %v3305_v55, %v4482_v12 }
 0x400   : > { %2773 = vset.pattern.permute.xlu1 %v2854_v52  ;;  %2765 = vset.pattern.permute.xlu0 %v5138_v30  ;;  %v2130_v30 = vsub.f32 %v4495_v3, %v4279_v38  ;;  %v1568_v15 = vsel %vm1560_vm5, %v5271_v49, %v1528_v35  ;;  %v5272_v38 = vld [vmem:[#allocation13_spill] sm:$0xff]  ;;  %2824 = vpow2.f32 %v1984_v44  ;;  %v1999_v11 = vmul.f32 0.6931472, %v2823_v6  ;;  %v5281_v49 = vld [vmem:[#allocation42_spill] sm:$0xff] }
 0x401   : > { %1595 = vperm.xlu0 %2765, %v4411_v4   ;;  %2033 = vperm.xlu1 %2773, %v2019_v32   ;;  %v1608_v50 = vsel %vm1600_vm6, %v5272_v38, %v1568_v15  ;;  %v2021_v32 = vsub.f32 %v2013_v23, %v3938_v33  ;;  %2826 = vlog2.f32 %v1991_v60  ;;  %vm1523_vm6 = vcmp.eq.s32.totalorder %v3305_v55, %v4349_v47  ;;  %v5282_v38 = vld [vmem:[#allocation24_spill] sm:$0xff]  ;;  %v5285_v23 = vld [vmem:[#allocation29_spill] sm:$0xff]  ;;  %v5287_v47 = vld [vmem:[#allocation26_spill] sm:$0xff] }
 0x402   : > { %2828 = vlog2.f32 %v1990_v31  ;;  %v2012_v17 = vsel %vm1956_vm3, %v3022_v48, %v1999_v11  ;;  %v2131_v48 = vsub.f32 %v4480_v0, %v3910_v27  ;;  %v5278_v27 = vld [vmem:[#allocation19_spill] sm:$0xff]  ;;  %vm1603_vm3 = vcmp.eq.s32.totalorder %v3305_v55, %v4367_v40 }
 0x403   : > { %v4498_v10 = vpop.permute.xlu1 %1703  ;;  %v1618_v24 = vpop.permute.xlu0 %1617  ;;  %2830 = vlog2.f32 %v1992_v2  ;;  %v2020_v35 = vsub.f32 %v2012_v17, %v4309_v13  ;;  %v2132_v44 = vsub.f32 %v2012_v17, %v4338_v25  ;;  %v5284_v25 = vld [vmem:[#allocation46_spill] sm:$0xff] }
 0x404   : > { %vm1640_vm0 = vcmp.eq.s32.totalorder %v3305_v55, %v1618_v24  ;;  %v1570_v24 = vsel %vm1562_vm7, %v3283_v37, %v1530_v19  ;;  %vm1722_vm5 = vcmp.eq.s32.totalorder %v3305_v55, %v4498_v10  ;;  %v5288_v2 = vld [vmem:[#allocation2_spill] sm:$0xff]  ;;  %v5293_v19 = vld [vmem:[#allocation95_spill] sm:$0xff] }
 0x405   : > { %2767 = vset.pattern.permute.xlu0 %v5141_v26  ;;  %2776 = vset.pattern.permute.xlu1 %v2855_v1  ;;  %v1648_v34 = vsel %vm1640_vm0, %v5273_v22, %v1608_v50  ;;  %v1610_v36 = vsel %vm1602_vm11, %v3291_v41, %v1570_v24  ;;  %v5279_v41 = vld [vmem:[#allocation27_spill] sm:$0xff]  ;;  %v1531_v50 = vsel %vm1523_vm6, %v5282_v38, 0.0 }
 0x406   : > { %1675 = vperm.xlu0 %2767, %v4411_v4   ;;  %2140 = vperm.xlu1 %2776, %v2130_v30   ;;  %v1688_v57 = vsel %vm1680_vm2, %v5274_v20, %v1648_v34  ;;  %v1650_v7 = vsel %vm1642_vm15, %v3297_v45, %v1610_v36  ;;  %vm5280_vm2 = vcmask 80896   ;;  %vm1960_vm15 = vcmp.gt.f32.partialorder %v5234_v58, 20.0  ;;  %v5296_v36 = vld [vmem:[#allocation4_spill] sm:$0xff] }
 0x407   : > { %v1690_v5 = vsel %vm1682_vm12, %v3303_v51, %v1650_v7  ;;  %vm5286_vm11 = vmmov %vm5280_vm2 }
 0x408   : > { %v4513_v14 = vpop.permute.xlu1 %1743  ;;  %v1698_v26 = vpop.permute.xlu0 %1697  ;;  %v1730_v45 = vsel %vm1722_vm5, %v3312_v61, %v1690_v5  ;;  %v2018_v61 = vsub.f32 %v4495_v3, %v3921_v43  ;;  %vm1683_vm5 = vcmp.eq.s32.totalorder %v3305_v55, %v5293_v19  ;;  %v5300_v5 = vld [vmem:[#allocation87_spill] sm:$0xff]  ;;  %v5317_v19 = vld [vmem:[#allocation49_spill] sm:$0xff] }
 0x409   : > { %vm1720_vm14 = vcmp.eq.s32.totalorder %v3305_v55, %v1698_v26  ;;  %vm1762_vm4 = vcmp.eq.s32.totalorder %v3305_v55, %v4513_v14 }
 0x40a   : > { %2769 = vset.pattern.permute.xlu0 %v5145_v21  ;;  %2777 = vset.pattern.permute.xlu1 %v2854_v52  ;;  %v1728_v33 = vsel %vm1720_vm14, %v5275_v42, %v1688_v57  ;;  %v5276_v21 = vld [vmem:[#allocation17_spill] sm:$0xff]  ;;  %v1770_v59 = vsel %vm1762_vm4, %v3323_v53, %v1730_v45  ;;  %vm1961_vm4 = vcmp.gt.f32.partialorder %v5205_v46, 20.0 }
 0x40b   : > { %1755 = vperm.xlu0 %2769, %v4411_v4   ;;  %2043 = vperm.xlu1 %2777, %v2021_v32   ;;  %v1768_v8 = vsel %vm1760_vm8, %v5276_v21, %v1728_v33  ;;  %vm1958_vm8 = vcmp.gt.f32.partialorder %v5176_v29, 20.0  ;;  %v5289_v57 = vld [vmem:[#allocation93_spill] sm:$0xff]  ;;  %v5291_v33 = vld [vmem:[#allocation31_spill] sm:$0xff]  ;;  %v5292_v21 = vld [vmem:[#allocation86_spill] sm:$0xff] }
 0x40d   : > { %v1784_v63 = vpop.permute.xlu1 %1783  ;;  %v1778_v9 = vpop.permute.xlu0 %1777 }
 0x40e   : > { %vm1800_vm10 = vcmp.eq.s32.totalorder %v3305_v55, %v1778_v9  ;;  %vm1802_vm0 = vcmp.eq.s32.totalorder %v3305_v55, %v1784_v63 }
 0x40f   : > { %2771 = vset.pattern.permute.xlu0 %v5149_v16  ;;  %2778 = vset.pattern.permute.xlu1 %v2855_v1  ;;  %v1808_v56 = vsel %vm1800_vm10, %v5277_v18, %v1768_v8  ;;  %v2825_v16 = vpop.eup %2824  ;;  %v1810_v15 = vsel %vm1802_vm0, %v5281_v49, %v1770_v59  ;;  %v5294_v18 = vld [vmem:[#allocation28_spill] sm:$0xff] }
 0x410   : > { %1835 = vperm.xlu0 %2771, %v4411_v4   ;;  %2155 = vperm.xlu1 %2778, %v2133_v28   ;;  %v2827_v13 = vpop.eup %2826  ;;  %v1848_v0 = vsel %vm1840_vm1, %v5278_v27, %v1808_v56  ;;  %v1993_v30 = vadd.f32 1.0, %v2825_v16  ;;  %v5299_v27 = vld [vmem:[#allocation34_spill] sm:$0xff] }
 0x411   : > { %v2829_v62 = vpop.eup %2828  ;;  %v2005_v51 = vmul.f32 0.6931472, %v2827_v13  ;;  %v5298_v13 = vld [vmem:[#allocation30_spill] sm:$0xff] }
 0x412   : > { %v1824_v4 = vpop.permute.xlu1 %1823  ;;  %v1858_v37 = vpop.permute.xlu0 %1857  ;;  %v2003_v10 = vmul.f32 0.6931472, %v2829_v62  ;;  %2832 = vlog2.f32 %v1993_v30 }
 0x413   : > { %vm1880_vm9 = vcmp.eq.s32.totalorder %v3305_v55, %v1858_v37  ;;  %vm1842_vm14 = vcmp.eq.s32.totalorder %v3305_v55, %v1824_v4  ;;  %v2831_v43 = vpop.eup %2830  ;;  %v2015_v14 = vsel %vm1959_vm13, %v3031_v54, %v2005_v51  ;;  %v5297_v37 = vld [vmem:[#allocation96_spill] sm:$0xff] }
 0x414   : > { %v1888_v12 = vsel %vm1880_vm9, %v5279_v41, %v1848_v0  ;;  %2774 = vset.pattern.permute.xlu0 %v2855_v1  ;;  %2779 = vset.pattern.permute.xlu1 %v2854_v52  ;;  %v1850_v53 = vsel %vm1842_vm14, %v5283_v39, %v1810_v15  ;;  %v2014_v40 = vsel %vm1958_vm8, %v5176_v29, %v2003_v10  ;;  %v2007_v26 = vmul.f32 0.6931472, %v2831_v43  ;;  %v5290_v29 = vld [vmem:[#allocation97_spill] sm:$0xff]  ;;  %v5302_v51 = vld [vmem:[#allocation32_spill] sm:$0xff] }
 0x415   : > { %2186 = vst.msk [vmem:[%s4464_s27] sm:$0xff] %vm5280_vm2, %v1888_v12  ;;  %2145 = vperm.xlu0 %2774, %v2131_v48   ;;  %2038 = vperm.xlu1 %2779, %v2020_v35   ;;  %v2023_v20 = vsub.f32 %v2015_v14, %v5288_v2  ;;  %v2134_v11 = vsub.f32 %v2014_v40, %v5289_v57  ;;  %v5301_v12 = vld [vmem:[#allocation98_spill] sm:$0xff]  ;;  %v5305_v15 = vld [vmem:[#allocation88_spill] sm:$0xff]  ;;  %v5313_v57 = vld [vmem:[#allocation41_spill] sm:$0xff] }
 0x416   : > { %v2016_v54 = vsel %vm1960_vm15, %v5234_v58, %v2007_v26  ;;  %v2135_v8 = vsub.f32 %v2015_v14, %v5292_v21  ;;  %v5295_v58 = vld [vmem:[#allocation33_spill] sm:$0xff]  ;;  %v2022_v4 = vsub.f32 %v2014_v40, %v5296_v36  ;;  %vm1763_vm9 = vcmp.eq.s32.totalorder %v3305_v55, %v5297_v37  ;;  %v5310_v14 = vld [vmem:[#allocation56_spill] sm:$0xff]  ;;  %v5312_v2 = vld [vmem:[#allocation58_spill] sm:$0xff] }
 0x417   : > { %v1864_v60 = vpop.permute.xlu1 %1863  ;;  %v1547_v31 = vpop.permute.xlu0 %1546  ;;  %v2136_v42 = vsub.f32 %v2016_v54, %v5290_v29  ;;  %vm1843_vm6 = vcmp.eq.s32.totalorder %v3305_v55, %v5301_v12  ;;  %v5311_v40 = vld [vmem:[#allocation40_spill] sm:$0xff]  ;;  %v5321_v37 = vld [vmem:[#allocation53_spill] sm:$0xff] }
 0x418   : > { %vm1882_vm7 = vcmp.eq.s32.totalorder %v3305_v55, %v1864_v60  ;;  %vm1563_vm10 = vcmp.eq.s32.totalorder %v3305_v55, %v1547_v31  ;;  %v5306_v31 = vld [vmem:[#allocation52_spill] sm:$0xff] }
 0x419   : > { %v1890_v3 = vsel %vm1882_vm7, %v5284_v25, %v1850_v53  ;;  %v1571_v22 = vsel %vm1563_vm10, %v5285_v23, %v1531_v50  ;;  %2775 = vset.pattern.permute.xlu0 %v2854_v52  ;;  %2780 = vset.pattern.permute.xlu1 %v2855_v1  ;;  %v5307_v53 = vld [vmem:[#allocation38_spill] sm:$0xff]  ;;  %v5309_v23 = vld [vmem:[#allocation39_spill] sm:$0xff]  ;;  %v5320_v36 = vld [vmem:[#allocation64_spill] sm:$0xff] }
 0x41a   : > { %2188 = vst.msk [vmem:[%s4464_s27 + $0x10] sm:$0xff] %vm5286_vm11, %v1890_v3  ;;  %2150 = vperm.xlu1 %2780, %v2132_v44   ;;  %2028 = vperm.xlu0 %2775, %v2018_v61   ;;  %v1611_v34 = vsel %vm1603_vm3, %v5287_v47, %v1571_v22  ;;  %v5303_v44 = vld [vmem:[#allocation35_spill] sm:$0xff]  ;;  %v5308_v25 = vld [vmem:[#allocation54_spill] sm:$0xff] }
 0x41c   : > { %v1513_v6 = vpop.permute.xlu1 %1512  ;;  %v1627_v32 = vpop.permute.xlu0 %1626 }
 0x41d   : > { %vm1643_vm12 = vcmp.eq.s32.totalorder %v3305_v55, %v1627_v32  ;;  %v2833_v17 = vpop.eup %2832  ;;  %vm1525_vm13 = vcmp.eq.s32.totalorder %v3305_v55, %v1513_v6 }
 0x41e   : > { %2781 = vset.pattern.permute.xlu1 %v2854_v52  ;;  %2784 = vset.pattern.permute.xlu0 %v2855_v1  ;;  %v1651_v63 = vsel %vm1643_vm12, %v5291_v33, %v1611_v34  ;;  %v2009_v24 = vmul.f32 0.6931472, %v2833_v17  ;;  %v1533_v38 = vsel %vm1525_vm13, %v5306_v31, 0.0 }
 0x41f   : > { %2053 = vperm.xlu1 %2781, %v2023_v20   ;;  %2160 = vperm.xlu0 %2784, %v2134_v11   ;;  %v1691_v56 = vsel %vm1683_vm5, %v5294_v18, %v1651_v63  ;;  %v5315_v63 = vld [vmem:[#allocation43_spill] sm:$0xff] }
 0x420   : > { %v2017_v62 = vsel %vm1961_vm4, %v5205_v46, %v2009_v24  ;;  %vm5316_vm4 = vmmov %vm5280_vm2 }
 0x421   : > { %v1593_v9 = vpop.permute.xlu1 %1592  ;;  %v1707_v28 = vpop.permute.xlu0 %1706  ;;  %v2025_v41 = vsub.f32 %v2017_v62, %v5300_v5  ;;  %v2137_v60 = vsub.f32 %v2017_v62, %v5305_v15  ;;  %v5323_v5 = vld [vmem:[#allocation55_spill] sm:$0xff] }
 0x422   : > { %vm1723_vm1 = vcmp.eq.s32.totalorder %v3305_v55, %v1707_v28  ;;  %vm1605_vm10 = vcmp.eq.s32.totalorder %v3305_v55, %v1593_v9 }
 0x423   : > { %2782 = vset.pattern.permute.xlu1 %v2855_v1  ;;  %2170 = vperm.xlu0 %2784, %v2136_v42   ;;  %v1731_v35 = vsel %vm1723_vm1, %v5295_v58, %v1691_v56  ;;  %v5314_v42 = vld [vmem:[#allocation60_spill] sm:$0xff]  ;;  %v5318_v56 = vld [vmem:[#allocation62_spill] sm:$0xff] }
 0x424   : > { %2165 = vperm.xlu1 %2782, %v2135_v8   ;;  %v1771_v7 = vsel %vm1763_vm9, %v5298_v13, %v1731_v35  ;;  %v5319_v35 = vld [vmem:[#allocation51_spill] sm:$0xff] }
 0x426   : > { %v1673_v16 = vpop.permute.xlu1 %1672  ;;  %v1787_v48 = vpop.permute.xlu0 %1786 }
 0x427   : > { %vm1803_vm0 = vcmp.eq.s32.totalorder %v3305_v55, %v1787_v48  ;;  %vm1685_vm11 = vcmp.eq.s32.totalorder %v3305_v55, %v1673_v16 }
 0x428   : > { %2783 = vset.pattern.permute.xlu1 %v2854_v52  ;;  %v1811_v0 = vsel %vm1803_vm0, %v5299_v27, %v1771_v7  ;;  %v5304_v52 = vld [vmem:[#allocation94_spill] sm:$0xff] }
 0x429   : > { %2048 = vperm.xlu1 %2783, %v2022_v4   ;;  %v1851_v59 = vsel %vm1843_vm6, %v5302_v51, %v1811_v0  ;;  %v2024_v10 = vsub.f32 %v2016_v54, %v5304_v52  ;;  %v5322_v0 = vld [vmem:[#allocation66_spill] sm:$0xff] }
 0x42b   : > { %v1753_v30 = vpop.permute.xlu1 %1752  ;;  %v1867_v45 = vpop.permute.xlu0 %1866 }
 0x42c   : > { %vm1883_vm14 = vcmp.eq.s32.totalorder %v3305_v55, %v1867_v45  ;;  %vm1765_vm15 = vcmp.eq.s32.totalorder %v3305_v55, %v1753_v30  ;;  %v5324_v45 = vld [vmem:[#allocation68_spill] sm:$0xff] }
 0x42d   : > { %v1891_v61 = vsel %vm1883_vm14, %v5303_v44, %v1851_v59  ;;  %2063 = vperm.xlu1 %2783, %v2025_v41   ;;  %v5325_v59 = vld [vmem:[#allocation57_spill] sm:$0xff] }
 0x42e   : > { %2189 = vst.msk [vmem:[%s4464_s27 + $0x18] sm:$0xff] %vm5280_vm2, %v1891_v61  ;;  %v5326_v61 = vld [vmem:[#allocation70_spill] sm:$0xff] }
 0x430   : > { %v1833_v49 = vpop.permute.xlu1 %1832  ;;  %v1553_v46 = vpop.permute.xlu0 %1552 }
 0x431   : > { %2058 = vperm.xlu1 %2783, %v2024_v10   ;;  %vm1565_vm8 = vcmp.eq.s32.totalorder %v3305_v55, %v1553_v46  ;;  %vm1845_vm1 = vcmp.eq.s32.totalorder %v3305_v55, %v1833_v49  ;;  %v5328_v46 = vld [vmem:[#allocation74_spill] sm:$0xff] }
 0x432   : > { %v1573_v43 = vsel %vm1565_vm8, %v5307_v53, %v1533_v38  ;;  %v5329_v38 = vld [vmem:[#allocation59_spill] sm:$0xff] }
 0x433   : > { %v1613_v3 = vsel %vm1605_vm10, %v5308_v25, %v1573_v43  ;;  %v5331_v43 = vld [vmem:[#allocation61_spill] sm:$0xff] }
 0x435   : > { %v1550_v50 = vpop.permute.xlu1 %1549  ;;  %v1633_v39 = vpop.permute.xlu0 %1632  ;;  %2785 = vset.pattern.permute.xlu1 %v2855_v1 }
 0x436   : > { %2175 = vperm.xlu1 %2785, %v2137_v60   ;;  %vm1645_vm7 = vcmp.eq.s32.totalorder %v3305_v55, %v1633_v39  ;;  %vm1564_vm6 = vcmp.eq.s32.totalorder %v3305_v55, %v1550_v50  ;;  %v5330_v39 = vld [vmem:[#allocation75_spill] sm:$0xff] }
 0x437   : > { %v1653_v22 = vsel %vm1645_vm7, %v5309_v23, %v1613_v3 }
 0x438   : > { %v1693_v1 = vsel %vm1685_vm11, %v5310_v14, %v1653_v22  ;;  %vm5327_vm11 = vmmov %vm5316_vm4  ;;  %v5332_v22 = vld [vmem:[#allocation76_spill] sm:$0xff] }
 0x43a   : > { %v1630_v47 = vpop.permute.xlu1 %1629  ;;  %v1713_v34 = vpop.permute.xlu0 %1712 }
 0x43b   : > { %vm1725_vm3 = vcmp.eq.s32.totalorder %v3305_v55, %v1713_v34  ;;  %vm1644_vm2 = vcmp.eq.s32.totalorder %v3305_v55, %v1630_v47  ;;  %v5333_v34 = vld [vmem:[#allocation63_spill] sm:$0xff] }
 0x43c   : > { %v1733_v26 = vsel %vm1725_vm3, %v5311_v40, %v1693_v1 }
 0x43d   : > { %v1773_v20 = vsel %vm1765_vm15, %v5312_v2, %v1733_v26  ;;  %v5334_v26 = vld [vmem:[#allocation77_spill] sm:$0xff] }
 0x43f   : > { %v1710_v6 = vpop.permute.xlu1 %1709  ;;  %v1793_v32 = vpop.permute.xlu0 %1792 }
 0x440   : > { %vm1805_vm12 = vcmp.eq.s32.totalorder %v3305_v55, %v1793_v32  ;;  %vm1724_vm13 = vcmp.eq.s32.totalorder %v3305_v55, %v1710_v6  ;;  %v5335_v32 = vld [vmem:[#allocation65_spill] sm:$0xff] }
 0x441   : > { %v1813_v11 = vsel %vm1805_vm12, %v5313_v57, %v1773_v20 }
 0x442   : > { %v1853_v33 = vsel %vm1845_vm1, %v5314_v42, %v1813_v11  ;;  %v5336_v11 = vld [vmem:[#allocation78_spill] sm:$0xff] }
 0x444   : > { %v1790_v54 = vpop.permute.xlu1 %1789  ;;  %v1873_v29 = vpop.permute.xlu0 %1872 }
 0x445   : > { %vm1885_vm5 = vcmp.eq.s32.totalorder %v3305_v55, %v1873_v29  ;;  %vm1804_vm7 = vcmp.eq.s32.totalorder %v3305_v55, %v1790_v54  ;;  %v5337_v29 = vld [vmem:[#allocation67_spill] sm:$0xff] }
 0x446   : > { %v1893_v9 = vsel %vm1885_vm5, %v5315_v63, %v1853_v33 }
 0x447   : > { %2191 = vst.msk [vmem:[%s4464_s27 + $0x28] sm:$0xff] %vm5316_vm4, %v1893_v9 }
 0x449   : > { %v1870_v28 = vpop.permute.xlu1 %1869  ;;  %v1510_v21 = vpop.permute.xlu0 %1509 }
 0x44a   : > { %vm1524_vm9 = vcmp.eq.s32.totalorder %v3305_v55, %v1510_v21  ;;  %vm1884_vm3 = vcmp.eq.s32.totalorder %v3305_v55, %v1870_v28  ;;  %v5339_v21 = vld [vmem:[#allocation3_spill] sm:$0xff] }
 0x44b   : > { %v1532_v18 = vsel %vm1524_vm9, %v5317_v19, 0.0 }
 0x44c   : > { %v1572_v58 = vsel %vm1564_vm6, %v5318_v56, %v1532_v18  ;;  %v2856_v18 = vmov 0.0  }
 0x44e   : > { %v1519_v8 = vpop.permute.xlu1 %1518  ;;  %v1590_v17 = vpop.permute.xlu0 %1589 }
 0x44f   : > { %vm1604_vm0 = vcmp.eq.s32.totalorder %v3305_v55, %v1590_v17  ;;  %vm1527_vm15 = vcmp.eq.s32.totalorder %v3305_v55, %v1519_v8  ;;  %v5340_v17 = vld [vmem:[#allocation12_spill] sm:$0xff] }
 0x450   : > { %v1612_v24 = vsel %vm1604_vm0, %v5319_v35, %v1572_v58  ;;  %v1535_v15 = vsel %vm1527_vm15, %v5328_v46, 0.0  ;;  %v5342_v58 = vld [vmem:[#allocation79_spill] sm:$0xff] }
 0x451   : > { %v1652_v4 = vsel %vm1644_vm2, %v5320_v36, %v1612_v24 }
 0x453   : > { %v1599_v16 = vpop.permute.xlu1 %1598  ;;  %v1670_v48 = vpop.permute.xlu0 %1669 }
 0x454   : > { %vm1684_vm14 = vcmp.eq.s32.totalorder %v3305_v55, %v1670_v48  ;;  %vm1607_vm5 = vcmp.eq.s32.totalorder %v3305_v55, %v1599_v16  ;;  %v5343_v48 = vld [vmem:[#allocation89_spill] sm:$0xff] }
 0x455   : > { %v1692_v13 = vsel %vm1684_vm14, %v5321_v37, %v1652_v4 }
 0x456   : > { %v1732_v62 = vsel %vm1724_vm13, %v5322_v0, %v1692_v13  ;;  %vm5338_vm13 = vmmov %vm5327_vm11 }
 0x458   : > { %v1679_v7 = vpop.permute.xlu1 %1678  ;;  %v1750_v27 = vpop.permute.xlu0 %1749 }
 0x459   : > { %vm1764_vm8 = vcmp.eq.s32.totalorder %v3305_v55, %v1750_v27  ;;  %vm1687_vm9 = vcmp.eq.s32.totalorder %v3305_v55, %v1679_v7  ;;  %v5344_v7 = vld [vmem:[#allocation23_spill] sm:$0xff] }
 0x45a   : > { %v1772_v41 = vsel %vm1764_vm8, %v5323_v5, %v1732_v62  ;;  %v5346_v62 = vld [vmem:[#allocation80_spill] sm:$0xff] }
 0x45b   : > { %v1812_v51 = vsel %vm1804_vm7, %v5324_v45, %v1772_v41  ;;  %vm5341_vm7 = vcmp.lt.s32.totalorder %v3305_v55, 9 }
 0x45d   : > { %v1759_v12 = vpop.permute.xlu1 %1758  ;;  %v1830_v30 = vpop.permute.xlu0 %1829 }
 0x45e   : > { %vm1844_vm10 = vcmp.eq.s32.totalorder %v3305_v55, %v1830_v30  ;;  %vm1767_vm0 = vcmp.eq.s32.totalorder %v3305_v55, %v1759_v12  ;;  %v5347_v12 = vld [vmem:[#allocation90_spill] sm:$0xff] }
 0x45f   : > { %v1852_v44 = vsel %vm1844_vm10, %v5325_v59, %v1812_v51 }
 0x460   : > { %v1892_v52 = vsel %vm1884_vm3, %v5326_v61, %v1852_v44 }
 0x461   : > { %2190 = vst.msk [vmem:[%s4464_s27 + $0x20] sm:$0xff] %vm5327_vm11, %v1892_v52 }
 0x462   : > { %v1839_v10 = vpop.permute.xlu1 %1838  ;;  %v1559_v49 = vpop.permute.xlu0 %1558 }
 0x463   : > { %vm1567_vm12 = vcmp.eq.s32.totalorder %v3305_v55, %v1559_v49  ;;  %vm1847_vm14 = vcmp.eq.s32.totalorder %v3305_v55, %v1839_v10  ;;  %v5348_v49 = vld [vmem:[#allocation36_spill] sm:$0xff] }
 0x464   : > { %v1575_v50 = vsel %vm1567_vm12, %v5329_v38, %v1535_v15  ;;  %v5350_v15 = vld [vmem:[#allocation81_spill] sm:$0xff]  ;;  %v5351_v38 = vld [vmem:[#allocation91_spill] sm:$0xff] }
 0x465   : > { %v1615_v53 = vsel %vm1607_vm5, %v5330_v39, %v1575_v50 }
 0x467   : > { %v1556_v60 = vpop.permute.xlu1 %1555  ;;  %v1639_v31 = vpop.permute.xlu0 %1638 }
 0x468   : > { %vm1647_vm1 = vcmp.eq.s32.totalorder %v3305_v55, %v1639_v31  ;;  %vm1566_vm15 = vcmp.eq.s32.totalorder %v3305_v55, %v1556_v60 }
 0x469   : > { %v1655_v25 = vsel %vm1647_vm1, %v5331_v43, %v1615_v53  ;;  %vm5345_vm1 = vcmp.gt.s32.totalorder %v3305_v55, 0 }
 0x46a   : > { %v1695_v47 = vsel %vm1687_vm9, %v5332_v22, %v1655_v25 }
 0x46c   : > { %v1636_v3 = vpop.permute.xlu1 %1635  ;;  %v1719_v23 = vpop.permute.xlu0 %1718 }
 0x46d   : > { %vm1727_vm4 = vcmp.eq.s32.totalorder %v3305_v55, %v1719_v23  ;;  %vm1646_vm5 = vcmp.eq.s32.totalorder %v3305_v55, %v1636_v3 }
 0x46e   : > { %v1735_v14 = vsel %vm1727_vm4, %v5333_v34, %v1695_v47  ;;  %v5352_v47 = vld [vmem:[#allocation82_spill] sm:$0xff] }
 0x46f   : > { %v1775_v6 = vsel %vm1767_vm0, %v5334_v26, %v1735_v14  ;;  %v5353_v14 = vld [vmem:[#allocation37_spill] sm:$0xff] }
 0x471   : > { %v1716_v1 = vpop.permute.xlu1 %1715  ;;  %v1799_v40 = vpop.permute.xlu0 %1798 }
 0x472   : > { %vm1807_vm6 = vcmp.eq.s32.totalorder %v3305_v55, %v1799_v40  ;;  %vm1726_vm0 = vcmp.eq.s32.totalorder %v3305_v55, %v1716_v1 }
 0x473   : > { %v1815_v2 = vsel %vm1807_vm6, %v5335_v32, %v1775_v6  ;;  %v5355_v6 = vld [vmem:[#allocation92_spill] sm:$0xff] }
 0x474   : > { %v1855_v54 = vsel %vm1847_vm14, %v5336_v11, %v1815_v2  ;;  %v5357_v2 = vld [vmem:[#allocation83_spill] sm:$0xff] }
 0x476   : > { %v4708_v20 = vpop.permute.xlu1 %1795  ;;  %v1879_v57 = vpop.permute.xlu0 %1878 }
 0x477   : > { %vm1887_vm2 = vcmp.eq.s32.totalorder %v3305_v55, %v1879_v57 }
 0x478   : > { %v1895_v42 = vsel %vm1887_vm2, %v5337_v29, %v1855_v54  ;;  %vm5349_vm2 = vmmov %vm5341_vm7 }
 0x479   : > { %2193 = vst.msk [vmem:[%s4464_s27 + $0x38] sm:$0xff] %vm5338_vm13, %v1895_v42 }
 0x47b   : > { %v4715_v33 = vpop.permute.xlu1 %1875  ;;  %v1516_v63 = vpop.permute.xlu0 %1515 }
 0x47c   : > { %vm1526_vm8 = vcmp.eq.s32.totalorder %v3305_v55, %v1516_v63 }
 0x47d   : > { %v1534_v8 = vsel %vm1526_vm8, %v5339_v21, 0.0  ;;  %v5361_v21 = vld [vmem:[#allocation48_spill] sm:$0xff] }
 0x47e   : > { %v1574_v35 = vsel %vm1566_vm15, %v5342_v58, %v1534_v8  ;;  %vm5354_vm15 = vmmov %vm5345_vm1 }
 0x480   : > { %v2034_v9 = vpop.permute.xlu1 %2033  ;;  %v1596_v28 = vpop.permute.xlu0 %1595 }
 0x481   : > { %v2067_v19 = vsel %vm5341_vm7, %v5340_v17, %v2034_v9  ;;  %vm1606_vm11 = vcmp.eq.s32.totalorder %v3305_v55, %v1596_v28  ;;  %v5359_v9 = vld [vmem:[#allocation14_spill] sm:$0xff] }
 0x482   : > { %vm2211_vm10 = vcmp.gt.f32.partialorder %v2067_v19, 0.0  ;;  %vm2219_vm3 = vcmp.lt.f32.partialorder %v2067_v19, 0.0  ;;  %v1614_v36 = vsel %vm1606_vm11, %v5343_v48, %v1574_v35  ;;  %v2195_v13 = vand.u32 2147483647, %v2067_v19 }
 0x483   : > { %v2227_v56 = vsel %vm2219_vm3, -1.0, %v2856_v18  ;;  %v1654_v5 = vsel %vm1646_vm5, %v5346_v62, %v1614_v36  ;;  %v5366_v62 = vld [vmem:[#allocation21_spill] sm:$0xff] }
 0x484   : > { %v2235_v24 = vsel %vm2211_vm10, 1.0, %v2227_v56  ;;  %vm2203_vm6 = vcmp.lt.f32.partialorder %v2195_v13, 1e-05  ;;  %vm1806_vm10 = vcmp.eq.s32.totalorder %v3305_v55, %v4708_v20 }
 0x485   : > { %v2243_v16 = vadd.f32 0.1, %v2235_v24  ;;  %v1676_v4 = vpop.permute.xlu0 %1675  ;;  %v2141_v37 = vpop.permute.xlu1 %2140 }
 0x486   : > { %vm1686_vm12 = vcmp.eq.s32.totalorder %v3305_v55, %v1676_v4  ;;  %v2178_v27 = vsel %vm5345_vm1, %v5344_v7, %v2141_v37  ;;  %vm5356_vm1 = vmmov %vm5338_vm13 }
 0x487   : > { %v2251_v0 = vmul.f32 1e-05, %v2243_v16  ;;  %vm2298_vm4 = vcmp.gt.f32.partialorder %v2178_v27, 0.0  ;;  %vm2306_vm9 = vcmp.lt.f32.partialorder %v2178_v27, 0.0  ;;  %v1694_v30 = vsel %vm1686_vm12, %v5347_v12, %v1654_v5 }
 0x488   : > { %v2314_v45 = vsel %vm2306_vm9, -1.0, %v2856_v18  ;;  %v2282_v51 = vand.u32 2147483647, %v2178_v27  ;;  %v1734_v60 = vsel %vm1726_vm0, %v5350_v15, %v1694_v30  ;;  %vm1886_vm12 = vcmp.eq.s32.totalorder %v3305_v55, %v4715_v33  ;;  %vm5358_vm9 = vmmov %vm5356_vm1 }
 0x489   : > { %v2259_v41 = vadd.f32 %v2251_v0, %v2067_v19  ;;  %v2322_v59 = vsel %vm2298_vm4, 1.0, %v2314_v45 }
 0x48a   : > { %v1756_v44 = vpop.permute.xlu0 %1755  ;;  %v2044_v61 = vpop.permute.xlu1 %2043  ;;  %v2330_v10 = vadd.f32 0.1, %v2322_v59  ;;  %vm2290_vm3 = vcmp.lt.f32.partialorder %v2282_v51, 1e-05 }
 0x48b   : > { %v2267_v52 = vsel %vm2203_vm6, %v2259_v41, %v2067_v19  ;;  %vm1766_vm14 = vcmp.eq.s32.totalorder %v3305_v55, %v1756_v44  ;;  %v2069_v46 = vsel %vm5349_vm2, %v5348_v49, %v2044_v61  ;;  %vm5360_vm6 = vmmov %vm5354_vm15 }
 0x48c   : > { %2275 = vst.msk [vmem:[%s4737_s8 + $0x8] sm:$0xff] %vm5338_vm13, %v2267_v52  ;;  %vm2213_vm8 = vcmp.gt.f32.partialorder %v2069_v46, 0.0  ;;  %vm2221_vm7 = vcmp.lt.f32.partialorder %v2069_v46, 0.0  ;;  %v2338_v31 = vmul.f32 1e-05, %v2330_v10  ;;  %v1774_v50 = vsel %vm1766_vm14, %v5351_v38, %v1734_v60  ;;  %vm5362_vm14 = vmmov %vm5349_vm2 }
 0x48d   : > { %v2229_v39 = vsel %vm2221_vm7, -1.0, %v2856_v18  ;;  %v2197_v22 = vand.u32 2147483647, %v2069_v46  ;;  %v1814_v34 = vsel %vm1806_vm10, %v5352_v47, %v1774_v50  ;;  %vm5363_vm2 = vmmov %vm5356_vm1  ;;  %v5372_v50 = vld [vmem:[#allocation45_spill] sm:$0xff] }
 0x48e   : > { %v2237_v53 = vsel %vm2213_vm8, 1.0, %v2229_v39  ;;  %v2346_v43 = vadd.f32 %v2338_v31, %v2178_v27 }
 0x48f   : > { %v2245_v25 = vadd.f32 0.1, %v2237_v53  ;;  %v1836_v3 = vpop.permute.xlu0 %1835  ;;  %v2156_v23 = vpop.permute.xlu1 %2155  ;;  %vm2205_vm0 = vcmp.lt.f32.partialorder %v2197_v22, 1e-05 }
 0x490   : > { %vm1846_vm11 = vcmp.eq.s32.totalorder %v3305_v55, %v1836_v3  ;;  %v2181_v1 = vsel %vm5354_vm15, %v5353_v14, %v2156_v23  ;;  %v2354_v40 = vsel %vm2290_vm3, %v2346_v43, %v2178_v27  ;;  %v5364_v27 = vld [vmem:[#allocation50_spill] sm:$0xff]  ;;  %vm5367_vm15 = vmmov %vm5362_vm14  ;;  %v5375_v23 = vld [vmem:[#allocation73_spill] sm:$0xff] }
 0x491   : > { %v2253_v26 = vmul.f32 1e-05, %v2245_v25  ;;  %v1854_v32 = vsel %vm1846_vm11, %v5355_v6, %v1814_v34  ;;  %2362 = vst.msk [vmem:[%s4755_s11] sm:$0xff] %vm5356_vm1, %v2354_v40  ;;  %vm2301_vm5 = vcmp.gt.f32.partialorder %v2181_v1, 0.0  ;;  %vm2309_vm4 = vcmp.lt.f32.partialorder %v2181_v1, 0.0  ;;  %vm5365_vm11 = vmmov %vm5360_vm6 }
 0x492   : > { %v1894_v20 = vsel %vm1886_vm12, %v5357_v2, %v1854_v32  ;;  %v2317_v11 = vsel %vm2309_vm4, -1.0, %v2856_v18  ;;  %v2285_v17 = vand.u32 2147483647, %v2181_v1 }
 0x493   : > { %v2261_v57 = vadd.f32 %v2253_v26, %v2069_v46  ;;  %2192 = vst.msk [vmem:[%s4464_s27 + $0x30] sm:$0xff] %vm5358_vm9, %v1894_v20  ;;  %v2325_v54 = vsel %vm2301_vm5, 1.0, %v2317_v11  ;;  %v5379_v11 = vld [vmem:[#allocation85_spill] sm:$0xff] }
 0x494   : > { %v2146_v29 = vpop.permute.xlu0 %2145  ;;  %v2039_v42 = vpop.permute.xlu1 %2038  ;;  %v2333_v63 = vadd.f32 0.1, %v2325_v54  ;;  %vm2293_vm3 = vcmp.lt.f32.partialorder %v2285_v17, 1e-05 }
 0x495   : > { %v2269_v33 = vsel %vm2205_vm0, %v2261_v57, %v2069_v46  ;;  %v2179_v28 = vsel %vm5360_vm6, %v5359_v9, %v2146_v29  ;;  %v2068_v8 = vsel %vm5362_vm14, %v5361_v21, %v2039_v42 }
 0x496   : > { %2277 = vst.msk [vmem:[%s4737_s8 + $0x18] sm:$0xff] %vm5363_vm2, %v2269_v33  ;;  %vm2299_vm13 = vcmp.gt.f32.partialorder %v2179_v28, 0.0  ;;  %vm2307_vm8 = vcmp.lt.f32.partialorder %v2179_v28, 0.0  ;;  %v2341_v19 = vmul.f32 1e-05, %v2333_v63  ;;  %vm2212_vm7 = vcmp.gt.f32.partialorder %v2068_v8, 0.0  ;;  %vm5373_vm2 = vmmov %vm5356_vm1 }
 0x497   : > { %v2315_v56 = vsel %vm2307_vm8, -1.0, %v2856_v18  ;;  %vm2220_vm10 = vcmp.lt.f32.partialorder %v2068_v8, 0.0  ;;  %v2283_v58 = vand.u32 2147483647, %v2179_v28  ;;  %v2196_v36 = vand.u32 2147483647, %v2068_v8  ;;  %vm5374_vm8 = vmmov %vm5356_vm1 }
 0x498   : > { %v2323_v35 = vsel %vm2299_vm13, 1.0, %v2315_v56  ;;  %v2228_v24 = vsel %vm2220_vm10, -1.0, %v2856_v18  ;;  %v2349_v16 = vadd.f32 %v2341_v19, %v2181_v1  ;;  %vm5376_vm10 = vmmov %vm5365_vm11 }
 0x499   : > { %v2331_v48 = vadd.f32 0.1, %v2323_v35  ;;  %v2236_v4 = vsel %vm2212_vm7, 1.0, %v2228_v24  ;;  %v2151_v37 = vpop.permute.xlu1 %2150  ;;  %v2029_v13 = vpop.permute.xlu0 %2028  ;;  %vm4791_vm5 = vcmp.lt.f32.partialorder %v2283_v58, 1e-05 }
 0x49a   : > { %v2244_v7 = vadd.f32 0.1, %v2236_v4  ;;  %v2180_v0 = vsel %vm5365_vm11, %v5364_v27, %v2151_v37  ;;  %v2066_v5 = vsel %vm5367_vm15, %v5366_v62, %v2029_v13  ;;  %v2357_v41 = vsel %vm2293_vm3, %v2349_v16, %v2181_v1 }
 0x49b   : > { %v2339_v12 = vmul.f32 1e-05, %v2331_v48  ;;  %vm2300_vm12 = vcmp.gt.f32.partialorder %v2180_v0, 0.0  ;;  %2365 = vst.msk [vmem:[%s4755_s11 + $0x18] sm:$0xff] %vm5356_vm1, %v2357_v41  ;;  %vm2308_vm4 = vcmp.lt.f32.partialorder %v2180_v0, 0.0  ;;  %vm2210_vm9 = vcmp.gt.f32.partialorder %v2066_v5, 0.0 }
 0x49c   : > { %v2252_v45 = vmul.f32 1e-05, %v2244_v7  ;;  %vm4795_vm0 = vcmp.lt.f32.partialorder %v2196_v36, 1e-05  ;;  %v2316_v44 = vsel %vm2308_vm4, -1.0, %v2856_v18  ;;  %vm2218_vm6 = vcmp.lt.f32.partialorder %v2066_v5, 0.0 }
 0x49d   : > { %v2347_v51 = vadd.f32 %v2339_v12, %v2179_v28  ;;  %v2284_v52 = vand.u32 2147483647, %v2180_v0  ;;  %v2324_v10 = vsel %vm2300_vm12, 1.0, %v2316_v44  ;;  %v2226_v49 = vsel %vm2218_vm6, -1.0, %v2856_v18  ;;  %vm5380_vm12 = vmmov %vm5376_vm10  ;;  %v5387_v48 = vld [vmem:[#allocation72_spill] sm:$0xff] }
 0x49e   : > { %v2260_v61 = vadd.f32 %v2252_v45, %v2068_v8  ;;  %v2054_v46 = vpop.permute.xlu1 %2053  ;;  %v2161_v15 = vpop.permute.xlu0 %2160  ;;  %v2332_v31 = vadd.f32 0.1, %v2324_v10  ;;  %v2234_v38 = vsel %vm2210_vm9, 1.0, %v2226_v49  ;;  %v2194_v3 = vand.u32 2147483647, %v2066_v5  ;;  %vm5382_vm9 = vmmov %vm5373_vm2 }
 0x49f   : > { %v2355_v60 = vsel %vm4791_vm5, %v2347_v51, %v2179_v28  ;;  %v2071_v39 = vsel %vm5362_vm14, %v5372_v50, %v2054_v46  ;;  %v2242_v43 = vadd.f32 0.1, %v2234_v38  ;;  %v2182_v22 = vsel %vm5376_vm10, %v5375_v23, %v2161_v15  ;;  %vm5381_vm5 = vmmov %vm5373_vm2  ;;  %v5393_v51 = vld [vmem:[#allocation69_spill] sm:$0xff] }
 0x4a0   : > { %2363 = vst.msk [vmem:[%s4755_s11 + $0x8] sm:$0xff] %vm5373_vm2, %v2355_v60  ;;  %v2268_v53 = vsel %vm4795_vm0, %v2260_v61, %v2068_v8  ;;  %vm2215_vm13 = vcmp.gt.f32.partialorder %v2071_v39, 0.0  ;;  %v2340_v25 = vmul.f32 1e-05, %v2332_v31  ;;  %vm2223_vm7 = vcmp.lt.f32.partialorder %v2071_v39, 0.0  ;;  %v5385_v8 = vld [vmem:[#allocation47_spill] sm:$0xff]  ;;  %vm5386_vm14 = vmmov %vm5376_vm10 }
 0x4a1   : > { %2276 = vst.msk [vmem:[%s4737_s8 + $0x10] sm:$0xff] %vm5374_vm8, %v2268_v53  ;;  %vm4815_vm3 = vcmp.lt.f32.partialorder %v2284_v52, 1e-05  ;;  %v2250_v34 = vmul.f32 1e-05, %v2242_v43  ;;  %v2231_v14 = vsel %vm2223_vm7, -1.0, %v2856_v18  ;;  %vm5389_vm7 = vmmov %vm5381_vm5 }
 0x4a2   : > { %vm2302_vm11 = vcmp.gt.f32.partialorder %v2182_v22, 0.0  ;;  %v2171_v1 = vpop.permute.xlu0 %2170  ;;  %v2348_v40 = vadd.f32 %v2340_v25, %v2180_v0  ;;  %v2199_v26 = vand.u32 2147483647, %v2071_v39  ;;  %v2239_v6 = vsel %vm2215_vm13, 1.0, %v2231_v14 }
 0x4a3   : > { %vm2310_vm15 = vcmp.lt.f32.partialorder %v2182_v22, 0.0  ;;  %v2166_v32 = vpop.permute.xlu1 %2165  ;;  %v2258_v2 = vadd.f32 %v2250_v34, %v2066_v5  ;;  %v2247_v20 = vadd.f32 0.1, %v2239_v6  ;;  %v2184_v54 = vsel %vm5380_vm12, %v5379_v11, %v2171_v1  ;;  %v5399_v6 = vld [vmem:[#allocation71_spill] sm:$0xff] }
 0x4a4   : > { %v2318_v57 = vsel %vm2310_vm15, -1.0, %v2856_v18  ;;  %v2356_v29 = vsel %vm4815_vm3, %v2348_v40, %v2180_v0  ;;  %vm2202_vm1 = vcmp.lt.f32.partialorder %v2194_v3, 1e-05  ;;  %vm2304_vm4 = vcmp.gt.f32.partialorder %v2184_v54, 0.0  ;;  %vm5390_vm15 = vmmov %vm5381_vm5 }
 0x4a5   : > { %v2326_v42 = vsel %vm2302_vm11, 1.0, %v2318_v57  ;;  %2364 = vst.msk [vmem:[%s4755_s11 + $0x10] sm:$0xff] %vm5381_vm5, %v2356_v29  ;;  %v2266_v33 = vsel %vm2202_vm1, %v2258_v2, %v2066_v5  ;;  %v2255_v63 = vmul.f32 1e-05, %v2247_v20  ;;  %vm4830_vm0 = vcmp.lt.f32.partialorder %v2199_v26, 1e-05 }
 0x4a6   : > { %v2334_v9 = vadd.f32 0.1, %v2326_v42  ;;  %2274 = vst.msk [vmem:[%s4737_s8] sm:$0xff] %vm5382_vm9, %v2266_v33  ;;  %v2286_v21 = vand.u32 2147483647, %v2182_v22  ;;  %vm2312_vm6 = vcmp.lt.f32.partialorder %v2184_v54, 0.0  ;;  %v2183_v17 = vsel %vm5386_vm14, %v5385_v8, %v2166_v32  ;;  %vm5395_vm9 = vmmov %vm5389_vm7 }
 0x4a7   : > { %v2263_v19 = vadd.f32 %v2255_v63, %v2071_v39  ;;  %v2288_v58 = vand.u32 2147483647, %v2184_v54  ;;  %v2320_v35 = vsel %vm2312_vm6, -1.0, %v2856_v18  ;;  %vm2303_vm2 = vcmp.gt.f32.partialorder %v2183_v17, 0.0 }
 0x4a8   : > { %v2342_v56 = vmul.f32 1e-05, %v2334_v9  ;;  %v2049_v24 = vpop.permute.xlu1 %2048  ;;  %v2328_v16 = vsel %vm2304_vm4, 1.0, %v2320_v35  ;;  %vm2311_vm13 = vcmp.lt.f32.partialorder %v2183_v17, 0.0  ;;  %vm5388_vm8 = vcmp.lt.s32.totalorder %v3305_v55, 9 }
 0x4a9   : > { %v2070_v36 = vsel %vm5388_vm8, %v5387_v48, %v2049_v24  ;;  %v2271_v4 = vsel %vm4830_vm0, %v2263_v19, %v2071_v39  ;;  %v2336_v13 = vadd.f32 0.1, %v2328_v16  ;;  %vm2294_vm10 = vcmp.lt.f32.partialorder %v2286_v21, 1e-05  ;;  %vm5394_vm1 = vmmov %vm5388_vm8  ;;  %v5396_v39 = vld [vmem:[#allocation84_spill] sm:$0xff] }
 0x4aa   : > { %v2350_v37 = vadd.f32 %v2342_v56, %v2182_v22  ;;  %2279 = vst.msk [vmem:[%s4737_s8 + $0x28] sm:$0xff] %vm5389_vm7, %v2271_v4  ;;  %v2319_v7 = vsel %vm2311_vm13, -1.0, %v2856_v18  ;;  %vm2214_vm3 = vcmp.gt.f32.partialorder %v2070_v36, 0.0  ;;  %vm2222_vm11 = vcmp.lt.f32.partialorder %v2070_v36, 0.0  ;;  %vm5397_vm0 = vmmov %vm5394_vm1 }
 0x4ab   : > { %v2344_v0 = vmul.f32 1e-05, %v2336_v13  ;;  %v2327_v62 = vsel %vm2303_vm2, 1.0, %v2319_v7  ;;  %v2230_v5 = vsel %vm2222_vm11, -1.0, %v2856_v18  ;;  %vm4849_vm12 = vcmp.lt.f32.partialorder %v2288_v58, 1e-05  ;;  %vm5398_vm8 = vmmov %vm5389_vm7 }
 0x4ac   : > { %v2358_v27 = vsel %vm2294_vm10, %v2350_v37, %v2182_v22  ;;  %v2064_v41 = vpop.permute.xlu1 %2063  ;;  %v2335_v30 = vadd.f32 0.1, %v2327_v62  ;;  %v2238_v45 = vsel %vm2214_vm3, 1.0, %v2230_v5  ;;  %v2287_v61 = vand.u32 2147483647, %v2183_v17 }
 0x4ad   : > { %2366 = vst.msk [vmem:[%s4755_s11 + $0x20] sm:$0xff] %vm5390_vm15, %v2358_v27  ;;  %v2073_v59 = vsel %vm5394_vm1, %v5393_v51, %v2064_v41  ;;  %v2352_v44 = vadd.f32 %v2344_v0, %v2184_v54  ;;  %v2246_v52 = vadd.f32 0.1, %v2238_v45  ;;  %v2198_v49 = vand.u32 2147483647, %v2070_v36 }
 0x4ae   : > { %vm2217_vm5 = vcmp.gt.f32.partialorder %v2073_v59, 0.0  ;;  %v2343_v10 = vmul.f32 1e-05, %v2335_v30  ;;  %vm2225_vm4 = vcmp.lt.f32.partialorder %v2073_v59, 0.0  ;;  %vm2295_vm6 = vcmp.lt.f32.partialorder %v2287_v61, 1e-05 }
 0x4af   : > { %v2360_v46 = vsel %vm4849_vm12, %v2352_v44, %v2184_v54  ;;  %v2254_v15 = vmul.f32 1e-05, %v2246_v52  ;;  %v2233_v60 = vsel %vm2225_vm4, -1.0, %v2856_v18  ;;  %vm2206_vm2 = vcmp.lt.f32.partialorder %v2198_v49, 1e-05  ;;  %vm5401_vm12 = vmmov %vm5389_vm7 }
 0x4b0   : > { %v2059_v31 = vpop.permute.xlu1 %2058  ;;  %2368 = vst.msk [vmem:[%s4755_s11 + $0x30] sm:$0xff] %vm5395_vm9, %v2360_v46  ;;  %v2351_v38 = vadd.f32 %v2343_v10, %v2183_v17  ;;  %v2241_v50 = vsel %vm2217_vm5, 1.0, %v2233_v60  ;;  %v2201_v23 = vand.u32 2147483647, %v2073_v59  ;;  %vm5400_vm10 = vcmp.gt.s32.totalorder %v3305_v55, 0  ;;  %vm5402_vm5 = vmmov %vm5389_vm7 }
 0x4b1   : > { %v2072_v53 = vsel %vm5397_vm0, %v5396_v39, %v2059_v31  ;;  %v2262_v43 = vadd.f32 %v2254_v15, %v2070_v36  ;;  %v2249_v25 = vadd.f32 0.1, %v2241_v50  ;;  %vm5403_vm9 = vmmov %vm5402_vm5 }
 0x4b2   : > { %vm2216_vm14 = vcmp.gt.f32.partialorder %v2072_v53, 0.0  ;;  %v2359_v3 = vsel %vm2295_vm6, %v2351_v38, %v2183_v17  ;;  %vm2224_vm13 = vcmp.lt.f32.partialorder %v2072_v53, 0.0  ;;  %vm2209_vm3 = vcmp.lt.f32.partialorder %v2201_v23, 1e-05 }
 0x4b3   : > { %2367 = vst.msk [vmem:[%s4755_s11 + $0x28] sm:$0xff] %vm5398_vm8, %v2359_v3  ;;  %v2270_v22 = vsel %vm2206_vm2, %v2262_v43, %v2070_v36  ;;  %v2257_v47 = vmul.f32 1e-05, %v2249_v25  ;;  %v2232_v34 = vsel %vm2224_vm13, -1.0, %v2856_v18  ;;  %v2200_v2 = vand.u32 2147483647, %v2072_v53 }
 0x4b4   : > { %2278 = vst.msk [vmem:[%s4737_s8 + $0x20] sm:$0xff] %vm5389_vm7, %v2270_v22  ;;  %v2240_v14 = vsel %vm2216_vm14, 1.0, %v2232_v34 }
 0x4b5   : > { %v2176_v1 = vpop.permute.xlu1 %2175  ;;  %v2265_v40 = vadd.f32 %v2257_v47, %v2073_v59  ;;  %v2248_v26 = vadd.f32 0.1, %v2240_v14  ;;  %vm2208_vm1 = vcmp.lt.f32.partialorder %v2200_v2, 1e-05 }
 0x4b6   : > { %v2185_v32 = vsel %vm5400_vm10, %v5399_v6, %v2176_v1 }
 0x4b7   : > { %vm2305_vm11 = vcmp.gt.f32.partialorder %v2185_v32, 0.0  ;;  %vm2313_vm15 = vcmp.lt.f32.partialorder %v2185_v32, 0.0  ;;  %v2273_v20 = vsel %vm2209_vm3, %v2265_v40, %v2073_v59  ;;  %v2256_v57 = vmul.f32 1e-05, %v2248_v26 }
 0x4b8   : > { %v2321_v11 = vsel %vm2313_vm15, -1.0, %v2856_v18  ;;  %2281 = vst.msk [vmem:[%s4737_s8 + $0x38] sm:$0xff] %vm5401_vm12, %v2273_v20  ;;  %v2289_v33 = vand.u32 2147483647, %v2185_v32 }
 0x4b9   : > { %v2329_v54 = vsel %vm2305_vm11, 1.0, %v2321_v11  ;;  %v2264_v29 = vadd.f32 %v2256_v57, %v2072_v53 }
 0x4ba   : > { %v2337_v42 = vadd.f32 0.1, %v2329_v54  ;;  %vm2297_vm4 = vcmp.lt.f32.partialorder %v2289_v33, 1e-05 }
 0x4bb   : > { %v2272_v63 = vsel %vm2208_vm1, %v2264_v29, %v2072_v53 }
 0x4bc   : > { %v2345_v55 = vmul.f32 1e-05, %v2337_v42  ;;  %2280 = vst.msk [vmem:[%s4737_s8 + $0x30] sm:$0xff] %vm5402_vm5, %v2272_v63 }
 0x4be   : > { %v2353_v9 = vadd.f32 %v2345_v55, %v2185_v32 }
 0x4c0   : > { %v2361_v28 = vsel %vm2297_vm4, %v2353_v9, %v2185_v32 }
 0x4c1   : > { %2369 = vst.msk [vmem:[%s4755_s11 + $0x38] sm:$0xff] %vm5403_vm9, %v2361_v28 }
 0x4c2 PF: > { %s18_s24 = sadd.s32 1, %s2840_s24  }
 0x4c3   : > { %p15_p4 = scmp.ge.s32.totalorder %s18_s24, 4  }
 0x4c5   :  { %17 = sbr.rel (!%p15_p4) target bundleno = 1 (0x1), region = 94 }

</bundles_post_ra>
